<compile_context>
chip_gen: v7x
topology: tpu7x:2x2x1
jax: 0.10.0
libtpu: 0.0.40
codegen_flags: <defaults>
</compile_context>

<pallas_src>
import math
from functools import partial

import jax
import jax.numpy as jnp
from jax.experimental import pallas as pl
from jax.experimental.pallas import tpu as pltpu


# ---------------------------------------------------------------------------
# Kernel bodies
# ---------------------------------------------------------------------------

def _attention_value(q2, k2, v2, wo_t, out_ref, *, S, TB):
    """Scores + softmax(dim=1) + reassociated (att@V -> flatten -> Linear) epilogue.

    q2, k2, v2 : (H, S*TB) fp32, column = seq_pos * TB + batch_lane
    wo_t       : (H, S)    fp32, transposed 2-D view of the output Linear weight
    out_ref    : (1, 1, TB) output block (one scalar per batch lane)
    """
    # Static, 128-lane-aligned views of each sequence position (TB % 128 == 0).
    q_slabs = [q2[:, i * TB:(i + 1) * TB] for i in range(S)]
    k_slabs = [k2[:, j * TB:(j + 1) * TB] for j in range(S)]

    # TODO(synk): block the S*S score loop for long sequences (unrolled at trace
    # time; intended for small S = user_antennas * user_numbers).
    p_cols = []
    for j in range(S):
        k_j = k_slabs[j]
        # scores for this j: query index i in sublanes, batch in lanes.
        rows = [
            jnp.sum(q_slabs[i] * k_j, axis=0, keepdims=True)      # (1, TB)
            for i in range(S)
        ]
        sc_j = jnp.concatenate(rows, axis=0)                      # (S, TB)
        # softmax over the query index i (== torch nn.Softmax(dim=1)).
        m_j = jnp.max(sc_j, axis=0, keepdims=True)                # (1, TB)
        e_j = jnp.exp(sc_j - m_j)                                 # dense EUP
        l_j = jnp.sum(e_j, axis=0, keepdims=True)                 # (1, TB)
        p_cols.append(e_j / l_j)                                  # exact divide

    # P[i, j*TB + b] = att_weights[b, i, j]   (lane concat: cheap vreg placement)
    P = jnp.concatenate(p_cols, axis=1)                           # (S, S*TB)

    # Reassociated epilogue:
    #   value[b] = sum_{i,j,h} att[b,i,j] V[b,j,h] Wo[i,h]
    #            = sum_{j,h} V[b,j,h] * (Wo^T @ att[b])[h,j]
    # -> one shared-weight MXU matmul; the rest is VPU elementwise + reductions.
    M = jnp.dot(wo_t, P, preferred_element_type=jnp.float32)      # (H, S*TB)
    W = v2 * M                                                    # (H, S*TB)
    red_h = jnp.sum(W, axis=0, keepdims=True)                     # (1, S*TB)
    val = red_h[:, 0:TB]
    for j in range(1, S):
        val = val + red_h[:, j * TB:(j + 1) * TB]                 # (1, TB)
    out_ref[...] = val.reshape(1, 1, TB).astype(out_ref.dtype)


def _critic2_kernel_cross(f_ref, wqkv_ref, bqkv_ref, wo_t_ref, out_ref, *, S, H):
    """cross=True path: single feature input, fused (3H, Din) Q|K|V projection."""
    TB = f_ref.shape[1] // S
    qkv = jnp.dot(wqkv_ref[...], f_ref[...],
                  preferred_element_type=jnp.float32) + bqkv_ref[...]
    _attention_value(qkv[0:H, :], qkv[H:2 * H, :], qkv[2 * H:3 * H, :],
                     wo_t_ref[...], out_ref, S=S, TB=TB)


def _critic2_kernel(f_ref, c_ref, wq_ref, bq_ref, wkv_ref, bkv_ref, wo_t_ref,
                    out_ref, *, S, H):
    """cross=False path: Q from f_feature, fused K|V from c_feature."""
    TB = f_ref.shape[1] // S
    q2 = jnp.dot(wq_ref[...], f_ref[...],
                 preferred_element_type=jnp.float32) + bq_ref[...]
    kv = jnp.dot(wkv_ref[...], c_ref[...],
                 preferred_element_type=jnp.float32) + bkv_ref[...]
    _attention_value(q2, kv[0:H, :], kv[H:2 * H, :],
                     wo_t_ref[...], out_ref, S=S, TB=TB)


# ---------------------------------------------------------------------------
# Wrapper
# ---------------------------------------------------------------------------

def _choose_tb(B, tb_max=512):
    """Batch tile (lane dim).  Multiple of 128 (full lane occupancy + aligned
    slices); prefers a divisor of B (no padding) and >= 2 grid steps so both
    v7x TensorCores get work under dimension_semantics=('parallel',)."""
    if B <= 256:
        return 128
    cands = [t for t in range(128, tb_max + 1, 128) if 2 * t <= B]
    divs = [t for t in cands if B % t == 0]
    return max(divs) if divs else max(cands)


def _prep_features(x, NB, TB, dtype):
    """(B, S, Din) -> (Din, NB*S*TB) with column = nb*(S*TB) + s*TB + b.

    The (rare) ragged-batch padding is fused into this single relayout pass —
    there is no separate jnp.pad traversal of the inputs in HBM.
    """
    B, S, Din = x.shape
    B_pad = NB * TB
    if B_pad != B:
        x = jnp.pad(x, ((0, B_pad - B), (0, 0), (0, 0)))
    x = x.reshape(NB, TB, S, Din).transpose(3, 0, 2, 1).reshape(Din, NB * S * TB)
    return x.astype(dtype)


def critic2_forward(f_feature, c_feature, cross, params, hidden_dim, *,
                    tb=None, compute_dtype=jnp.bfloat16):
    """Pallas port of Critic_2.forward.

    f_feature, c_feature : (B, S, Din) float32, S = user_antennas * user_numbers
    cross                : Python bool (cross=True uses f_feature for K/V too)
    params               : dict of PyTorch-layout weights (see init_params)
    """
    B, S, Din = f_feature.shape
    H = params["wq"].shape[0]
    assert H % 8 == 0 and Din % 8 == 0, "head/feature dims must be sublane aligned"

    TB = _choose_tb(B) if tb is None else tb
    assert TB % 128 == 0, "batch tile must be a multiple of the 128-lane vreg width"
    NB = pl.cdiv(B, TB)

    scale = 1.0 / math.sqrt(hidden_dim[1])

    # Output Linear weight, reshaped row-major to (S, H) (matches torch.flatten
    # order; requires hidden_dim[0] == hidden_dim[3] as the module itself does).
    wo_t = params["wo"].reshape(S, H).T.astype(jnp.float32)        # (H, S)

    f_prep = _prep_features(f_feature, NB, TB, compute_dtype)

    feat_spec = pl.BlockSpec((Din, S * TB), lambda nb: (0, nb))
    out_spec = pl.BlockSpec((1, 1, TB), lambda nb: (nb, 0, 0))
    out_shape = jax.ShapeDtypeStruct((NB, 1, TB), jnp.float32)

    def full(arr):
        return pl.BlockSpec(arr.shape, lambda nb: (0,) * arr.ndim)

    cp = pltpu.CompilerParams(
        dimension_semantics=("parallel",),
        # Explicit scoped-VMEM budget: double-buffered feature blocks plus fp32
        # intermediates fit comfortably; 32 MiB is safe on v5e/v6e/v7x.
        vmem_limit_bytes=32 * 1024 * 1024,
    )

    if cross:
        # Specialized path: one feature tensor, fused Q|K|V projection
        # (1/sqrt(d) folded into the Q rows; bf16 MXU operands).
        wqkv = jnp.concatenate(
            [params["wq"] * scale, params["wk"], params["wv"]], axis=0
        ).astype(compute_dtype)                                    # (3H, Din)
        bqkv = jnp.concatenate(
            [params["bq"] * scale, params["bk"], params["bv"]]
        ).reshape(3 * H, 1).astype(jnp.float32)
        out = pl.pallas_call(
            partial(_critic2_kernel_cross, S=S, H=H),
            out_shape=out_shape,
            grid_spec=pltpu.PrefetchScalarGridSpec(
                num_scalar_prefetch=0,
                grid=(NB,),
                in_specs=[feat_spec, full(wqkv), full(bqkv), full(wo_t)],
                out_specs=out_spec),
            compiler_params=cp,
        )(f_prep, wqkv, bqkv, wo_t)
    else:
        wq_s = (params["wq"] * scale).astype(compute_dtype)        # (H, Din)
        bq_s = (params["bq"] * scale).reshape(H, 1).astype(jnp.float32)
        wkv = jnp.concatenate([params["wk"], params["wv"]], axis=0
                              ).astype(compute_dtype)              # (2H, Din)
        bkv = jnp.concatenate([params["bk"], params["bv"]]
                              ).reshape(2 * H, 1).astype(jnp.float32)
        c_prep = _prep_features(c_feature, NB, TB, compute_dtype)
        out = pl.pallas_call(
            partial(_critic2_kernel, S=S, H=H),
            out_shape=out_shape,
            grid_spec=pltpu.PrefetchScalarGridSpec(
                num_scalar_prefetch=0,
                grid=(NB,),
                in_specs=[feat_spec, feat_spec,
                          full(wq_s), full(bq_s), full(wkv), full(bkv),
                          full(wo_t)],
                out_specs=out_spec),
            compiler_params=cp,
        )(f_prep, c_prep, wq_s, bq_s, wkv, bkv, wo_t)

    value = out.reshape(NB * TB)[:B].reshape(B, 1)
    # Output-layer bias added on the host side (keeps the scalar out of VMEM).
    return value + params["bo"]


# ---------------------------------------------------------------------------
# Parameters (PyTorch nn.Linear layout) and plain-JAX reference
# ---------------------------------------------------------------------------

def init_params(key, in_dim, att_dim, seq_len):
    """Deterministic synthetic parameters; weight (out, in), bias (out,)."""
    assert att_dim == in_dim, (
        "Critic_2 needs hidden_dim[0] == hidden_dim[3]: flatten() yields "
        "S*hidden_dim[0] features but the output layer expects S*hidden_dim[3].")
    ks = jax.random.split(key, 8)
    b_qkv = 1.0 / math.sqrt(in_dim)
    flat_dim = att_dim * seq_len
    b_out = 1.0 / math.sqrt(flat_dim)

    def u(k, shape, bound):
        return jax.random.uniform(k, shape, jnp.float32, -bound, bound)

    return dict(
        wq=u(ks[0], (att_dim, in_dim), b_qkv), bq=u(ks[1], (att_dim,), b_qkv),
        wk=u(ks[2], (att_dim, in_dim), b_qkv), bk=u(ks[3], (att_dim,), b_qkv),
        wv=u(ks[4], (att_dim, in_dim), b_qkv), bv=u(ks[5], (att_dim,), b_qkv),
        wo=u(ks[6], (flat_dim,), b_out),       bo=u(ks[7], (), b_out),
    )


def _reference(f, c, cross, p, hidden_dim):
    """Plain-JAX fp32 mirror of the PyTorch forward."""
    c = f if cross else c
    q = jnp.einsum("bsd,hd->bsh", f, p["wq"]) + p["bq"]
    k = jnp.einsum("bsd,hd->bsh", c, p["wk"]) + p["bk"]
    v = jnp.einsum("bsd,hd->bsh", c, p["wv"]) + p["bv"]
    att = jnp.einsum("bih,bjh->bij", q, k) / math.sqrt(hidden_dim[1])
    att = jax.nn.softmax(att, axis=1)                 # nn.Softmax(dim=1)
    o = jnp.einsum("bij,bjh->bih", att, v)
    flat = o.reshape(o.shape[0], -1)
    return flat @ p["wo"].reshape(-1, 1) + p["bo"]


if __name__ == "__main__":
    # Small config consistent with the module (hidden_dim[0] == hidden_dim[3]).
    hidden_dim = [32, 32, 32, 32]
    user_antennas, user_numbers = 2, 4
    S = user_antennas * user_numbers          # 8
    Din = hidden_dim[3]                       # 32
    B = 2

    key = jax.random.PRNGKey(0)
    k_f, k_c, k_p, k_f2, k_c2 = jax.random.split(key, 5)
    f_feature = jax.random.normal(k_f, (B, S, Din), jnp.float32)
    c_feature = jax.random.normal(k_c, (B, S, Din), jnp.float32)
    params = init_params(k_p, Din, hidden_dim[0], S)

    # Kernel uses bf16 MXU operands (fp32 accumulation); reference is pure fp32.
    TOL = dict(atol=5e-2, rtol=5e-2)

    # cross=False branch (Q from f, fused K|V from c).
    out = critic2_forward(f_feature, c_feature, cross=False,
                          params=params, hidden_dim=hidden_dim)
    jax.block_until_ready(out)
    ref = _reference(f_feature, c_feature, False, params, hidden_dim)
    assert out.shape == (B, 1)
    assert jnp.allclose(out, ref, **TOL), float(jnp.max(jnp.abs(out - ref)))

    # cross=True branch (single feature input, fused QKV projection).
    out_x = critic2_forward(f_feature, c_feature, cross=True,
                            params=params, hidden_dim=hidden_dim)
    jax.block_until_ready(out_x)
    ref_x = _reference(f_feature, c_feature, True, params, hidden_dim)
    assert jnp.allclose(out_x, ref_x, **TOL), float(jnp.max(jnp.abs(out_x - ref_x)))

    # Multi-grid-step + ragged-batch path: B=300 -> TB=128, 3 steps, padded tail.
    B2 = 300
    f2 = jax.random.normal(k_f2, (B2, S, Din), jnp.float32)
    c2 = jax.random.normal(k_c2, (B2, S, Din), jnp.float32)
    out2 = critic2_forward(f2, c2, cross=False,
                           params=params, hidden_dim=hidden_dim)
    jax.block_until_ready(out2)
    ref2 = _reference(f2, c2, False, params, hidden_dim)
    assert out2.shape == (B2, 1)
    assert jnp.allclose(out2, ref2, **TOL), float(jnp.max(jnp.abs(out2 - ref2)))

    print("KERNEL_OK")
</pallas_src>

<mosaic_0001>
module attributes {stable_mosaic.version = 11 : i64} {
  func.func @_critic2_kernel(%arg0: i32, %arg1: memref<32x1024xbf16, #tpu.memory_space<vmem>>, %arg2: memref<32x1024xbf16, #tpu.memory_space<vmem>>, %arg3: memref<32x32xbf16, #tpu.memory_space<vmem>>, %arg4: memref<32x1xf32, #tpu.memory_space<vmem>>, %arg5: memref<64x32xbf16, #tpu.memory_space<vmem>>, %arg6: memref<64x1xf32, #tpu.memory_space<vmem>>, %arg7: memref<32x8xf32, #tpu.memory_space<vmem>>, %arg8: memref<1x1x128xf32, #tpu.memory_space<vmem>>) attributes {dimension_semantics = [#tpu.dimension_semantics<parallel>], iteration_bounds = array<i64: 1>, scalar_prefetch = 0 : i64, scratch_operands = 0 : i64, tpu.core_type = #tpu.core_type<tc>, window_params = [{transform_indices = @transform_0, window_bounds = array<i64: 32, 1024>}, {transform_indices = @transform_1, window_bounds = array<i64: 32, 1024>}, {pipeline_mode = #tpu.pipeline_mode<synchronous>, transform_indices = @transform_2, window_bounds = array<i64: 32, 32>}, {pipeline_mode = #tpu.pipeline_mode<synchronous>, transform_indices = @transform_3, window_bounds = array<i64: 32, 1>}, {pipeline_mode = #tpu.pipeline_mode<synchronous>, transform_indices = @transform_4, window_bounds = array<i64: 64, 32>}, {pipeline_mode = #tpu.pipeline_mode<synchronous>, transform_indices = @transform_5, window_bounds = array<i64: 64, 1>}, {pipeline_mode = #tpu.pipeline_mode<synchronous>, transform_indices = @transform_6, window_bounds = array<i64: 32, 8>}, {transform_indices = @transform_7, window_bounds = array<i64: 1, 1, 128>}]} {
    %c0 = arith.constant 0 : index
    %c0_0 = arith.constant 0 : index
    %0 = vector.load %arg3[%c0, %c0_0] : memref<32x32xbf16, #tpu.memory_space<vmem>>, vector<32x32xbf16>
    %c0_1 = arith.constant 0 : index
    %c0_2 = arith.constant 0 : index
    %1 = vector.load %arg1[%c0_1, %c0_2] : memref<32x1024xbf16, #tpu.memory_space<vmem>>, vector<32x1024xbf16>
    %cst = arith.constant dense<0.000000e+00> : vector<32x1024xf32>
    %2 = tpu.matmul %0, %1, %cst {dimension_numbers = #tpu.dot_dimension_numbers<[1], [0], [0], [1], [0, 0, 1, 1], [], []>} : vector<32x32xbf16>, vector<32x1024xbf16>, vector<32x1024xf32> -> vector<32x1024xf32>
    %c0_3 = arith.constant 0 : index
    %c0_4 = arith.constant 0 : index
    %3 = vector.load %arg4[%c0_3, %c0_4] : memref<32x1xf32, #tpu.memory_space<vmem>>, vector<32x1xf32>
    %4 = vector.broadcast %3 : vector<32x1xf32> to vector<32x1024xf32>
    %5 = arith.addf %2, %4 : vector<32x1024xf32>
    %c0_5 = arith.constant 0 : index
    %c0_6 = arith.constant 0 : index
    %6 = vector.load %arg5[%c0_5, %c0_6] : memref<64x32xbf16, #tpu.memory_space<vmem>>, vector<64x32xbf16>
    %c0_7 = arith.constant 0 : index
    %c0_8 = arith.constant 0 : index
    %7 = vector.load %arg2[%c0_7, %c0_8] : memref<32x1024xbf16, #tpu.memory_space<vmem>>, vector<32x1024xbf16>
    %cst_9 = arith.constant dense<0.000000e+00> : vector<64x1024xf32>
    %8 = tpu.matmul %6, %7, %cst_9 {dimension_numbers = #tpu.dot_dimension_numbers<[1], [0], [0], [1], [0, 0, 1, 1], [], []>} : vector<64x32xbf16>, vector<32x1024xbf16>, vector<64x1024xf32> -> vector<64x1024xf32>
    %c0_10 = arith.constant 0 : index
    %c0_11 = arith.constant 0 : index
    %9 = vector.load %arg6[%c0_10, %c0_11] : memref<64x1xf32, #tpu.memory_space<vmem>>, vector<64x1xf32>
    %10 = vector.broadcast %9 : vector<64x1xf32> to vector<64x1024xf32>
    %11 = arith.addf %8, %10 : vector<64x1024xf32>
    %12 = vector.extract_strided_slice %11 {offsets = [0, 0], sizes = [32, 1024], strides = [1, 1]} : vector<64x1024xf32> to vector<32x1024xf32>
    %13 = vector.extract_strided_slice %11 {offsets = [32, 0], sizes = [32, 1024], strides = [1, 1]} : vector<64x1024xf32> to vector<32x1024xf32>
    %c0_12 = arith.constant 0 : index
    %c0_13 = arith.constant 0 : index
    %14 = vector.load %arg7[%c0_12, %c0_13] : memref<32x8xf32, #tpu.memory_space<vmem>>, vector<32x8xf32>
    %15 = vector.extract_strided_slice %5 {offsets = [0, 0], sizes = [32, 128], strides = [1, 1]} : vector<32x1024xf32> to vector<32x128xf32>
    %16 = vector.extract_strided_slice %5 {offsets = [0, 128], sizes = [32, 128], strides = [1, 1]} : vector<32x1024xf32> to vector<32x128xf32>
    %17 = vector.extract_strided_slice %5 {offsets = [0, 256], sizes = [32, 128], strides = [1, 1]} : vector<32x1024xf32> to vector<32x128xf32>
    %18 = vector.extract_strided_slice %5 {offsets = [0, 384], sizes = [32, 128], strides = [1, 1]} : vector<32x1024xf32> to vector<32x128xf32>
    %19 = vector.extract_strided_slice %5 {offsets = [0, 512], sizes = [32, 128], strides = [1, 1]} : vector<32x1024xf32> to vector<32x128xf32>
    %20 = vector.extract_strided_slice %5 {offsets = [0, 640], sizes = [32, 128], strides = [1, 1]} : vector<32x1024xf32> to vector<32x128xf32>
    %21 = vector.extract_strided_slice %5 {offsets = [0, 768], sizes = [32, 128], strides = [1, 1]} : vector<32x1024xf32> to vector<32x128xf32>
    %22 = vector.extract_strided_slice %5 {offsets = [0, 896], sizes = [32, 128], strides = [1, 1]} : vector<32x1024xf32> to vector<32x128xf32>
    %23 = vector.extract_strided_slice %12 {offsets = [0, 0], sizes = [32, 128], strides = [1, 1]} : vector<32x1024xf32> to vector<32x128xf32>
    %24 = vector.extract_strided_slice %12 {offsets = [0, 128], sizes = [32, 128], strides = [1, 1]} : vector<32x1024xf32> to vector<32x128xf32>
    %25 = vector.extract_strided_slice %12 {offsets = [0, 256], sizes = [32, 128], strides = [1, 1]} : vector<32x1024xf32> to vector<32x128xf32>
    %26 = vector.extract_strided_slice %12 {offsets = [0, 384], sizes = [32, 128], strides = [1, 1]} : vector<32x1024xf32> to vector<32x128xf32>
    %27 = vector.extract_strided_slice %12 {offsets = [0, 512], sizes = [32, 128], strides = [1, 1]} : vector<32x1024xf32> to vector<32x128xf32>
    %28 = vector.extract_strided_slice %12 {offsets = [0, 640], sizes = [32, 128], strides = [1, 1]} : vector<32x1024xf32> to vector<32x128xf32>
    %29 = vector.extract_strided_slice %12 {offsets = [0, 768], sizes = [32, 128], strides = [1, 1]} : vector<32x1024xf32> to vector<32x128xf32>
    %30 = vector.extract_strided_slice %12 {offsets = [0, 896], sizes = [32, 128], strides = [1, 1]} : vector<32x1024xf32> to vector<32x128xf32>
    %31 = arith.mulf %15, %23 : vector<32x128xf32>
    %cst_14 = arith.constant dense<0.000000e+00> : vector<128xf32>
    %32 = vector.multi_reduction <add>, %31, %cst_14 [0] : vector<32x128xf32> to vector<128xf32>
    %33 = vector.shape_cast %32 : vector<128xf32> to vector<1x128xf32>
    %34 = arith.mulf %16, %23 : vector<32x128xf32>
    %cst_15 = arith.constant dense<0.000000e+00> : vector<128xf32>
    %35 = vector.multi_reduction <add>, %34, %cst_15 [0] : vector<32x128xf32> to vector<128xf32>
    %36 = vector.shape_cast %35 : vector<128xf32> to vector<1x128xf32>
    %37 = arith.mulf %17, %23 : vector<32x128xf32>
    %cst_16 = arith.constant dense<0.000000e+00> : vector<128xf32>
    %38 = vector.multi_reduction <add>, %37, %cst_16 [0] : vector<32x128xf32> to vector<128xf32>
    %39 = vector.shape_cast %38 : vector<128xf32> to vector<1x128xf32>
    %40 = arith.mulf %18, %23 : vector<32x128xf32>
    %cst_17 = arith.constant dense<0.000000e+00> : vector<128xf32>
    %41 = vector.multi_reduction <add>, %40, %cst_17 [0] : vector<32x128xf32> to vector<128xf32>
    %42 = vector.shape_cast %41 : vector<128xf32> to vector<1x128xf32>
    %43 = arith.mulf %19, %23 : vector<32x128xf32>
    %cst_18 = arith.constant dense<0.000000e+00> : vector<128xf32>
    %44 = vector.multi_reduction <add>, %43, %cst_18 [0] : vector<32x128xf32> to vector<128xf32>
    %45 = vector.shape_cast %44 : vector<128xf32> to vector<1x128xf32>
    %46 = arith.mulf %20, %23 : vector<32x128xf32>
    %cst_19 = arith.constant dense<0.000000e+00> : vector<128xf32>
    %47 = vector.multi_reduction <add>, %46, %cst_19 [0] : vector<32x128xf32> to vector<128xf32>
    %48 = vector.shape_cast %47 : vector<128xf32> to vector<1x128xf32>
    %49 = arith.mulf %21, %23 : vector<32x128xf32>
    %cst_20 = arith.constant dense<0.000000e+00> : vector<128xf32>
    %50 = vector.multi_reduction <add>, %49, %cst_20 [0] : vector<32x128xf32> to vector<128xf32>
    %51 = vector.shape_cast %50 : vector<128xf32> to vector<1x128xf32>
    %52 = arith.mulf %22, %23 : vector<32x128xf32>
    %cst_21 = arith.constant dense<0.000000e+00> : vector<128xf32>
    %53 = vector.multi_reduction <add>, %52, %cst_21 [0] : vector<32x128xf32> to vector<128xf32>
    %54 = vector.shape_cast %53 : vector<128xf32> to vector<1x128xf32>
    %55 = tpu.concatenate %33, %36, %39, %42, %45, %48, %51, %54 in 0 : vector<1x128xf32>, vector<1x128xf32>, vector<1x128xf32>, vector<1x128xf32>, vector<1x128xf32>, vector<1x128xf32>, vector<1x128xf32>, vector<1x128xf32> -> vector<8x128xf32>
    %cst_22 = arith.constant dense<0xFF800000> : vector<128xf32>
    %56 = vector.multi_reduction <maximumf>, %55, %cst_22 [0] : vector<8x128xf32> to vector<128xf32>
    %57 = vector.shape_cast %56 : vector<128xf32> to vector<1x128xf32>
    %58 = vector.broadcast %57 : vector<1x128xf32> to vector<8x128xf32>
    %59 = arith.subf %55, %58 : vector<8x128xf32>
    %60 = math.exp %59 : vector<8x128xf32>
    %cst_23 = arith.constant dense<0.000000e+00> : vector<128xf32>
    %61 = vector.multi_reduction <add>, %60, %cst_23 [0] : vector<8x128xf32> to vector<128xf32>
    %62 = vector.shape_cast %61 : vector<128xf32> to vector<1x128xf32>
    %63 = vector.broadcast %62 : vector<1x128xf32> to vector<8x128xf32>
    %64 = arith.divf %60, %63 : vector<8x128xf32>
    %65 = arith.mulf %15, %24 : vector<32x128xf32>
    %cst_24 = arith.constant dense<0.000000e+00> : vector<128xf32>
    %66 = vector.multi_reduction <add>, %65, %cst_24 [0] : vector<32x128xf32> to vector<128xf32>
    %67 = vector.shape_cast %66 : vector<128xf32> to vector<1x128xf32>
    %68 = arith.mulf %16, %24 : vector<32x128xf32>
    %cst_25 = arith.constant dense<0.000000e+00> : vector<128xf32>
    %69 = vector.multi_reduction <add>, %68, %cst_25 [0] : vector<32x128xf32> to vector<128xf32>
    %70 = vector.shape_cast %69 : vector<128xf32> to vector<1x128xf32>
    %71 = arith.mulf %17, %24 : vector<32x128xf32>
    %cst_26 = arith.constant dense<0.000000e+00> : vector<128xf32>
    %72 = vector.multi_reduction <add>, %71, %cst_26 [0] : vector<32x128xf32> to vector<128xf32>
    %73 = vector.shape_cast %72 : vector<128xf32> to vector<1x128xf32>
    %74 = arith.mulf %18, %24 : vector<32x128xf32>
    %cst_27 = arith.constant dense<0.000000e+00> : vector<128xf32>
    %75 = vector.multi_reduction <add>, %74, %cst_27 [0] : vector<32x128xf32> to vector<128xf32>
    %76 = vector.shape_cast %75 : vector<128xf32> to vector<1x128xf32>
    %77 = arith.mulf %19, %24 : vector<32x128xf32>
    %cst_28 = arith.constant dense<0.000000e+00> : vector<128xf32>
    %78 = vector.multi_reduction <add>, %77, %cst_28 [0] : vector<32x128xf32> to vector<128xf32>
    %79 = vector.shape_cast %78 : vector<128xf32> to vector<1x128xf32>
    %80 = arith.mulf %20, %24 : vector<32x128xf32>
    %cst_29 = arith.constant dense<0.000000e+00> : vector<128xf32>
    %81 = vector.multi_reduction <add>, %80, %cst_29 [0] : vector<32x128xf32> to vector<128xf32>
    %82 = vector.shape_cast %81 : vector<128xf32> to vector<1x128xf32>
    %83 = arith.mulf %21, %24 : vector<32x128xf32>
    %cst_30 = arith.constant dense<0.000000e+00> : vector<128xf32>
    %84 = vector.multi_reduction <add>, %83, %cst_30 [0] : vector<32x128xf32> to vector<128xf32>
    %85 = vector.shape_cast %84 : vector<128xf32> to vector<1x128xf32>
    %86 = arith.mulf %22, %24 : vector<32x128xf32>
    %cst_31 = arith.constant dense<0.000000e+00> : vector<128xf32>
    %87 = vector.multi_reduction <add>, %86, %cst_31 [0] : vector<32x128xf32> to vector<128xf32>
    %88 = vector.shape_cast %87 : vector<128xf32> to vector<1x128xf32>
    %89 = tpu.concatenate %67, %70, %73, %76, %79, %82, %85, %88 in 0 : vector<1x128xf32>, vector<1x128xf32>, vector<1x128xf32>, vector<1x128xf32>, vector<1x128xf32>, vector<1x128xf32>, vector<1x128xf32>, vector<1x128xf32> -> vector<8x128xf32>
    %cst_32 = arith.constant dense<0xFF800000> : vector<128xf32>
    %90 = vector.multi_reduction <maximumf>, %89, %cst_32 [0] : vector<8x128xf32> to vector<128xf32>
    %91 = vector.shape_cast %90 : vector<128xf32> to vector<1x128xf32>
    %92 = vector.broadcast %91 : vector<1x128xf32> to vector<8x128xf32>
    %93 = arith.subf %89, %92 : vector<8x128xf32>
    %94 = math.exp %93 : vector<8x128xf32>
    %cst_33 = arith.constant dense<0.000000e+00> : vector<128xf32>
    %95 = vector.multi_reduction <add>, %94, %cst_33 [0] : vector<8x128xf32> to vector<128xf32>
    %96 = vector.shape_cast %95 : vector<128xf32> to vector<1x128xf32>
    %97 = vector.broadcast %96 : vector<1x128xf32> to vector<8x128xf32>
    %98 = arith.divf %94, %97 : vector<8x128xf32>
    %99 = arith.mulf %15, %25 : vector<32x128xf32>
    %cst_34 = arith.constant dense<0.000000e+00> : vector<128xf32>
    %100 = vector.multi_reduction <add>, %99, %cst_34 [0] : vector<32x128xf32> to vector<128xf32>
    %101 = vector.shape_cast %100 : vector<128xf32> to vector<1x128xf32>
    %102 = arith.mulf %16, %25 : vector<32x128xf32>
    %cst_35 = arith.constant dense<0.000000e+00> : vector<128xf32>
    %103 = vector.multi_reduction <add>, %102, %cst_35 [0] : vector<32x128xf32> to vector<128xf32>
    %104 = vector.shape_cast %103 : vector<128xf32> to vector<1x128xf32>
    %105 = arith.mulf %17, %25 : vector<32x128xf32>
    %cst_36 = arith.constant dense<0.000000e+00> : vector<128xf32>
    %106 = vector.multi_reduction <add>, %105, %cst_36 [0] : vector<32x128xf32> to vector<128xf32>
    %107 = vector.shape_cast %106 : vector<128xf32> to vector<1x128xf32>
    %108 = arith.mulf %18, %25 : vector<32x128xf32>
    %cst_37 = arith.constant dense<0.000000e+00> : vector<128xf32>
    %109 = vector.multi_reduction <add>, %108, %cst_37 [0] : vector<32x128xf32> to vector<128xf32>
    %110 = vector.shape_cast %109 : vector<128xf32> to vector<1x128xf32>
    %111 = arith.mulf %19, %25 : vector<32x128xf32>
    %cst_38 = arith.constant dense<0.000000e+00> : vector<128xf32>
    %112 = vector.multi_reduction <add>, %111, %cst_38 [0] : vector<32x128xf32> to vector<128xf32>
    %113 = vector.shape_cast %112 : vector<128xf32> to vector<1x128xf32>
    %114 = arith.mulf %20, %25 : vector<32x128xf32>
    %cst_39 = arith.constant dense<0.000000e+00> : vector<128xf32>
    %115 = vector.multi_reduction <add>, %114, %cst_39 [0] : vector<32x128xf32> to vector<128xf32>
    %116 = vector.shape_cast %115 : vector<128xf32> to vector<1x128xf32>
    %117 = arith.mulf %21, %25 : vector<32x128xf32>
    %cst_40 = arith.constant dense<0.000000e+00> : vector<128xf32>
    %118 = vector.multi_reduction <add>, %117, %cst_40 [0] : vector<32x128xf32> to vector<128xf32>
    %119 = vector.shape_cast %118 : vector<128xf32> to vector<1x128xf32>
    %120 = arith.mulf %22, %25 : vector<32x128xf32>
    %cst_41 = arith.constant dense<0.000000e+00> : vector<128xf32>
    %121 = vector.multi_reduction <add>, %120, %cst_41 [0] : vector<32x128xf32> to vector<128xf32>
    %122 = vector.shape_cast %121 : vector<128xf32> to vector<1x128xf32>
    %123 = tpu.concatenate %101, %104, %107, %110, %113, %116, %119, %122 in 0 : vector<1x128xf32>, vector<1x128xf32>, vector<1x128xf32>, vector<1x128xf32>, vector<1x128xf32>, vector<1x128xf32>, vector<1x128xf32>, vector<1x128xf32> -> vector<8x128xf32>
    %cst_42 = arith.constant dense<0xFF800000> : vector<128xf32>
    %124 = vector.multi_reduction <maximumf>, %123, %cst_42 [0] : vector<8x128xf32> to vector<128xf32>
    %125 = vector.shape_cast %124 : vector<128xf32> to vector<1x128xf32>
    %126 = vector.broadcast %125 : vector<1x128xf32> to vector<8x128xf32>
    %127 = arith.subf %123, %126 : vector<8x128xf32>
    %128 = math.exp %127 : vector<8x128xf32>
    %cst_43 = arith.constant dense<0.000000e+00> : vector<128xf32>
    %129 = vector.multi_reduction <add>, %128, %cst_43 [0] : vector<8x128xf32> to vector<128xf32>
    %130 = vector.shape_cast %129 : vector<128xf32> to vector<1x128xf32>
    %131 = vector.broadcast %130 : vector<1x128xf32> to vector<8x128xf32>
    %132 = arith.divf %128, %131 : vector<8x128xf32>
    %133 = arith.mulf %15, %26 : vector<32x128xf32>
    %cst_44 = arith.constant dense<0.000000e+00> : vector<128xf32>
    %134 = vector.multi_reduction <add>, %133, %cst_44 [0] : vector<32x128xf32> to vector<128xf32>
    %135 = vector.shape_cast %134 : vector<128xf32> to vector<1x128xf32>
    %136 = arith.mulf %16, %26 : vector<32x128xf32>
    %cst_45 = arith.constant dense<0.000000e+00> : vector<128xf32>
    %137 = vector.multi_reduction <add>, %136, %cst_45 [0] : vector<32x128xf32> to vector<128xf32>
    %138 = vector.shape_cast %137 : vector<128xf32> to vector<1x128xf32>
    %139 = arith.mulf %17, %26 : vector<32x128xf32>
    %cst_46 = arith.constant dense<0.000000e+00> : vector<128xf32>
    %140 = vector.multi_reduction <add>, %139, %cst_46 [0] : vector<32x128xf32> to vector<128xf32>
    %141 = vector.shape_cast %140 : vector<128xf32> to vector<1x128xf32>
    %142 = arith.mulf %18, %26 : vector<32x128xf32>
    %cst_47 = arith.constant dense<0.000000e+00> : vector<128xf32>
    %143 = vector.multi_reduction <add>, %142, %cst_47 [0] : vector<32x128xf32> to vector<128xf32>
    %144 = vector.shape_cast %143 : vector<128xf32> to vector<1x128xf32>
    %145 = arith.mulf %19, %26 : vector<32x128xf32>
    %cst_48 = arith.constant dense<0.000000e+00> : vector<128xf32>
    %146 = vector.multi_reduction <add>, %145, %cst_48 [0] : vector<32x128xf32> to vector<128xf32>
    %147 = vector.shape_cast %146 : vector<128xf32> to vector<1x128xf32>
    %148 = arith.mulf %20, %26 : vector<32x128xf32>
    %cst_49 = arith.constant dense<0.000000e+00> : vector<128xf32>
    %149 = vector.multi_reduction <add>, %148, %cst_49 [0] : vector<32x128xf32> to vector<128xf32>
    %150 = vector.shape_cast %149 : vector<128xf32> to vector<1x128xf32>
    %151 = arith.mulf %21, %26 : vector<32x128xf32>
    %cst_50 = arith.constant dense<0.000000e+00> : vector<128xf32>
    %152 = vector.multi_reduction <add>, %151, %cst_50 [0] : vector<32x128xf32> to vector<128xf32>
    %153 = vector.shape_cast %152 : vector<128xf32> to vector<1x128xf32>
    %154 = arith.mulf %22, %26 : vector<32x128xf32>
    %cst_51 = arith.constant dense<0.000000e+00> : vector<128xf32>
    %155 = vector.multi_reduction <add>, %154, %cst_51 [0] : vector<32x128xf32> to vector<128xf32>
    %156 = vector.shape_cast %155 : vector<128xf32> to vector<1x128xf32>
    %157 = tpu.concatenate %135, %138, %141, %144, %147, %150, %153, %156 in 0 : vector<1x128xf32>, vector<1x128xf32>, vector<1x128xf32>, vector<1x128xf32>, vector<1x128xf32>, vector<1x128xf32>, vector<1x128xf32>, vector<1x128xf32> -> vector<8x128xf32>
    %cst_52 = arith.constant dense<0xFF800000> : vector<128xf32>
    %158 = vector.multi_reduction <maximumf>, %157, %cst_52 [0] : vector<8x128xf32> to vector<128xf32>
    %159 = vector.shape_cast %158 : vector<128xf32> to vector<1x128xf32>
    %160 = vector.broadcast %159 : vector<1x128xf32> to vector<8x128xf32>
    %161 = arith.subf %157, %160 : vector<8x128xf32>
    %162 = math.exp %161 : vector<8x128xf32>
    %cst_53 = arith.constant dense<0.000000e+00> : vector<128xf32>
    %163 = vector.multi_reduction <add>, %162, %cst_53 [0] : vector<8x128xf32> to vector<128xf32>
    %164 = vector.shape_cast %163 : vector<128xf32> to vector<1x128xf32>
    %165 = vector.broadcast %164 : vector<1x128xf32> to vector<8x128xf32>
    %166 = arith.divf %162, %165 : vector<8x128xf32>
    %167 = arith.mulf %15, %27 : vector<32x128xf32>
    %cst_54 = arith.constant dense<0.000000e+00> : vector<128xf32>
    %168 = vector.multi_reduction <add>, %167, %cst_54 [0] : vector<32x128xf32> to vector<128xf32>
    %169 = vector.shape_cast %168 : vector<128xf32> to vector<1x128xf32>
    %170 = arith.mulf %16, %27 : vector<32x128xf32>
    %cst_55 = arith.constant dense<0.000000e+00> : vector<128xf32>
    %171 = vector.multi_reduction <add>, %170, %cst_55 [0] : vector<32x128xf32> to vector<128xf32>
    %172 = vector.shape_cast %171 : vector<128xf32> to vector<1x128xf32>
    %173 = arith.mulf %17, %27 : vector<32x128xf32>
    %cst_56 = arith.constant dense<0.000000e+00> : vector<128xf32>
    %174 = vector.multi_reduction <add>, %173, %cst_56 [0] : vector<32x128xf32> to vector<128xf32>
    %175 = vector.shape_cast %174 : vector<128xf32> to vector<1x128xf32>
    %176 = arith.mulf %18, %27 : vector<32x128xf32>
    %cst_57 = arith.constant dense<0.000000e+00> : vector<128xf32>
    %177 = vector.multi_reduction <add>, %176, %cst_57 [0] : vector<32x128xf32> to vector<128xf32>
    %178 = vector.shape_cast %177 : vector<128xf32> to vector<1x128xf32>
    %179 = arith.mulf %19, %27 : vector<32x128xf32>
    %cst_58 = arith.constant dense<0.000000e+00> : vector<128xf32>
    %180 = vector.multi_reduction <add>, %179, %cst_58 [0] : vector<32x128xf32> to vector<128xf32>
    %181 = vector.shape_cast %180 : vector<128xf32> to vector<1x128xf32>
    %182 = arith.mulf %20, %27 : vector<32x128xf32>
    %cst_59 = arith.constant dense<0.000000e+00> : vector<128xf32>
    %183 = vector.multi_reduction <add>, %182, %cst_59 [0] : vector<32x128xf32> to vector<128xf32>
    %184 = vector.shape_cast %183 : vector<128xf32> to vector<1x128xf32>
    %185 = arith.mulf %21, %27 : vector<32x128xf32>
    %cst_60 = arith.constant dense<0.000000e+00> : vector<128xf32>
    %186 = vector.multi_reduction <add>, %185, %cst_60 [0] : vector<32x128xf32> to vector<128xf32>
    %187 = vector.shape_cast %186 : vector<128xf32> to vector<1x128xf32>
    %188 = arith.mulf %22, %27 : vector<32x128xf32>
    %cst_61 = arith.constant dense<0.000000e+00> : vector<128xf32>
    %189 = vector.multi_reduction <add>, %188, %cst_61 [0] : vector<32x128xf32> to vector<128xf32>
    %190 = vector.shape_cast %189 : vector<128xf32> to vector<1x128xf32>
    %191 = tpu.concatenate %169, %172, %175, %178, %181, %184, %187, %190 in 0 : vector<1x128xf32>, vector<1x128xf32>, vector<1x128xf32>, vector<1x128xf32>, vector<1x128xf32>, vector<1x128xf32>, vector<1x128xf32>, vector<1x128xf32> -> vector<8x128xf32>
    %cst_62 = arith.constant dense<0xFF800000> : vector<128xf32>
    %192 = vector.multi_reduction <maximumf>, %191, %cst_62 [0] : vector<8x128xf32> to vector<128xf32>
    %193 = vector.shape_cast %192 : vector<128xf32> to vector<1x128xf32>
    %194 = vector.broadcast %193 : vector<1x128xf32> to vector<8x128xf32>
    %195 = arith.subf %191, %194 : vector<8x128xf32>
    %196 = math.exp %195 : vector<8x128xf32>
    %cst_63 = arith.constant dense<0.000000e+00> : vector<128xf32>
    %197 = vector.multi_reduction <add>, %196, %cst_63 [0] : vector<8x128xf32> to vector<128xf32>
    %198 = vector.shape_cast %197 : vector<128xf32> to vector<1x128xf32>
    %199 = vector.broadcast %198 : vector<1x128xf32> to vector<8x128xf32>
    %200 = arith.divf %196, %199 : vector<8x128xf32>
    %201 = arith.mulf %15, %28 : vector<32x128xf32>
    %cst_64 = arith.constant dense<0.000000e+00> : vector<128xf32>
    %202 = vector.multi_reduction <add>, %201, %cst_64 [0] : vector<32x128xf32> to vector<128xf32>
    %203 = vector.shape_cast %202 : vector<128xf32> to vector<1x128xf32>
    %204 = arith.mulf %16, %28 : vector<32x128xf32>
    %cst_65 = arith.constant dense<0.000000e+00> : vector<128xf32>
    %205 = vector.multi_reduction <add>, %204, %cst_65 [0] : vector<32x128xf32> to vector<128xf32>
    %206 = vector.shape_cast %205 : vector<128xf32> to vector<1x128xf32>
    %207 = arith.mulf %17, %28 : vector<32x128xf32>
    %cst_66 = arith.constant dense<0.000000e+00> : vector<128xf32>
    %208 = vector.multi_reduction <add>, %207, %cst_66 [0] : vector<32x128xf32> to vector<128xf32>
    %209 = vector.shape_cast %208 : vector<128xf32> to vector<1x128xf32>
    %210 = arith.mulf %18, %28 : vector<32x128xf32>
    %cst_67 = arith.constant dense<0.000000e+00> : vector<128xf32>
    %211 = vector.multi_reduction <add>, %210, %cst_67 [0] : vector<32x128xf32> to vector<128xf32>
    %212 = vector.shape_cast %211 : vector<128xf32> to vector<1x128xf32>
    %213 = arith.mulf %19, %28 : vector<32x128xf32>
    %cst_68 = arith.constant dense<0.000000e+00> : vector<128xf32>
    %214 = vector.multi_reduction <add>, %213, %cst_68 [0] : vector<32x128xf32> to vector<128xf32>
    %215 = vector.shape_cast %214 : vector<128xf32> to vector<1x128xf32>
    %216 = arith.mulf %20, %28 : vector<32x128xf32>
    %cst_69 = arith.constant dense<0.000000e+00> : vector<128xf32>
    %217 = vector.multi_reduction <add>, %216, %cst_69 [0] : vector<32x128xf32> to vector<128xf32>
    %218 = vector.shape_cast %217 : vector<128xf32> to vector<1x128xf32>
    %219 = arith.mulf %21, %28 : vector<32x128xf32>
    %cst_70 = arith.constant dense<0.000000e+00> : vector<128xf32>
    %220 = vector.multi_reduction <add>, %219, %cst_70 [0] : vector<32x128xf32> to vector<128xf32>
    %221 = vector.shape_cast %220 : vector<128xf32> to vector<1x128xf32>
    %222 = arith.mulf %22, %28 : vector<32x128xf32>
    %cst_71 = arith.constant dense<0.000000e+00> : vector<128xf32>
    %223 = vector.multi_reduction <add>, %222, %cst_71 [0] : vector<32x128xf32> to vector<128xf32>
    %224 = vector.shape_cast %223 : vector<128xf32> to vector<1x128xf32>
    %225 = tpu.concatenate %203, %206, %209, %212, %215, %218, %221, %224 in 0 : vector<1x128xf32>, vector<1x128xf32>, vector<1x128xf32>, vector<1x128xf32>, vector<1x128xf32>, vector<1x128xf32>, vector<1x128xf32>, vector<1x128xf32> -> vector<8x128xf32>
    %cst_72 = arith.constant dense<0xFF800000> : vector<128xf32>
    %226 = vector.multi_reduction <maximumf>, %225, %cst_72 [0] : vector<8x128xf32> to vector<128xf32>
    %227 = vector.shape_cast %226 : vector<128xf32> to vector<1x128xf32>
    %228 = vector.broadcast %227 : vector<1x128xf32> to vector<8x128xf32>
    %229 = arith.subf %225, %228 : vector<8x128xf32>
    %230 = math.exp %229 : vector<8x128xf32>
    %cst_73 = arith.constant dense<0.000000e+00> : vector<128xf32>
    %231 = vector.multi_reduction <add>, %230, %cst_73 [0] : vector<8x128xf32> to vector<128xf32>
    %232 = vector.shape_cast %231 : vector<128xf32> to vector<1x128xf32>
    %233 = vector.broadcast %232 : vector<1x128xf32> to vector<8x128xf32>
    %234 = arith.divf %230, %233 : vector<8x128xf32>
    %235 = arith.mulf %15, %29 : vector<32x128xf32>
    %cst_74 = arith.constant dense<0.000000e+00> : vector<128xf32>
    %236 = vector.multi_reduction <add>, %235, %cst_74 [0] : vector<32x128xf32> to vector<128xf32>
    %237 = vector.shape_cast %236 : vector<128xf32> to vector<1x128xf32>
    %238 = arith.mulf %16, %29 : vector<32x128xf32>
    %cst_75 = arith.constant dense<0.000000e+00> : vector<128xf32>
    %239 = vector.multi_reduction <add>, %238, %cst_75 [0] : vector<32x128xf32> to vector<128xf32>
    %240 = vector.shape_cast %239 : vector<128xf32> to vector<1x128xf32>
    %241 = arith.mulf %17, %29 : vector<32x128xf32>
    %cst_76 = arith.constant dense<0.000000e+00> : vector<128xf32>
    %242 = vector.multi_reduction <add>, %241, %cst_76 [0] : vector<32x128xf32> to vector<128xf32>
    %243 = vector.shape_cast %242 : vector<128xf32> to vector<1x128xf32>
    %244 = arith.mulf %18, %29 : vector<32x128xf32>
    %cst_77 = arith.constant dense<0.000000e+00> : vector<128xf32>
    %245 = vector.multi_reduction <add>, %244, %cst_77 [0] : vector<32x128xf32> to vector<128xf32>
    %246 = vector.shape_cast %245 : vector<128xf32> to vector<1x128xf32>
    %247 = arith.mulf %19, %29 : vector<32x128xf32>
    %cst_78 = arith.constant dense<0.000000e+00> : vector<128xf32>
    %248 = vector.multi_reduction <add>, %247, %cst_78 [0] : vector<32x128xf32> to vector<128xf32>
    %249 = vector.shape_cast %248 : vector<128xf32> to vector<1x128xf32>
    %250 = arith.mulf %20, %29 : vector<32x128xf32>
    %cst_79 = arith.constant dense<0.000000e+00> : vector<128xf32>
    %251 = vector.multi_reduction <add>, %250, %cst_79 [0] : vector<32x128xf32> to vector<128xf32>
    %252 = vector.shape_cast %251 : vector<128xf32> to vector<1x128xf32>
    %253 = arith.mulf %21, %29 : vector<32x128xf32>
    %cst_80 = arith.constant dense<0.000000e+00> : vector<128xf32>
    %254 = vector.multi_reduction <add>, %253, %cst_80 [0] : vector<32x128xf32> to vector<128xf32>
    %255 = vector.shape_cast %254 : vector<128xf32> to vector<1x128xf32>
    %256 = arith.mulf %22, %29 : vector<32x128xf32>
    %cst_81 = arith.constant dense<0.000000e+00> : vector<128xf32>
    %257 = vector.multi_reduction <add>, %256, %cst_81 [0] : vector<32x128xf32> to vector<128xf32>
    %258 = vector.shape_cast %257 : vector<128xf32> to vector<1x128xf32>
    %259 = tpu.concatenate %237, %240, %243, %246, %249, %252, %255, %258 in 0 : vector<1x128xf32>, vector<1x128xf32>, vector<1x128xf32>, vector<1x128xf32>, vector<1x128xf32>, vector<1x128xf32>, vector<1x128xf32>, vector<1x128xf32> -> vector<8x128xf32>
    %cst_82 = arith.constant dense<0xFF800000> : vector<128xf32>
    %260 = vector.multi_reduction <maximumf>, %259, %cst_82 [0] : vector<8x128xf32> to vector<128xf32>
    %261 = vector.shape_cast %260 : vector<128xf32> to vector<1x128xf32>
    %262 = vector.broadcast %261 : vector<1x128xf32> to vector<8x128xf32>
    %263 = arith.subf %259, %262 : vector<8x128xf32>
    %264 = math.exp %263 : vector<8x128xf32>
    %cst_83 = arith.constant dense<0.000000e+00> : vector<128xf32>
    %265 = vector.multi_reduction <add>, %264, %cst_83 [0] : vector<8x128xf32> to vector<128xf32>
    %266 = vector.shape_cast %265 : vector<128xf32> to vector<1x128xf32>
    %267 = vector.broadcast %266 : vector<1x128xf32> to vector<8x128xf32>
    %268 = arith.divf %264, %267 : vector<8x128xf32>
    %269 = arith.mulf %15, %30 : vector<32x128xf32>
    %cst_84 = arith.constant dense<0.000000e+00> : vector<128xf32>
    %270 = vector.multi_reduction <add>, %269, %cst_84 [0] : vector<32x128xf32> to vector<128xf32>
    %271 = vector.shape_cast %270 : vector<128xf32> to vector<1x128xf32>
    %272 = arith.mulf %16, %30 : vector<32x128xf32>
    %cst_85 = arith.constant dense<0.000000e+00> : vector<128xf32>
    %273 = vector.multi_reduction <add>, %272, %cst_85 [0] : vector<32x128xf32> to vector<128xf32>
    %274 = vector.shape_cast %273 : vector<128xf32> to vector<1x128xf32>
    %275 = arith.mulf %17, %30 : vector<32x128xf32>
    %cst_86 = arith.constant dense<0.000000e+00> : vector<128xf32>
    %276 = vector.multi_reduction <add>, %275, %cst_86 [0] : vector<32x128xf32> to vector<128xf32>
    %277 = vector.shape_cast %276 : vector<128xf32> to vector<1x128xf32>
    %278 = arith.mulf %18, %30 : vector<32x128xf32>
    %cst_87 = arith.constant dense<0.000000e+00> : vector<128xf32>
    %279 = vector.multi_reduction <add>, %278, %cst_87 [0] : vector<32x128xf32> to vector<128xf32>
    %280 = vector.shape_cast %279 : vector<128xf32> to vector<1x128xf32>
    %281 = arith.mulf %19, %30 : vector<32x128xf32>
    %cst_88 = arith.constant dense<0.000000e+00> : vector<128xf32>
    %282 = vector.multi_reduction <add>, %281, %cst_88 [0] : vector<32x128xf32> to vector<128xf32>
    %283 = vector.shape_cast %282 : vector<128xf32> to vector<1x128xf32>
    %284 = arith.mulf %20, %30 : vector<32x128xf32>
    %cst_89 = arith.constant dense<0.000000e+00> : vector<128xf32>
    %285 = vector.multi_reduction <add>, %284, %cst_89 [0] : vector<32x128xf32> to vector<128xf32>
    %286 = vector.shape_cast %285 : vector<128xf32> to vector<1x128xf32>
    %287 = arith.mulf %21, %30 : vector<32x128xf32>
    %cst_90 = arith.constant dense<0.000000e+00> : vector<128xf32>
    %288 = vector.multi_reduction <add>, %287, %cst_90 [0] : vector<32x128xf32> to vector<128xf32>
    %289 = vector.shape_cast %288 : vector<128xf32> to vector<1x128xf32>
    %290 = arith.mulf %22, %30 : vector<32x128xf32>
    %cst_91 = arith.constant dense<0.000000e+00> : vector<128xf32>
    %291 = vector.multi_reduction <add>, %290, %cst_91 [0] : vector<32x128xf32> to vector<128xf32>
    %292 = vector.shape_cast %291 : vector<128xf32> to vector<1x128xf32>
    %293 = tpu.concatenate %271, %274, %277, %280, %283, %286, %289, %292 in 0 : vector<1x128xf32>, vector<1x128xf32>, vector<1x128xf32>, vector<1x128xf32>, vector<1x128xf32>, vector<1x128xf32>, vector<1x128xf32>, vector<1x128xf32> -> vector<8x128xf32>
    %cst_92 = arith.constant dense<0xFF800000> : vector<128xf32>
    %294 = vector.multi_reduction <maximumf>, %293, %cst_92 [0] : vector<8x128xf32> to vector<128xf32>
    %295 = vector.shape_cast %294 : vector<128xf32> to vector<1x128xf32>
    %296 = vector.broadcast %295 : vector<1x128xf32> to vector<8x128xf32>
    %297 = arith.subf %293, %296 : vector<8x128xf32>
    %298 = math.exp %297 : vector<8x128xf32>
    %cst_93 = arith.constant dense<0.000000e+00> : vector<128xf32>
    %299 = vector.multi_reduction <add>, %298, %cst_93 [0] : vector<8x128xf32> to vector<128xf32>
    %300 = vector.shape_cast %299 : vector<128xf32> to vector<1x128xf32>
    %301 = vector.broadcast %300 : vector<1x128xf32> to vector<8x128xf32>
    %302 = arith.divf %298, %301 : vector<8x128xf32>
    %303 = tpu.concatenate %64, %98, %132, %166, %200, %234, %268, %302 in 1 : vector<8x128xf32>, vector<8x128xf32>, vector<8x128xf32>, vector<8x128xf32>, vector<8x128xf32>, vector<8x128xf32>, vector<8x128xf32>, vector<8x128xf32> -> vector<8x1024xf32>
    %cst_94 = arith.constant dense<0.000000e+00> : vector<32x1024xf32>
    %304 = tpu.matmul %14, %303, %cst_94 {dimension_numbers = #tpu.dot_dimension_numbers<[1], [0], [0], [1], [0, 0, 1, 1], [], []>} : vector<32x8xf32>, vector<8x1024xf32>, vector<32x1024xf32> -> vector<32x1024xf32>
    %305 = arith.mulf %13, %304 : vector<32x1024xf32>
    %cst_95 = arith.constant dense<0.000000e+00> : vector<1024xf32>
    %306 = vector.multi_reduction <add>, %305, %cst_95 [0] : vector<32x1024xf32> to vector<1024xf32>
    %307 = vector.shape_cast %306 : vector<1024xf32> to vector<1x1024xf32>
    %308 = vector.extract_strided_slice %307 {offsets = [0, 0], sizes = [1, 128], strides = [1, 1]} : vector<1x1024xf32> to vector<1x128xf32>
    %309 = vector.extract_strided_slice %307 {offsets = [0, 128], sizes = [1, 128], strides = [1, 1]} : vector<1x1024xf32> to vector<1x128xf32>
    %310 = arith.addf %308, %309 : vector<1x128xf32>
    %311 = vector.extract_strided_slice %307 {offsets = [0, 256], sizes = [1, 128], strides = [1, 1]} : vector<1x1024xf32> to vector<1x128xf32>
    %312 = arith.addf %310, %311 : vector<1x128xf32>
    %313 = vector.extract_strided_slice %307 {offsets = [0, 384], sizes = [1, 128], strides = [1, 1]} : vector<1x1024xf32> to vector<1x128xf32>
    %314 = arith.addf %312, %313 : vector<1x128xf32>
    %315 = vector.extract_strided_slice %307 {offsets = [0, 512], sizes = [1, 128], strides = [1, 1]} : vector<1x1024xf32> to vector<1x128xf32>
    %316 = arith.addf %314, %315 : vector<1x128xf32>
    %317 = vector.extract_strided_slice %307 {offsets = [0, 640], sizes = [1, 128], strides = [1, 1]} : vector<1x1024xf32> to vector<1x128xf32>
    %318 = arith.addf %316, %317 : vector<1x128xf32>
    %319 = vector.extract_strided_slice %307 {offsets = [0, 768], sizes = [1, 128], strides = [1, 1]} : vector<1x1024xf32> to vector<1x128xf32>
    %320 = arith.addf %318, %319 : vector<1x128xf32>
    %321 = vector.extract_strided_slice %307 {offsets = [0, 896], sizes = [1, 128], strides = [1, 1]} : vector<1x1024xf32> to vector<1x128xf32>
    %322 = arith.addf %320, %321 : vector<1x128xf32>
    %323 = vector.shape_cast %322 : vector<1x128xf32> to vector<1x1x128xf32>
    %c0_96 = arith.constant 0 : index
    %c0_97 = arith.constant 0 : index
    %c0_98 = arith.constant 0 : index
    %324 = vector.load %arg8[%c0_96, %c0_97, %c0_98] : memref<1x1x128xf32, #tpu.memory_space<vmem>>, vector<1x1x128xf32>
    tpu.vector_store %arg8[%c0_96, %c0_97, %c0_98], %323 {strides = array<i32>} : memref<1x1x128xf32, #tpu.memory_space<vmem>>, vector<1x1x128xf32>,
    return
  }
  func.func @transform_0(%arg0: i32) -> (i32, i32) {
    %c0_i32 = arith.constant 0 : i32
    %c0_i32_0 = arith.constant 0 : i32
    return %c0_i32, %arg0 : i32, i32
  }
  func.func @transform_1(%arg0: i32) -> (i32, i32) {
    %c0_i32 = arith.constant 0 : i32
    %c0_i32_0 = arith.constant 0 : i32
    return %c0_i32, %arg0 : i32, i32
  }
  func.func @transform_2(%arg0: i32) -> (i32, i32) {
    %c0_i32 = arith.constant 0 : i32
    %c0_i32_0 = arith.constant 0 : i32
    %c0_i32_1 = arith.constant 0 : i32
    return %c0_i32, %c0_i32_0 : i32, i32
  }
  func.func @transform_3(%arg0: i32) -> (i32, i32) {
    %c0_i32 = arith.constant 0 : i32
    %c0_i32_0 = arith.constant 0 : i32
    %c0_i32_1 = arith.constant 0 : i32
    return %c0_i32, %c0_i32_0 : i32, i32
  }
  func.func @transform_4(%arg0: i32) -> (i32, i32) {
    %c0_i32 = arith.constant 0 : i32
    %c0_i32_0 = arith.constant 0 : i32
    %c0_i32_1 = arith.constant 0 : i32
    return %c0_i32, %c0_i32_0 : i32, i32
  }
  func.func @transform_5(%arg0: i32) -> (i32, i32) {
    %c0_i32 = arith.constant 0 : i32
    %c0_i32_0 = arith.constant 0 : i32
    %c0_i32_1 = arith.constant 0 : i32
    return %c0_i32, %c0_i32_0 : i32, i32
  }
  func.func @transform_6(%arg0: i32) -> (i32, i32) {
    %c0_i32 = arith.constant 0 : i32
    %c0_i32_0 = arith.constant 0 : i32
    %c0_i32_1 = arith.constant 0 : i32
    return %c0_i32, %c0_i32_0 : i32, i32
  }
  func.func @transform_7(%arg0: i32) -> (i32, i32, i32) {
    %c0_i32 = arith.constant 0 : i32
    %c0_i32_0 = arith.constant 0 : i32
    %c0_i32_1 = arith.constant 0 : i32
    return %arg0, %c0_i32, %c0_i32_0 : i32, i32, i32
  }
}

</mosaic_0001>

<bundles_post_ra>
// kernel: tpu_custom_call.1
= control target key start
LH: loop header
LB: loop body
LE: loop exit
PB: predicated region body
PF: predicated region fallthrough
CT: control target
= control target key end

     0   :  { %12 = vsyncpa [#allocation3], 0  ;;  %s4365_s0 = inlined_call_operand.vmem [shape: bf16[32,1024], index: 0, kind: input, shape index: {}]   ;;  %s4366_s1 = inlined_call_operand.hbm [shape: bf16[32,1024], index: 1, kind: input, shape index: {}]   ;;  %s4367_s2 = inlined_call_operand.vmem [shape: bf16[32,32], index: 2, kind: input, shape index: {}]   ;;  %s4368_s3 = inlined_call_operand.vmem [shape: f32[32,1], index: 3, kind: input, shape index: {}]   ;;  %s4369_s4 = inlined_call_operand.vmem [shape: bf16[64,32], index: 4, kind: input, shape index: {}]   ;;  %s4370_s5 = inlined_call_operand.vmem [shape: f32[64,1], index: 5, kind: input, shape index: {}]   ;;  %s4371_s6 = inlined_call_operand.vmem [shape: f32[32,8], index: 6, kind: input, shape index: {}]   ;;  %s4372_s7 = inlined_call_operand.hbm [shape: f32[1,1,128], index: 7, kind: output, shape index: {}]  }
   0x1   :  { %13 = vsyncpa [#allocation4], 0  ;;  %s2574_s24 = smov [#allocation2]   ;;  %s2526_s28 = scalar_lea.hbm %s4366_s1, 2048 }
   0x2   :  { %s21_s25 = sshll.u32 %s2574_s24, 4  ;;  %p2527_p0 = scmp.ne.s32.totalorder %s4366_s1, %s2526_s28  ;;  %s22_s25 = int_to_ptr.vmem [resolvable:$true] %s21_s25 }
   0x3   :  { %p2530_p1 = scmp.lt.u32.totalorder %s2526_s28, %s4366_s1 }
   0x5   :  { %p2532_p2 = pnand %p2530_p1, %p2527_p0 }
   0x7   :  { %2535 = shalt.err (!%p2532_p2)
}
   0x8   :  { %s2536_s10 = scalar_lea.vmem %s22_s25, 2048  ;;  %p2541_p4 = scmp.lt.s32.totalorder %s22_s25, %s22_s25 }
   0x9   :  { %p2537_p3 = scmp.ne.s32.totalorder %s22_s25, %s2536_s10  ;;  %p2542_p5 = scmp.lt.s32.totalorder %s2536_s10, %s2536_s10 }
   0xb   :  { %p2543_p6 = por %p2542_p5, %p2541_p4 }
   0xd   :  { %p2544_p7 = pnand %p2543_p6, %p2537_p3 }
   0xf   :  { %2547 = shalt.err (!%p2544_p7)
}
  0x10   :  { %s2575_s11 = smov 512   ;;  %s2576_s12 = smov 32  }
  0x11   :  { %27 = dma.hbm_to_vmem [thread:$0]  %s4366_s1, 2048, %s22_s25, [#allocation3], %s2575_s11, %s2575_s11, %s2576_s12  }
  0x12   :  { %2570 = dma.done.wait [#allocation3], 2048  }
  0x13   :  { %2571 = vsyncadd [#allocation3], 4294965248  ;;  %v2577_v0 = vmov 0   ;;  %v46_v1 = vld [vmem:[%s4365_s0] sm:$0xff]  ;;  %v47_v3 = vld [vmem:[%s4365_s0 + $0x8] sm:$0xff]  ;;  %vm176_vm0 = vcmask 261120  }
  0x14   :  { %215 = vmatprep.mubr.bf16.mxu0 %v2577_v0  ;;  %268 = vmatprep.mubr.bf16.mxu1 %v2577_v0  ;;  %v50_v2 = vld [vmem:[%s4365_s0 + $0x20] sm:$0xff]  ;;  %v51_v5 = vld [vmem:[%s4365_s0 + $0x28] sm:$0xff]  ;;  %v48_v16 = vld [vmem:[%s4365_s0 + $0x10] sm:$0xff]  ;;  %vm979_vm1 = vcmask 1040384   ;;  %vm981_vm2 = vcmask 1041408   ;;  %vm983_vm3 = vcmask 1042432  }
  0x15   :  { %2486 = vset.pattern.permute.xlu0 %v2577_v0  ;;  %2487 = vset.pattern.permute.xlu1 %v2577_v0  ;;  %v2405_v4 = vcombine.high %v46_v1, %v50_v2  ;;  %v2404_v6 = vcombine.low %v46_v1, %v50_v2  ;;  %v54_v7 = vld [vmem:[%s4365_s0 + $0x40] sm:$0xff]  ;;  %v2407_v9 = vcombine.high %v47_v3, %v51_v5  ;;  %v55_v12 = vld [vmem:[%s4365_s0 + $0x48] sm:$0xff]  ;;  %v52_v18 = vld [vmem:[%s4365_s0 + $0x30] sm:$0xff]  ;;  %vm985_vm4 = vcmask 1043456  }
  0x16   :  { %v58_v8 = vld [vmem:[%s4365_s0 + $0x60] sm:$0xff]  ;;  %v2406_v10 = vcombine.low %v47_v3, %v51_v5  ;;  %v59_v13 = vld [vmem:[%s4365_s0 + $0x68] sm:$0xff]  ;;  %v49_v19 = vld [vmem:[%s4365_s0 + $0x18] sm:$0xff]  ;;  %v2409_v21 = vcombine.high %v48_v16, %v52_v18  ;;  %v2408_v28 = vcombine.low %v48_v16, %v52_v18  ;;  %vm987_vm5 = vcmask 1044480  }
  0x17   :  { %v2413_v11 = vcombine.high %v54_v7, %v58_v8  ;;  %183 = vmatprep.subr.bf16.mxu0 %v2405_v4  ;;  %v2415_v14 = vcombine.high %v55_v12, %v59_v13  ;;  %236 = vmatprep.subr.bf16.mxu1 %v2407_v9  ;;  %v2412_v15 = vcombine.low %v54_v7, %v58_v8  ;;  %v53_v20 = vld [vmem:[%s4365_s0 + $0x38] sm:$0xff]  ;;  %v2488_v23 = vld [vmem:[%s4367_s2] sm:$0xff]   ;;  %v56_v24 = vld [vmem:[%s4365_s0 + $0x50] sm:$0xff]  ;;  %vm989_vm6 = vcmask 1045504  }
  0x18   :  { %184 = vmatpush1.bf16.msra.mxu0 %v2404_v6  ;;  %237 = vmatpush1.bf16.msra.mxu1 %v2406_v10  ;;  %v2414_v17 = vcombine.low %v55_v12, %v59_v13  ;;  %v2411_v22 = vcombine.high %v49_v19, %v53_v20  ;;  %v60_v25 = vld [vmem:[%s4365_s0 + $0x70] sm:$0xff]  ;;  %v57_v26 = vld [vmem:[%s4365_s0 + $0x58] sm:$0xff]  ;;  %v2410_v29 = vcombine.low %v49_v19, %v53_v20  ;;  %v403_v31 = vld [vmem:[#allocation2] sm:$0xff]  ;;  %vm991_vm7 = vcmask 1046528  }
  0x19   :  { %185 = vmatprep.subr.bf16.mxu0 %v2413_v11  ;;  %238 = vmatprep.subr.bf16.mxu1 %v2415_v14  ;;  %v61_v27 = vld [vmem:[%s4365_s0 + $0x78] sm:$0xff]  ;;  %v2417_v30 = vcombine.high %v56_v24, %v60_v25  ;;  %v407_v33 = vld [vmem:[#allocation2 + $0x20] sm:$0xff]  ;;  %v404_v34 = vld [vmem:[#allocation2 + $0x8] sm:$0xff]  ;;  %v2416_v36 = vcombine.low %v56_v24, %v60_v25  ;;  %vm1906_vm8 = vcmask 64512  }
  0x1a   :  { %v2419_v32 = vcombine.high %v57_v26, %v61_v27  ;;  %v408_v35 = vld [vmem:[#allocation2 + $0x28] sm:$0xff]  ;;  %v2418_v37 = vcombine.low %v57_v26, %v61_v27  ;;  %v2433_v38 = vcombine.high %v403_v31, %v407_v33  ;;  %v62_v41 = vld [vmem:[%s4368_s3] sm:$0xff]  ;;  %v64_v44 = vld [vmem:[%s4368_s3 + $0x10] sm:$0xff]  ;;  %v2432_v50 = vcombine.low %v403_v31, %v407_v33 }
  0x1b   :  { %v2489_v39 = vld [vmem:[%s4367_s2 + $0x8] sm:$0xff]   ;;  %v2435_v40 = vcombine.high %v404_v34, %v408_v35  ;;  %68 = vperm.xlu0 %2486, %v62_v41   ;;  %v419_v43 = vld [vmem:[%s4370_s5] sm:$0xff]  ;;  %v2434_v51 = vcombine.low %v404_v34, %v408_v35  ;;  %v405_v54 = vld [vmem:[#allocation2 + $0x10] sm:$0xff] }
  0x1c   :  { %186 = vmatpush1.bf16.msra.mxu0 %v2412_v15  ;;  %239 = vmatpush1.bf16.msra.mxu1 %v2414_v17  ;;  %v63_v42 = vld [vmem:[%s4368_s3 + $0x8] sm:$0xff]  ;;  %v411_v45 = vld [vmem:[#allocation2 + $0x40] sm:$0xff]  ;;  %v409_v55 = vld [vmem:[#allocation2 + $0x30] sm:$0xff] }
  0x1d   :  { %289 = vmatprep.subr.bf16.mxu0 %v2409_v21  ;;  %342 = vmatprep.subr.bf16.mxu1 %v2411_v22  ;;  %v415_v46 = vld [vmem:[#allocation2 + $0x60] sm:$0xff]  ;;  %v420_v47 = vld [vmem:[%s4370_s5 + $0x8] sm:$0xff]  ;;  %v406_v56 = vld [vmem:[#allocation2 + $0x18] sm:$0xff]  ;;  %v2437_v62 = vcombine.high %v405_v54, %v409_v55  ;;  %v2436_v10 = vcombine.low %v405_v54, %v409_v55 }
  0x1e   :  { %429 = vperm.xlu1 %2487, %v419_v43   ;;  %v412_v48 = vld [vmem:[#allocation2 + $0x48] sm:$0xff]  ;;  %v2441_v52 = vcombine.high %v411_v45, %v415_v46  ;;  %v410_v57 = vld [vmem:[#allocation2 + $0x38] sm:$0xff]  ;;  %v2440_v59 = vcombine.low %v411_v45, %v415_v46  ;;  %v421_v60 = vld [vmem:[%s4370_s5 + $0x10] sm:$0xff] }
  0x1f   :  { %2420 = vmatmul.mubr.msk.bf16.vlgmr.msra.gmra.mrb[0].mxu0 %vm176_vm0, %v2488_v23  ;;  %2422 = vmatmul.mubr.msk.bf16.vlgmr.msra.gmra.mrb[0].mxu1 %vm176_vm0, %v2488_v23  ;;  %v416_v49 = vld [vmem:[#allocation2 + $0x68] sm:$0xff]  ;;  %v65_v58 = vld [vmem:[%s4368_s3 + $0x18] sm:$0xff]  ;;  %v2439_v63 = vcombine.high %v406_v56, %v410_v57  ;;  %v423_v2 = vld [vmem:[%s4370_s5 + $0x20] sm:$0xff]  ;;  %v2438_v11 = vcombine.low %v406_v56, %v410_v57 }
  0x20   :  { %225 = vmatprep.mubr.bf16.mxu0 %v2577_v0  ;;  %278 = vmatprep.mubr.bf16.mxu1 %v2577_v0  ;;  %v2443_v53 = vcombine.high %v412_v48, %v416_v49  ;;  %v2442_v61 = vcombine.low %v412_v48, %v416_v49  ;;  %v422_v1 = vld [vmem:[%s4370_s5 + $0x18] sm:$0xff]  ;;  %v2490_v3 = vld [vmem:[%s4369_s4] sm:$0xff]   ;;  %v424_v4 = vld [vmem:[%s4370_s5 + $0x28] sm:$0xff] }
  0x21   :  { %290 = vmatpush1.bf16.msra.mxu0 %v2408_v28  ;;  %343 = vmatpush1.bf16.msra.mxu1 %v2410_v29  ;;  %v413_v5 = vld [vmem:[#allocation2 + $0x50] sm:$0xff]  ;;  %v414_v8 = vld [vmem:[#allocation2 + $0x58] sm:$0xff]  ;;  %v2491_v17 = vld [vmem:[%s4369_s4 + $0x8] sm:$0xff]  }
  0x22   :  { %291 = vmatprep.subr.bf16.mxu0 %v2417_v30  ;;  %344 = vmatprep.subr.bf16.mxu1 %v2419_v32  ;;  %v417_v6 = vld [vmem:[#allocation2 + $0x70] sm:$0xff]  ;;  %v418_v9 = vld [vmem:[#allocation2 + $0x78] sm:$0xff] }
  0x23   :  { %73 = vperm.xlu0 %2486, %v63_v42   ;;  %434 = vperm.xlu1 %2487, %v420_v47   ;;  %v425_v7 = vld [vmem:[%s4370_s5 + $0x30] sm:$0xff]  ;;  %v2445_v12 = vcombine.high %v413_v5, %v417_v6  ;;  %v2447_v13 = vcombine.high %v414_v8, %v418_v9  ;;  %v426_v14 = vld [vmem:[%s4370_s5 + $0x38] sm:$0xff]  ;;  %v2444_v15 = vcombine.low %v413_v5, %v417_v6 }
  0x24   :  { %v2446_v16 = vcombine.low %v414_v8, %v418_v9  ;;  %v2492_v18 = vld [vmem:[%s4369_s4 + $0x10] sm:$0xff]   ;;  %v2493_v19 = vld [vmem:[%s4369_s4 + $0x18] sm:$0xff]  }
  0x25   :  { %292 = vmatpush1.bf16.msra.mxu0 %v2416_v36  ;;  %345 = vmatpush1.bf16.msra.mxu1 %v2418_v37 }
  0x26   :  { %579 = vmatprep.subr.bf16.mxu0 %v2433_v38  ;;  %652 = vmatprep.subr.bf16.mxu1 %v2435_v40 }
  0x27   :  { %2421 = vmatmul.mubr.msk.bf16.gmra.mrb[4].mxu0 %vm176_vm0, %v2489_v39  ;;  %2423 = vmatmul.mubr.msk.bf16.gmra.mrb[4].mxu1 %vm176_vm0, %v2489_v39 }
  0x28   :  { %321 = vmatprep.mubr.bf16.mxu0 %v2577_v0  ;;  %374 = vmatprep.mubr.bf16.mxu1 %v2577_v0 }
  0x29   :  { %78 = vperm.xlu0 %2486, %v64_v44   ;;  %439 = vperm.xlu1 %2487, %v421_v60  }
  0x2d   :  { %83 = vperm.xlu0 %2486, %v65_v58   ;;  %444 = vperm.xlu1 %2487, %v422_v1  }
  0x2f   :  { %2424 = vmatmul.mubr.msk.bf16.vlgmr.msra.gmra.mrb[8].mxu0 %vm176_vm0, %v2488_v23  ;;  %2426 = vmatmul.mubr.msk.bf16.vlgmr.msra.gmra.mrb[8].mxu1 %vm176_vm0, %v2488_v23 }
  0x30   :  { %331 = vmatprep.mubr.bf16.mxu0 %v2577_v0  ;;  %384 = vmatprep.mubr.bf16.mxu1 %v2577_v0 }
  0x31   :  { %580 = vmatpush1.bf16.msra.mxu0 %v2432_v50  ;;  %653 = vmatpush1.bf16.msra.mxu1 %v2434_v51 }
  0x32   :  { %581 = vmatprep.subr.bf16.mxu0 %v2441_v52  ;;  %654 = vmatprep.subr.bf16.mxu1 %v2443_v53 }
  0x33   :  { %449 = vperm.xlu0 %2486, %v423_v2   ;;  %454 = vperm.xlu1 %2487, %v424_v4  }
  0x35   :  { %582 = vmatpush1.bf16.msra.mxu0 %v2440_v59  ;;  %655 = vmatpush1.bf16.msra.mxu1 %v2442_v61 }
  0x36   :  { %725 = vmatprep.subr.bf16.mxu0 %v2437_v62  ;;  %798 = vmatprep.subr.bf16.mxu1 %v2439_v63 }
  0x37   :  { %2425 = vmatmul.mubr.msk.bf16.gmra.mrb[12].mxu0 %vm176_vm0, %v2489_v39  ;;  %2427 = vmatmul.mubr.msk.bf16.gmra.mrb[12].mxu1 %vm176_vm0, %v2489_v39 }
  0x38   :  { %611 = vmatprep.mubr.bf16.mxu0 %v2577_v0  ;;  %684 = vmatprep.mubr.bf16.mxu1 %v2577_v0 }
  0x39   :  { %459 = vperm.xlu0 %2486, %v425_v7   ;;  %464 = vperm.xlu1 %2487, %v426_v14  }
  0x3f   :  { %2448 = vmatmul.mubr.msk.bf16.vlgmr.msra.gmra.mrb[16].mxu0 %vm176_vm0, %v2490_v3  ;;  %2452 = vmatmul.mubr.msk.bf16.vlgmr.msra.gmra.mrb[16].mxu1 %vm176_vm0, %v2490_v3 }
  0x40   :  { %621 = vmatprep.mubr.bf16.mxu0 %v2577_v0  ;;  %694 = vmatprep.mubr.bf16.mxu1 %v2577_v0 }
  0x41   :  { %726 = vmatpush1.bf16.msra.mxu0 %v2436_v10  ;;  %799 = vmatpush1.bf16.msra.mxu1 %v2438_v11 }
  0x42   :  { %727 = vmatprep.subr.bf16.mxu0 %v2445_v12  ;;  %800 = vmatprep.subr.bf16.mxu1 %v2447_v13 }
  0x45   :  { %728 = vmatpush1.bf16.msra.mxu0 %v2444_v15  ;;  %801 = vmatpush1.bf16.msra.mxu1 %v2446_v16 }
  0x47   :  { %2449 = vmatmul.mubr.msk.bf16.gmra.mrb[20].mxu0 %vm176_vm0, %v2491_v17  ;;  %2453 = vmatmul.mubr.msk.bf16.gmra.mrb[20].mxu1 %vm176_vm0, %v2491_v17 }
  0x48   :  { %631 = vmatprep.mubr.bf16.mxu0 %v2577_v0  ;;  %704 = vmatprep.mubr.bf16.mxu1 %v2577_v0 }
  0x4f   :  { %2450 = vmatmul.mubr.msk.bf16.gmra.mrb[24].mxu0 %vm176_vm0, %v2492_v18  ;;  %2454 = vmatmul.mubr.msk.bf16.gmra.mrb[24].mxu1 %vm176_vm0, %v2492_v18 }
  0x50   :  { %641 = vmatprep.mubr.bf16.mxu0 %v2577_v0  ;;  %714 = vmatprep.mubr.bf16.mxu1 %v2577_v0 }
  0x57   :  { %2451 = vmatmul.mubr.msk.bf16.gmra.mrb[28].mxu0 %vm176_vm0, %v2493_v19  ;;  %2455 = vmatmul.mubr.msk.bf16.gmra.mrb[28].mxu1 %vm176_vm0, %v2493_v19 }
  0x58   :  { %757 = vmatprep.mubr.bf16.mxu0 %v2577_v0  ;;  %830 = vmatprep.mubr.bf16.mxu1 %v2577_v0 }
  0x5f   :  { %2456 = vmatmul.mubr.msk.bf16.vlgmr.msra.gmra.mrb[32].mxu0 %vm176_vm0, %v2490_v3  ;;  %2460 = vmatmul.mubr.msk.bf16.vlgmr.msra.gmra.mrb[32].mxu1 %vm176_vm0, %v2490_v3 }
  0x60   :  { %767 = vmatprep.mubr.bf16.mxu0 %v2577_v0  ;;  %840 = vmatprep.mubr.bf16.mxu1 %v2577_v0 }
  0x67   :  { %2457 = vmatmul.mubr.msk.bf16.gmra.mrb[36].mxu0 %vm176_vm0, %v2491_v17  ;;  %2461 = vmatmul.mubr.msk.bf16.gmra.mrb[36].mxu1 %vm176_vm0, %v2491_v17 }
  0x68   :  { %777 = vmatprep.mubr.bf16.mxu0 %v2577_v0  ;;  %850 = vmatprep.mubr.bf16.mxu1 %v2577_v0 }
  0x6f   :  { %2458 = vmatmul.mubr.msk.bf16.gmra.mrb[40].mxu0 %vm176_vm0, %v2492_v18  ;;  %2462 = vmatmul.mubr.msk.bf16.gmra.mrb[40].mxu1 %vm176_vm0, %v2492_v18 }
  0x70   :  { %787 = vmatprep.mubr.bf16.mxu0 %v2577_v0  ;;  %860 = vmatprep.mubr.bf16.mxu1 %v2577_v0 }
  0x77   :  { %2459 = vmatmul.mubr.msk.bf16.gmra.mrb[44].mxu0 %vm176_vm0, %v2493_v19  ;;  %2463 = vmatmul.mubr.msk.bf16.gmra.mrb[44].mxu1 %vm176_vm0, %v2493_v19 }
  0x9a   :  { %v69_v20 = vpop.permute.xlu0 %68 }
  0x9d   :  { %v2788_v46 = vpop.permute.xlu1 %429 }
  0x9e   :  { %4465 = vst [vmem:[#allocation10_spill] sm:$0xff] %v2788_v46 }
  0xa2   :  { %v74_v29 = vpop.permute.xlu0 %73  ;;  %v2836_v10 = vpop.permute.xlu1 %434 }
  0xa3   :  { %4488 = vst [vmem:[#allocation33_spill] sm:$0xff] %v2836_v10 }
  0xa8   :  { %v79_v37 = vpop.permute.xlu0 %78 }
  0xac   :  { %v2790_v47 = vpop.permute.xlu0 %83 }
  0xad   :  { %4466 = vst [vmem:[#allocation11_spill] sm:$0xff] %v2790_v47 }
  0xf2   :  { %v217_v21 = vpop.f32.mrb[0].mxu0  ;;  %v270_v23 = vpop.f32.mrb[0].mxu1 }
  0xf3   :  { %v219_v22 = vpop.f32.mrb[1].mxu0  ;;  %v272_v25 = vpop.f32.mrb[1].mxu1  ;;  %v2794_v53 = vadd.f32 %v217_v21, %v69_v20  ;;  %v2802_v57 = vadd.f32 %v270_v23, %v69_v20 }
  0xf4   :  { %v221_v24 = vpop.f32.mrb[2].mxu0  ;;  %v274_v27 = vpop.f32.mrb[2].mxu1  ;;  %v2800_v56 = vadd.f32 %v219_v22, %v69_v20  ;;  %v2806_v59 = vadd.f32 %v272_v25, %v69_v20 }
  0xf5   :  { %v223_v26 = vpop.f32.mrb[3].mxu0  ;;  %v276_v28 = vpop.f32.mrb[3].mxu1  ;;  %4468 = vst [vmem:[#allocation13_spill] sm:$0xff] %v2794_v53  ;;  %4472 = vst [vmem:[#allocation17_spill] sm:$0xff] %v2802_v57  ;;  %v2804_v58 = vadd.f32 %v221_v24, %v74_v29  ;;  %v2812_v62 = vadd.f32 %v274_v27, %v74_v29 }
  0xf6   :  { %4471 = vst [vmem:[#allocation16_spill] sm:$0xff] %v2800_v56  ;;  %4474 = vst [vmem:[#allocation19_spill] sm:$0xff] %v2806_v59  ;;  %v2810_v61 = vadd.f32 %v223_v26, %v74_v29  ;;  %v2814_v63 = vadd.f32 %v276_v28, %v74_v29 }
  0xf7   :  { %4473 = vst [vmem:[#allocation18_spill] sm:$0xff] %v2804_v58  ;;  %4477 = vst [vmem:[#allocation22_spill] sm:$0xff] %v2812_v62 }
  0xf8   :  { %4476 = vst [vmem:[#allocation21_spill] sm:$0xff] %v2810_v61  ;;  %4478 = vst [vmem:[#allocation23_spill] sm:$0xff] %v2814_v63 }
  0xfa   :  { %v227_v30 = vpop.f32.mrb[4].mxu0  ;;  %v280_v32 = vpop.f32.mrb[4].mxu1 }
  0xfb   :  { %v229_v31 = vpop.f32.mrb[5].mxu0  ;;  %v282_v34 = vpop.f32.mrb[5].mxu1  ;;  %v2816_v1 = vadd.f32 %v227_v30, %v79_v37  ;;  %v2820_v3 = vadd.f32 %v280_v32, %v79_v37 }
  0xfc   :  { %v231_v33 = vpop.f32.mrb[6].mxu0  ;;  %v2784_v35 = vpop.f32.mrb[6].mxu1  ;;  %v2818_v2 = vadd.f32 %v229_v31, %v79_v37  ;;  %v2825_v5 = vadd.f32 %v282_v34, %v79_v37 }
  0xfd   :  { %v233_v0 = vpop.f32.mrb[7].mxu0  ;;  %4463 = vst [vmem:[#allocation8_spill] sm:$0xff] %v2784_v35  ;;  %v2786_v36 = vpop.f32.mrb[7].mxu1  ;;  %4479 = vst [vmem:[#allocation24_spill] sm:$0xff] %v2816_v1  ;;  %v2823_v4 = vadd.f32 %v231_v33, %v2790_v47 }
  0xfe   :  { %4464 = vst [vmem:[#allocation9_spill] sm:$0xff] %v2786_v36  ;;  %4480 = vst [vmem:[#allocation25_spill] sm:$0xff] %v2818_v2  ;;  %v2828_v6 = vadd.f32 %v233_v0, %v2790_v47 }
  0xff   :  { %4481 = vst [vmem:[#allocation26_spill] sm:$0xff] %v2820_v3  ;;  %4482 = vst [vmem:[#allocation27_spill] sm:$0xff] %v2823_v4 }
 0x100   :  { %4483 = vst [vmem:[#allocation28_spill] sm:$0xff] %v2825_v5  ;;  %4484 = vst [vmem:[#allocation29_spill] sm:$0xff] %v2828_v6 }
 0x102   :  { %v323_v38 = vpop.f32.mrb[8].mxu0  ;;  %v376_v40 = vpop.f32.mrb[8].mxu1 }
 0x103   :  { %v325_v39 = vpop.f32.mrb[9].mxu0  ;;  %v378_v42 = vpop.f32.mrb[9].mxu1  ;;  %v2830_v7 = vadd.f32 %v323_v38, %v69_v20  ;;  %v2834_v9 = vadd.f32 %v376_v40, %v69_v20 }
 0x104   :  { %v327_v41 = vpop.f32.mrb[10].mxu0  ;;  %v380_v44 = vpop.f32.mrb[10].mxu1  ;;  %v2832_v8 = vadd.f32 %v325_v39, %v69_v20  ;;  %v2840_v12 = vadd.f32 %v378_v42, %v69_v20 }
 0x105   :  { %v329_v43 = vpop.f32.mrb[11].mxu0  ;;  %v382_v45 = vpop.f32.mrb[11].mxu1  ;;  %4485 = vst [vmem:[#allocation30_spill] sm:$0xff] %v2830_v7  ;;  %4487 = vst [vmem:[#allocation32_spill] sm:$0xff] %v2834_v9  ;;  %v2838_v11 = vadd.f32 %v327_v41, %v74_v29  ;;  %v2844_v14 = vadd.f32 %v380_v44, %v74_v29 }
 0x106   :  { %4486 = vst [vmem:[#allocation31_spill] sm:$0xff] %v2832_v8  ;;  %4490 = vst [vmem:[#allocation35_spill] sm:$0xff] %v2840_v12  ;;  %v2842_v13 = vadd.f32 %v329_v43, %v74_v29  ;;  %v2846_v16 = vadd.f32 %v382_v45, %v74_v29 }
 0x107   :  { %4489 = vst [vmem:[#allocation34_spill] sm:$0xff] %v2838_v11  ;;  %4492 = vst [vmem:[#allocation37_spill] sm:$0xff] %v2844_v14 }
 0x108   :  { %4491 = vst [vmem:[#allocation36_spill] sm:$0xff] %v2842_v13  ;;  %4493 = vst [vmem:[#allocation38_spill] sm:$0xff] %v2846_v16 }
 0x10a   :  { %v333_v48 = vpop.f32.mrb[12].mxu0  ;;  %v386_v50 = vpop.f32.mrb[12].mxu1 }
 0x10b   :  { %v335_v49 = vpop.f32.mrb[13].mxu0  ;;  %v388_v52 = vpop.f32.mrb[13].mxu1  ;;  %v2848_v17 = vadd.f32 %v333_v48, %v79_v37  ;;  %v2853_v23 = vadd.f32 %v386_v50, %v79_v37 }
 0x10c   :  { %v2792_v51 = vpop.f32.mrb[14].mxu0  ;;  %v2798_v55 = vpop.f32.mrb[14].mxu1  ;;  %v2850_v18 = vadd.f32 %v335_v49, %v79_v37  ;;  %v2855_v24 = vadd.f32 %v388_v52, %v79_v37 }
 0x10d   :  { %4467 = vst [vmem:[#allocation12_spill] sm:$0xff] %v2792_v51  ;;  %v2796_v54 = vpop.f32.mrb[15].mxu0  ;;  %4470 = vst [vmem:[#allocation15_spill] sm:$0xff] %v2798_v55  ;;  %v2808_v60 = vpop.f32.mrb[15].mxu1 }
 0x10e   :  { %4469 = vst [vmem:[#allocation14_spill] sm:$0xff] %v2796_v54  ;;  %4475 = vst [vmem:[#allocation20_spill] sm:$0xff] %v2808_v60 }
 0x10f   :  { %4494 = vst [vmem:[#allocation39_spill] sm:$0xff] %v2848_v17  ;;  %4495 = vst [vmem:[#allocation40_spill] sm:$0xff] %v2850_v18 }
 0x110   :  { %4496 = vst [vmem:[#allocation41_spill] sm:$0xff] %v2853_v23  ;;  %4497 = vst [vmem:[#allocation42_spill] sm:$0xff] %v2855_v24 }
 0x112   :  { %v613_v15 = vpop.f32.mrb[16].mxu0  ;;  %v686_v21 = vpop.f32.mrb[16].mxu1 }
 0x113   :  { %v614_v19 = vadd.f32 %v613_v15, %v2788_v46  ;;  %v615_v22 = vpop.f32.mrb[17].mxu0  ;;  %v687_v20 = vadd.f32 %v686_v21, %v2788_v46  ;;  %v688_v26 = vpop.f32.mrb[17].mxu1 }
 0x114   :  { %v616_v25 = vadd.f32 %v615_v22, %v2788_v46  ;;  %v617_v27 = vpop.f32.mrb[18].mxu0  ;;  %v690_v32 = vpop.f32.mrb[18].mxu1  ;;  %v689_v55 = vadd.f32 %v688_v26, %v2788_v46 }
 0x115   :  { %v875_v28 = vmul.f32 %v614_v19, %v2794_v53  ;;  %v888_v29 = vmul.f32 %v614_v19, %v2800_v56  ;;  %v901_v30 = vmul.f32 %v614_v19, %v2802_v57  ;;  %v914_v31 = vmul.f32 %v614_v19, %v2806_v59  ;;  %v619_v33 = vpop.f32.mrb[19].mxu0  ;;  %v692_v39 = vpop.f32.mrb[19].mxu1 }
 0x116   :  { %v927_v34 = vmul.f32 %v614_v19, %v2830_v7  ;;  %v940_v0 = vmul.f32 %v614_v19, %v2832_v8  ;;  %v953_v37 = vmul.f32 %v614_v19, %v2834_v9  ;;  %v966_v38 = vmul.f32 %v614_v19, %v2840_v12  ;;  %v2903_v21 = vpop.permute.xlu1 %439 }
 0x117   :  { %v2868_v40 = vmul.f32 %v687_v20, %v2794_v53  ;;  %v2871_v41 = vmul.f32 %v687_v20, %v2800_v56  ;;  %v2874_v42 = vmul.f32 %v687_v20, %v2802_v57  ;;  %v2877_v43 = vmul.f32 %v687_v20, %v2806_v59  ;;  %4498 = vst [vmem:[#allocation43_spill] sm:$0xff] %v2903_v21 }
 0x118   :  { %v2880_v44 = vmul.f32 %v687_v20, %v2830_v7  ;;  %v2883_v45 = vmul.f32 %v687_v20, %v2832_v8  ;;  %v2886_v48 = vmul.f32 %v687_v20, %v2834_v9  ;;  %v2889_v49 = vmul.f32 %v687_v20, %v2840_v12 }
 0x119   :  { %v2892_v50 = vmul.f32 %v616_v25, %v2794_v53  ;;  %v2895_v52 = vmul.f32 %v616_v25, %v2800_v56  ;;  %v2898_v15 = vmul.f32 %v616_v25, %v2802_v57  ;;  %v2901_v19 = vmul.f32 %v616_v25, %v2806_v59 }
 0x11a   :  { %v2906_v22 = vmul.f32 %v616_v25, %v2830_v7  ;;  %v2909_v20 = vmul.f32 %v616_v25, %v2832_v8  ;;  %v2912_v6 = vmul.f32 %v616_v25, %v2834_v9  ;;  %v2915_v4 = vmul.f32 %v616_v25, %v2840_v12  ;;  %v623_v60 = vpop.f32.mrb[20].mxu0  ;;  %v696_v35 = vpop.f32.mrb[20].mxu1 }
 0x11b   :  { %v618_v54 = vadd.f32 %v617_v27, %v2836_v10  ;;  %v691_v51 = vadd.f32 %v690_v32, %v2836_v10  ;;  %v2921_v36 = vadd.f32 %v619_v33, %v2836_v10  ;;  %v625_v47 = vpop.f32.mrb[21].mxu0  ;;  %v2924_v24 = vadd.f32 %v692_v39, %v2836_v10  ;;  %v2935_v27 = vpop.f32.mrb[21].mxu1 }
 0x11c   :  { %v2927_v23 = vadd.f32 %v623_v60, %v2903_v21  ;;  %v2930_v25 = vadd.f32 %v696_v35, %v2903_v21  ;;  %v2933_v26 = vadd.f32 %v625_v47, %v2903_v21  ;;  %4501 = vst [vmem:[#allocation46_spill] sm:$0xff] %v2935_v27  ;;  %v2937_v32 = vpop.f32.mrb[22].mxu0  ;;  %v2940_v33 = vmul.f32 %v689_v55, %v2794_v53  ;;  %v2951_v35 = vpop.f32.mrb[22].mxu1 }
 0x11d   :  { %4502 = vst [vmem:[#allocation47_spill] sm:$0xff] %v2937_v32  ;;  %v2943_v46 = vmul.f32 %v689_v55, %v2800_v56  ;;  %v2946_v39 = vmul.f32 %v689_v55, %v2802_v57  ;;  %v2949_v60 = vmul.f32 %v689_v55, %v2806_v59  ;;  %4503 = vst [vmem:[#allocation48_spill] sm:$0xff] %v2951_v35  ;;  %v2953_v47 = vpop.f32.mrb[23].mxu0  ;;  %v2967_v57 = vpop.f32.mrb[23].mxu1 }
 0x11e   :  { %4499 = vst [vmem:[#allocation44_spill] sm:$0xff] %v2930_v25  ;;  %4500 = vst [vmem:[#allocation45_spill] sm:$0xff] %v2933_v26  ;;  %v2956_v10 = vmul.f32 %v689_v55, %v2830_v7  ;;  %v2959_v32 = vmul.f32 %v689_v55, %v2832_v8  ;;  %v2962_v53 = vmul.f32 %v689_v55, %v2834_v9 }
 0x11f   :  { %4504 = vst [vmem:[#allocation49_spill] sm:$0xff] %v2953_v47  ;;  %v2965_v56 = vmul.f32 %v689_v55, %v2840_v12  ;;  %4505 = vst [vmem:[#allocation50_spill] sm:$0xff] %v2967_v57  ;;  %v876_v59 = vmul.f32 %v618_v54, %v2804_v58  ;;  %v889_v35 = vmul.f32 %v618_v54, %v2810_v61 }
 0x120   :  { %v902_v47 = vmul.f32 %v618_v54, %v2812_v62  ;;  %v915_v7 = vmul.f32 %v618_v54, %v2814_v63  ;;  %v928_v27 = vmul.f32 %v618_v54, %v2838_v11  ;;  %v941_v8 = vmul.f32 %v618_v54, %v2842_v13 }
 0x121   :  { %v954_v9 = vmul.f32 %v618_v54, %v2844_v14  ;;  %v967_v21 = vmul.f32 %v618_v54, %v2846_v16  ;;  %v2977_v55 = vadd.f32 %v876_v59, %v875_v28  ;;  %v2979_v12 = vadd.f32 %v889_v35, %v888_v29 }
 0x122   :  { %v2981_v57 = vadd.f32 %v902_v47, %v901_v30  ;;  %v2983_v26 = vadd.f32 %v915_v7, %v914_v31  ;;  %v2985_v25 = vadd.f32 %v928_v27, %v927_v34  ;;  %v2987_v18 = vadd.f32 %v941_v8, %v940_v0  ;;  %v2993_v3 = vpop.f32.mrb[24].mxu0  ;;  %v2999_v7 = vpop.f32.mrb[24].mxu1 }
 0x123   :  { %v2989_v17 = vadd.f32 %v954_v9, %v953_v37  ;;  %v2991_v5 = vadd.f32 %v967_v21, %v966_v38  ;;  %4506 = vst [vmem:[#allocation51_spill] sm:$0xff] %v2993_v3  ;;  %v1139_v54 = vmul.f32 %v691_v51, %v2804_v58  ;;  %v1152_v59 = vmul.f32 %v691_v51, %v2810_v61  ;;  %v3001_v30 = vpop.f32.mrb[25].mxu0  ;;  %v3007_v0 = vpop.f32.mrb[25].mxu1 }
 0x124   :  { %v1165_v28 = vmul.f32 %v691_v51, %v2812_v62  ;;  %v1178_v29 = vmul.f32 %v691_v51, %v2814_v63  ;;  %4507 = vst [vmem:[#allocation52_spill] sm:$0xff] %v2999_v7  ;;  %4508 = vst [vmem:[#allocation53_spill] sm:$0xff] %v3001_v30  ;;  %v1191_v8 = vmul.f32 %v691_v51, %v2838_v11  ;;  %v3009_v37 = vpop.f32.mrb[26].mxu0  ;;  %v3023_v47 = vpop.f32.mrb[26].mxu1 }
 0x125   :  { %v1204_v9 = vmul.f32 %v691_v51, %v2842_v13  ;;  %v1217_v31 = vmul.f32 %v691_v51, %v2844_v14  ;;  %v1230_v34 = vmul.f32 %v691_v51, %v2846_v16  ;;  %4509 = vst [vmem:[#allocation54_spill] sm:$0xff] %v3007_v0  ;;  %4510 = vst [vmem:[#allocation55_spill] sm:$0xff] %v3009_v37  ;;  %v3025_v7 = vpop.f32.mrb[27].mxu0 }
 0x126   :  { %v3012_v38 = vadd.f32 %v1139_v54, %v2868_v40  ;;  %v3015_v21 = vadd.f32 %v1152_v59, %v2871_v41  ;;  %v3018_v27 = vadd.f32 %v1165_v28, %v2874_v42  ;;  %v3021_v35 = vadd.f32 %v1178_v29, %v2877_v43  ;;  %4511 = vst [vmem:[#allocation56_spill] sm:$0xff] %v3023_v47  ;;  %v3039_v42 = vpop.f32.mrb[27].mxu1 }
 0x127   :  { %4512 = vst [vmem:[#allocation57_spill] sm:$0xff] %v3025_v7  ;;  %v3028_v51 = vadd.f32 %v1191_v8, %v2880_v44  ;;  %v3031_v37 = vadd.f32 %v1204_v9, %v2883_v45  ;;  %v3034_v40 = vadd.f32 %v1217_v31, %v2886_v48  ;;  %v3037_v41 = vadd.f32 %v1230_v34, %v2889_v49 }
 0x128   :  { %4513 = vst [vmem:[#allocation58_spill] sm:$0xff] %v3039_v42  ;;  %v1011_v43 = vmul.f32 %v2921_v36, %v2804_v58  ;;  %v1024_v54 = vmul.f32 %v2921_v36, %v2810_v61  ;;  %v1037_v44 = vmul.f32 %v2921_v36, %v2812_v62  ;;  %v1050_v45 = vmul.f32 %v2921_v36, %v2814_v63 }
 0x129   :  { %v1063_v48 = vmul.f32 %v2921_v36, %v2838_v11  ;;  %v1076_v49 = vmul.f32 %v2921_v36, %v2842_v13  ;;  %v1089_v59 = vmul.f32 %v2921_v36, %v2844_v14  ;;  %v1102_v28 = vmul.f32 %v2921_v36, %v2846_v16 }
 0x12a   :  { %v3058_v29 = vadd.f32 %v1011_v43, %v2892_v50  ;;  %v3061_v8 = vadd.f32 %v1024_v54, %v2895_v52  ;;  %v3064_v9 = vadd.f32 %v1037_v44, %v2898_v15  ;;  %v3067_v31 = vadd.f32 %v1050_v45, %v2901_v19  ;;  %v3081_v52 = vpop.f32.mrb[28].mxu0  ;;  %v3091_v43 = vpop.f32.mrb[28].mxu1 }
 0x12b   :  { %v3070_v34 = vadd.f32 %v1063_v48, %v2906_v22  ;;  %v3073_v42 = vadd.f32 %v1076_v49, %v2909_v20  ;;  %v3076_v36 = vadd.f32 %v1089_v59, %v2912_v6  ;;  %v3079_v50 = vadd.f32 %v1102_v28, %v2915_v4  ;;  %4514 = vst [vmem:[#allocation59_spill] sm:$0xff] %v3081_v52  ;;  %v3093_v6 = vpop.f32.mrb[29].mxu0  ;;  %v3103_v48 = vpop.f32.mrb[29].mxu1 }
 0x12c   :  { %v1267_v15 = vmul.f32 %v2924_v24, %v2804_v58  ;;  %v1280_v19 = vmul.f32 %v2924_v24, %v2810_v61  ;;  %v1293_v22 = vmul.f32 %v2924_v24, %v2812_v62  ;;  %v1306_v20 = vmul.f32 %v2924_v24, %v2814_v63  ;;  %4515 = vst [vmem:[#allocation60_spill] sm:$0xff] %v3091_v43  ;;  %v3105_v49 = vpop.f32.mrb[30].mxu0  ;;  %v3119_v52 = vpop.f32.mrb[30].mxu1 }
 0x12d   :  { %4516 = vst [vmem:[#allocation61_spill] sm:$0xff] %v3093_v6  ;;  %v1319_v4 = vmul.f32 %v2924_v24, %v2838_v11  ;;  %v1332_v54 = vmul.f32 %v2924_v24, %v2842_v13  ;;  %v1345_v44 = vmul.f32 %v2924_v24, %v2844_v14  ;;  %v1358_v45 = vmul.f32 %v2924_v24, %v2846_v16  ;;  %v3121_v47 = vpop.f32.mrb[31].mxu0 }
 0x12e   :  { %4517 = vst [vmem:[#allocation62_spill] sm:$0xff] %v3103_v48  ;;  %4518 = vst [vmem:[#allocation63_spill] sm:$0xff] %v3105_v49  ;;  %v3108_v59 = vadd.f32 %v1267_v15, %v2940_v33  ;;  %v3111_v28 = vadd.f32 %v1280_v19, %v2943_v46  ;;  %v3114_v43 = vadd.f32 %v1293_v22, %v2946_v39  ;;  %v3135_v39 = vpop.f32.mrb[31].mxu1  ;;  %v4522_v19 = vld [vmem:[#allocation26_spill] sm:$0xff]  ;;  %v4523_v22 = vld [vmem:[#allocation28_spill] sm:$0xff] }
 0x12f   :  { %v3117_v6 = vadd.f32 %v1306_v20, %v2949_v60  ;;  %4519 = vst [vmem:[#allocation64_spill] sm:$0xff] %v3119_v52  ;;  %4520 = vst [vmem:[#allocation65_spill] sm:$0xff] %v3121_v47  ;;  %v3124_v24 = vadd.f32 %v1319_v4, %v2956_v10  ;;  %v3127_v49 = vadd.f32 %v1332_v54, %v2959_v32  ;;  %v4524_v20 = vld [vmem:[#allocation39_spill] sm:$0xff]  ;;  %v4525_v4 = vld [vmem:[#allocation40_spill] sm:$0xff] }
 0x130   :  { %v3130_v33 = vadd.f32 %v1345_v44, %v2962_v53  ;;  %v3133_v46 = vadd.f32 %v1358_v45, %v2965_v56  ;;  %4521 = vst [vmem:[#allocation66_spill] sm:$0xff] %v3135_v39  ;;  %v877_v60 = vmul.f32 %v2927_v23, %v2816_v1  ;;  %v890_v15 = vmul.f32 %v2927_v23, %v2818_v2  ;;  %v4526_v54 = vld [vmem:[#allocation41_spill] sm:$0xff]  ;;  %v4527_v45 = vld [vmem:[#allocation42_spill] sm:$0xff] }
 0x131   :  { %v903_v10 = vmul.f32 %v2927_v23, %v4522_v19  ;;  %v916_v32 = vmul.f32 %v2927_v23, %v4523_v22  ;;  %v929_v53 = vmul.f32 %v2927_v23, %v4524_v20  ;;  %v942_v56 = vmul.f32 %v2927_v23, %v4525_v4 }
 0x132   :  { %v955_v44 = vmul.f32 %v2927_v23, %v4526_v54  ;;  %v968_v39 = vmul.f32 %v2927_v23, %v4527_v45  ;;  %v3154_v52 = vadd.f32 %v2977_v55, %v877_v60  ;;  %v3157_v47 = vadd.f32 %v2979_v12, %v890_v15  ;;  %v3177_v12 = vpop.f32.mrb[32].mxu0  ;;  %v3187_v15 = vpop.f32.mrb[32].mxu1 }
 0x133   :  { %v3160_v48 = vadd.f32 %v2981_v57, %v903_v10  ;;  %v3163_v7 = vadd.f32 %v2983_v26, %v916_v32  ;;  %v3166_v0 = vadd.f32 %v2985_v25, %v929_v53  ;;  %v3169_v30 = vadd.f32 %v2987_v18, %v942_v56  ;;  %v4528_v57 = vld [vmem:[#allocation44_spill] sm:$0xff]  ;;  %v3199_v53 = vpop.f32.mrb[33].mxu1 }
 0x134   :  { %v3172_v23 = vadd.f32 %v2989_v17, %v955_v44  ;;  %v3175_v55 = vadd.f32 %v2991_v5, %v968_v39  ;;  %v1140_v60 = vmul.f32 %v4528_v57, %v2816_v1  ;;  %v1153_v26 = vmul.f32 %v4528_v57, %v2818_v2  ;;  %4529 = vst [vmem:[#allocation44_spill] sm:$0xff] %v3187_v15  ;;  %v3189_v17 = vpop.f32.mrb[33].mxu0  ;;  %v3215_v13 = vpop.f32.mrb[34].mxu1 }
 0x135   :  { %v1166_v25 = vmul.f32 %v4528_v57, %v4522_v19  ;;  %v1179_v18 = vmul.f32 %v4528_v57, %v4523_v22  ;;  %4530 = vst [vmem:[#allocation67_spill] sm:$0xff] %v3189_v17  ;;  %v1192_v5 = vmul.f32 %v4528_v57, %v4524_v20  ;;  %v1205_v39 = vmul.f32 %v4528_v57, %v4525_v4  ;;  %v3201_v56 = vpop.f32.mrb[34].mxu0 }
 0x136   :  { %v1218_v10 = vmul.f32 %v4528_v57, %v4526_v54  ;;  %v1231_v32 = vmul.f32 %v4528_v57, %v4527_v45  ;;  %4531 = vst [vmem:[#allocation68_spill] sm:$0xff] %v3199_v53  ;;  %4532 = vst [vmem:[#allocation69_spill] sm:$0xff] %v3201_v56  ;;  %v3204_v44 = vadd.f32 %v3012_v38, %v1140_v60  ;;  %v3217_v11 = vpop.f32.mrb[35].mxu0 }
 0x137   :  { %v3207_v3 = vadd.f32 %v3015_v21, %v1153_v26  ;;  %v3210_v16 = vadd.f32 %v3018_v27, %v1166_v25  ;;  %v3213_v14 = vadd.f32 %v3021_v35, %v1179_v18  ;;  %4533 = vst [vmem:[#allocation70_spill] sm:$0xff] %v3215_v13  ;;  %4534 = vst [vmem:[#allocation71_spill] sm:$0xff] %v3217_v11  ;;  %v3231_v27 = vpop.f32.mrb[35].mxu1  ;;  %v4536_v35 = vld [vmem:[#allocation45_spill] sm:$0xff] }
 0x138   :  { %v3220_v57 = vadd.f32 %v3028_v51, %v1192_v5  ;;  %v3223_v63 = vadd.f32 %v3031_v37, %v1205_v39  ;;  %v3226_v38 = vadd.f32 %v3034_v40, %v1218_v10  ;;  %v3229_v21 = vadd.f32 %v3037_v41, %v1231_v32  ;;  %4535 = vst [vmem:[#allocation72_spill] sm:$0xff] %v3231_v27  ;;  %v3261_v27 = vpop.permute.xlu1 %444 }
 0x139   :  { %v1012_v60 = vmul.f32 %v4536_v35, %v2816_v1  ;;  %v1025_v26 = vmul.f32 %v4536_v35, %v2818_v2  ;;  %v1038_v51 = vmul.f32 %v4536_v35, %v4522_v19  ;;  %v1051_v37 = vmul.f32 %v4536_v35, %v4523_v22 }
 0x13a   :  { %v1064_v40 = vmul.f32 %v4536_v35, %v4524_v20  ;;  %v1077_v41 = vmul.f32 %v4536_v35, %v4525_v4  ;;  %v1090_v25 = vmul.f32 %v4536_v35, %v4526_v54  ;;  %v1103_v18 = vmul.f32 %v4536_v35, %v4527_v45  ;;  %v3275_v35 = vpop.f32.mrb[36].mxu0 }
 0x13b   :  { %v3250_v5 = vadd.f32 %v3058_v29, %v1012_v60  ;;  %v3253_v39 = vadd.f32 %v3061_v8, %v1025_v26  ;;  %v3256_v10 = vadd.f32 %v3064_v9, %v1038_v51  ;;  %v3259_v32 = vadd.f32 %v3067_v31, %v1051_v37  ;;  %4537 = vst [vmem:[#allocation45_spill] sm:$0xff] %v3275_v35  ;;  %v4538_v9 = vld [vmem:[#allocation11_spill] sm:$0xff]  ;;  %v4539_v60 = vld [vmem:[#allocation8_spill] sm:$0xff]  ;;  %v4541_v26 = vld [vmem:[#allocation9_spill] sm:$0xff] }
 0x13c   :  { %v3264_v62 = vadd.f32 %v3070_v34, %v1064_v40  ;;  %v3267_v61 = vadd.f32 %v3073_v42, %v1077_v41  ;;  %v3270_v29 = vadd.f32 %v3076_v36, %v1090_v25  ;;  %v3273_v8 = vadd.f32 %v3079_v50, %v1103_v18  ;;  %v4543_v34 = vld [vmem:[#allocation12_spill] sm:$0xff]  ;;  %v4545_v37 = vld [vmem:[#allocation43_spill] sm:$0xff]  ;;  %v4546_v36 = vld [vmem:[#allocation46_spill] sm:$0xff]  ;;  %v3291_v41 = vpop.f32.mrb[36].mxu1  ;;  %v3293_v50 = vpop.f32.mrb[37].mxu0 }
 0x13d   :  { %v3279_v31 = vadd.f32 %v4539_v60, %v4538_v9  ;;  %v3283_v51 = vadd.f32 %v4541_v26, %v4538_v9  ;;  %v3287_v42 = vadd.f32 %v4543_v34, %v4538_v9  ;;  %v699_v40 = vadd.f32 %v4546_v36, %v4545_v37  ;;  %4547 = vst [vmem:[#allocation12_spill] sm:$0xff] %v3291_v41  ;;  %v4549_v25 = vld [vmem:[#allocation14_spill] sm:$0xff]  ;;  %v4551_v60 = vld [vmem:[#allocation15_spill] sm:$0xff]  ;;  %v4553_v26 = vld [vmem:[#allocation20_spill] sm:$0xff]  ;;  %v3309_v36 = vpop.f32.mrb[37].mxu1  ;;  %v3311_v41 = vpop.f32.mrb[38].mxu0 }
 0x13e   :  { %4548 = vst [vmem:[#allocation46_spill] sm:$0xff] %v3293_v50  ;;  %v3297_v18 = vadd.f32 %v4549_v25, %v4538_v9  ;;  %v3301_v35 = vadd.f32 %v4551_v60, %v4538_v9  ;;  %v3305_v58 = vadd.f32 %v4553_v26, %v4538_v9  ;;  %v4555_v34 = vld [vmem:[#allocation47_spill] sm:$0xff]  ;;  %4557 = vst [vmem:[#allocation73_spill] sm:$0xff] %v3311_v41  ;;  %v3317_v13 = vpop.f32.mrb[38].mxu1 }
 0x13f   :  { %4540 = vst [vmem:[#allocation11_spill] sm:$0xff] %v3279_v31  ;;  %4542 = vst [vmem:[#allocation8_spill] sm:$0xff] %v3283_v51  ;;  %v628_v11 = vadd.f32 %v4555_v34, %v3261_v27  ;;  %v1268_v50 = vmul.f32 %v699_v40, %v2816_v1  ;;  %v1281_v25 = vmul.f32 %v699_v40, %v2818_v2 }
 0x140   :  { %4544 = vst [vmem:[#allocation9_spill] sm:$0xff] %v3287_v42  ;;  %4550 = vst [vmem:[#allocation14_spill] sm:$0xff] %v3297_v18  ;;  %v1294_v37 = vmul.f32 %v699_v40, %v4522_v19  ;;  %v1307_v60 = vmul.f32 %v699_v40, %v4523_v22  ;;  %v1320_v9 = vmul.f32 %v699_v40, %v4524_v20 }
 0x141   :  { %4552 = vst [vmem:[#allocation15_spill] sm:$0xff] %v3301_v35  ;;  %4554 = vst [vmem:[#allocation20_spill] sm:$0xff] %v3305_v58  ;;  %v1333_v26 = vmul.f32 %v699_v40, %v4525_v4  ;;  %v1346_v34 = vmul.f32 %v699_v40, %v4526_v54  ;;  %v3324_v41 = vadd.f32 %v3108_v59, %v1268_v50  ;;  %v4560_v50 = vld [vmem:[#allocation27_spill] sm:$0xff] }
 0x142   :  { %4556 = vst [vmem:[#allocation47_spill] sm:$0xff] %v3309_v36  ;;  %4558 = vst [vmem:[#allocation74_spill] sm:$0xff] %v3317_v13  ;;  %v1359_v36 = vmul.f32 %v699_v40, %v4527_v45  ;;  %v3327_v1 = vadd.f32 %v3111_v28, %v1281_v25  ;;  %v3330_v19 = vadd.f32 %v3114_v43, %v1294_v37  ;;  %v3347_v28 = vpop.f32.mrb[39].mxu0  ;;  %v4561_v37 = vld [vmem:[#allocation29_spill] sm:$0xff] }
 0x143   :  { %v3333_v22 = vadd.f32 %v3117_v6, %v1307_v60  ;;  %v3336_v13 = vadd.f32 %v3124_v24, %v1320_v9  ;;  %v3339_v4 = vadd.f32 %v3127_v49, %v1333_v26  ;;  %v3342_v40 = vadd.f32 %v3130_v33, %v1346_v34  ;;  %4559 = vst [vmem:[#allocation75_spill] sm:$0xff] %v3347_v28 }
 0x144   :  { %v3345_v59 = vadd.f32 %v3133_v46, %v1359_v36  ;;  %v878_v43 = vmul.f32 %v628_v11, %v4560_v50  ;;  %v891_v25 = vmul.f32 %v628_v11, %v4561_v37  ;;  %v904_v6 = vmul.f32 %v628_v11, %v3279_v31 }
 0x145   :  { %v917_v24 = vmul.f32 %v628_v11, %v3283_v51  ;;  %v930_v60 = vmul.f32 %v628_v11, %v3287_v42  ;;  %v943_v49 = vmul.f32 %v628_v11, %v3297_v18  ;;  %v956_v33 = vmul.f32 %v628_v11, %v3301_v35 }
 0x146   :  { %v969_v9 = vmul.f32 %v628_v11, %v3305_v58  ;;  %v881_v46 = vadd.f32 %v3154_v52, %v878_v43  ;;  %v894_v36 = vadd.f32 %v3157_v47, %v891_v25  ;;  %v907_v26 = vadd.f32 %v3160_v48, %v904_v6 }
 0x147   :  { %v920_v34 = vadd.f32 %v3163_v7, %v917_v24  ;;  %v933_v28 = vadd.f32 %v3166_v0, %v930_v60  ;;  %v946_v45 = vadd.f32 %v3169_v30, %v943_v49  ;;  %v959_v54 = vadd.f32 %v3172_v23, %v956_v33  ;;  %v4562_v30 = vld [vmem:[#allocation48_spill] sm:$0xff] }
 0x148   :  { %v972_v20 = vadd.f32 %v3175_v55, %v969_v9  ;;  %v882_v2 = vrot.slane %v881_v46, 4  ;;  %v895_v56 = vrot.slane %v894_v36, 4  ;;  %v908_v53 = vrot.slane %v907_v26, 4 }
 0x149   :  { %v921_v24 = vrot.slane %v920_v34, 4  ;;  %v934_v0 = vrot.slane %v933_v28, 4  ;;  %v947_v60 = vrot.slane %v946_v45, 4  ;;  %v701_v23 = vadd.f32 %v4562_v30, %v3261_v27 }
 0x14a   :  { %v883_v11 = vadd.f32 %v882_v2, %v881_v46  ;;  %v896_v17 = vadd.f32 %v895_v56, %v894_v36  ;;  %v909_v52 = vadd.f32 %v908_v53, %v907_v26  ;;  %v960_v9 = vrot.slane %v959_v54, 4  ;;  %v3367_v36 = vpop.f32.mrb[39].mxu1 }
 0x14b   :  { %v973_v46 = vrot.slane %v972_v20, 4  ;;  %4563 = vst [vmem:[#allocation48_spill] sm:$0xff] %v3367_v36  ;;  %v935_v26 = vadd.f32 %v934_v0, %v933_v28  ;;  %v1180_v30 = vmul.f32 %v701_v23, %v3283_v51  ;;  %v1206_v28 = vmul.f32 %v701_v23, %v3297_v18 }
 0x14c   :  { %v884_v43 = vrot.slane %v883_v11, 2  ;;  %v897_v47 = vrot.slane %v896_v17, 2  ;;  %v910_v25 = vrot.slane %v909_v52, 2  ;;  %v1219_v0 = vmul.f32 %v701_v23, %v3301_v35 }
 0x14e   :  { %v885_v48 = vadd.f32 %v884_v43, %v883_v11  ;;  %v898_v6 = vadd.f32 %v897_v47, %v896_v17  ;;  %v911_v7 = vadd.f32 %v910_v25, %v909_v52  ;;  %v922_v17 = vadd.f32 %v921_v24, %v920_v34 }
 0x14f   :  { %v948_v11 = vadd.f32 %v947_v60, %v946_v45  ;;  %v1141_v52 = vmul.f32 %v701_v23, %v4560_v50  ;;  %v1154_v47 = vmul.f32 %v701_v23, %v4561_v37  ;;  %v1167_v25 = vmul.f32 %v701_v23, %v3279_v31 }
 0x150   :  { %v886_v49 = vrot.slane %v885_v48, 1  ;;  %v899_v55 = vrot.slane %v898_v6, 1  ;;  %v912_v33 = vrot.slane %v911_v7, 1  ;;  %v1183_v24 = vadd.f32 %v3213_v14, %v1180_v30 }
 0x151   :  { %v1157_v45 = vadd.f32 %v3207_v3, %v1154_v47  ;;  %v1170_v34 = vadd.f32 %v3210_v16, %v1167_v25  ;;  %v923_v3 = vrot.slane %v922_v17, 2  ;;  %v949_v47 = vrot.slane %v948_v11, 2 }
 0x152   :  { %v887_v2 = vadd.f32 %v886_v49, %v885_v48  ;;  %v900_v53 = vadd.f32 %v899_v55, %v898_v6  ;;  %v913_v56 = vadd.f32 %v912_v33, %v911_v7  ;;  %v1144_v6 = vadd.f32 %v3204_v44, %v1141_v52 }
 0x153   :  { %v1193_v7 = vmul.f32 %v701_v23, %v3287_v42  ;;  %v1209_v55 = vadd.f32 %v3223_v63, %v1206_v28  ;;  %v1232_v33 = vmul.f32 %v701_v23, %v3305_v58  ;;  %v961_v44 = vadd.f32 %v960_v9, %v959_v54 }
 0x154   :  { %v980_v43 = vsel %vm979_vm1, %v887_v2, %v900_v53  ;;  %v1145_v60 = vrot.slane %v1144_v6, 4  ;;  %v1158_v2 = vrot.slane %v1157_v45, 4  ;;  %v1171_v53 = vrot.slane %v1170_v34, 4 }
 0x155   :  { %v3375_v48 = vsel %vm981_vm2, %v980_v43, %v913_v56  ;;  %v1196_v49 = vadd.f32 %v3220_v57, %v1193_v7  ;;  %v3388_v56 = vadd.f32 %v3226_v38, %v1219_v0  ;;  %v974_v52 = vadd.f32 %v973_v46, %v972_v20 }
 0x156   :  { %4564 = vst [vmem:[#allocation76_spill] sm:$0xff] %v3375_v48  ;;  %v1146_v16 = vadd.f32 %v1145_v60, %v1144_v6  ;;  %v3391_v14 = vadd.f32 %v3229_v21, %v1232_v33  ;;  %v936_v43 = vrot.slane %v935_v26, 2  ;;  %v1159_v25 = vadd.f32 %v1158_v2, %v1157_v45  ;;  %v4565_v21 = vld [vmem:[#allocation49_spill] sm:$0xff] }
 0x157   :  { %v1172_v57 = vadd.f32 %v1171_v53, %v1170_v34  ;;  %v924_v23 = vadd.f32 %v923_v3, %v922_v17  ;;  %v962_v54 = vrot.slane %v961_v44, 2  ;;  %v975_v9 = vrot.slane %v974_v52, 2 }
 0x158   :  { %v1147_v30 = vrot.slane %v1146_v16, 2  ;;  %v1160_v63 = vrot.slane %v1159_v25, 2  ;;  %v937_v48 = vadd.f32 %v936_v43, %v935_v26  ;;  %v950_v38 = vadd.f32 %v949_v47, %v948_v11 }
 0x159   :  { %v1173_v7 = vrot.slane %v1172_v57, 2  ;;  %v1184_v46 = vrot.slane %v1183_v24, 4  ;;  %v630_v6 = vadd.f32 %v4565_v21, %v3261_v27  ;;  %v1197_v45 = vrot.slane %v1196_v49, 4 }
 0x15a   :  { %v1148_v28 = vadd.f32 %v1147_v30, %v1146_v16  ;;  %v1161_v0 = vadd.f32 %v1160_v63, %v1159_v25  ;;  %v925_v34 = vrot.slane %v924_v23, 1  ;;  %v963_v2 = vadd.f32 %v962_v54, %v961_v44 }
 0x15b   :  { %v1174_v36 = vadd.f32 %v1173_v7, %v1172_v57  ;;  %v3395_v53 = vadd.f32 %v975_v9, %v974_v52  ;;  %v938_v3 = vrot.slane %v937_v48, 1  ;;  %v951_v15 = vrot.slane %v950_v38, 1 }
 0x15c   :  { %v1149_v20 = vrot.slane %v1148_v28, 1  ;;  %v1162_v60 = vrot.slane %v1161_v0, 1  ;;  %v1185_v11 = vadd.f32 %v1184_v46, %v1183_v24  ;;  %v1210_v43 = vrot.slane %v1209_v55, 4 }
 0x15d   :  { %v1175_v33 = vrot.slane %v1174_v36, 1  ;;  %4566 = vst [vmem:[#allocation49_spill] sm:$0xff] %v3395_v53  ;;  %v1223_v47 = vrot.slane %v3388_v56, 4  ;;  %v1013_v25 = vmul.f32 %v630_v6, %v4560_v50  ;;  %v1198_v57 = vadd.f32 %v1197_v45, %v1196_v49 }
 0x15e   :  { %v1150_v17 = vadd.f32 %v1149_v20, %v1148_v28  ;;  %v1163_v16 = vadd.f32 %v1162_v60, %v1161_v0  ;;  %v1026_v63 = vmul.f32 %v630_v6, %v4561_v37  ;;  %v1039_v44 = vmul.f32 %v630_v6, %v3279_v31  ;;  %v3412_v0 = vpop.f32.mrb[40].mxu0 }
 0x15f   :  { %v1176_v26 = vadd.f32 %v1175_v33, %v1174_v36  ;;  %v1016_v7 = vadd.f32 %v3250_v5, %v1013_v25  ;;  %v1052_v36 = vmul.f32 %v630_v6, %v3283_v51  ;;  %v1065_v24 = vmul.f32 %v630_v6, %v3287_v42  ;;  %4568 = vst [vmem:[#allocation78_spill] sm:$0xff] %v3412_v0 }
 0x160   :  { %v1242_v30 = vsel %vm979_vm1, %v1150_v17, %v1163_v16  ;;  %v1029_v54 = vadd.f32 %v3253_v39, %v1026_v63  ;;  %v1042_v9 = vadd.f32 %v3256_v10, %v1039_v44  ;;  %v1078_v49 = vmul.f32 %v630_v6, %v3297_v18 }
 0x161   :  { %v3403_v52 = vsel %vm981_vm2, %v1242_v30, %v1176_v26  ;;  %v1091_v28 = vmul.f32 %v630_v6, %v3301_v35  ;;  %v1017_v20 = vrot.slane %v1016_v7, 4  ;;  %v1055_v46 = vadd.f32 %v3259_v32, %v1052_v36 }
 0x162   :  { %4567 = vst [vmem:[#allocation77_spill] sm:$0xff] %v3403_v52  ;;  %v1068_v21 = vadd.f32 %v3264_v62, %v1065_v24  ;;  %v1104_v5 = vmul.f32 %v630_v6, %v3305_v58  ;;  %v1211_v60 = vadd.f32 %v1210_v43, %v1209_v55  ;;  %v1030_v33 = vrot.slane %v1029_v54, 4  ;;  %v4569_v62 = vld [vmem:[#allocation50_spill] sm:$0xff] }
 0x163   :  { %v1081_v45 = vadd.f32 %v3267_v61, %v1078_v49  ;;  %v1094_v39 = vadd.f32 %v3270_v29, %v1091_v28  ;;  %v1186_v10 = vrot.slane %v1185_v11, 2  ;;  %v1236_v17 = vrot.slane %v3391_v14, 4 }
 0x164   :  { %v1018_v16 = vadd.f32 %v1017_v20, %v1016_v7  ;;  %v3421_v26 = vadd.f32 %v3273_v8, %v1104_v5  ;;  %v964_v25 = vrot.slane %v963_v2, 1  ;;  %v1224_v32 = vadd.f32 %v1223_v47, %v3388_v56 }
 0x165   :  { %v1031_v30 = vadd.f32 %v1030_v33, %v1029_v54  ;;  %v703_v6 = vadd.f32 %v4569_v62, %v3261_v27  ;;  %v3426_v55 = vadd.f32 %v925_v34, %v924_v23  ;;  %v1043_v29 = vrot.slane %v1042_v9, 4  ;;  %v3438_v54 = vpop.f32.mrb[40].mxu1 }
 0x166   :  { %v1019_v43 = vrot.slane %v1018_v16, 2  ;;  %v3429_v63 = vadd.f32 %v938_v3, %v937_v48  ;;  %v1199_v44 = vrot.slane %v1198_v57, 2  ;;  %v1212_v7 = vrot.slane %v1211_v60, 2  ;;  %4573 = vst [vmem:[#allocation81_spill] sm:$0xff] %v3438_v54 }
 0x167   :  { %4570 = vst [vmem:[#allocation50_spill] sm:$0xff] %v3426_v55  ;;  %v1032_v36 = vrot.slane %v1031_v30, 2  ;;  %v3431_v8 = vadd.f32 %v951_v15, %v950_v38  ;;  %v3433_v24 = vadd.f32 %v1186_v10, %v1185_v11  ;;  %v3436_v56 = vadd.f32 %v1236_v17, %v3391_v14  ;;  %v3446_v14 = vpop.f32.mrb[41].mxu0  ;;  %v3448_v10 = vpop.f32.mrb[41].mxu1 }
 0x168   :  { %4571 = vst [vmem:[#allocation79_spill] sm:$0xff] %v3429_v63  ;;  %v1020_v47 = vadd.f32 %v1019_v43, %v1018_v16  ;;  %v1225_v23 = vrot.slane %v1224_v32, 2  ;;  %v1056_v49 = vrot.slane %v1055_v46, 4  ;;  %v1069_v28 = vrot.slane %v1068_v21, 4  ;;  %4575 = vst [vmem:[#allocation83_spill] sm:$0xff] %v3446_v14  ;;  %v3457_v43 = vpop.f32.mrb[42].mxu1 }
 0x169   :  { %4572 = vst [vmem:[#allocation80_spill] sm:$0xff] %v3431_v8  ;;  %v1033_v34 = vadd.f32 %v1032_v36, %v1031_v30  ;;  %v3440_v20 = vadd.f32 %v964_v25, %v963_v2  ;;  %v1044_v3 = vadd.f32 %v1043_v29, %v1042_v9  ;;  %v1082_v5 = vrot.slane %v1081_v45, 4  ;;  %4576 = vst [vmem:[#allocation84_spill] sm:$0xff] %v3448_v10 }
 0x16a   :  { %v1021_v48 = vrot.slane %v1020_v47, 1  ;;  %v3442_v33 = vadd.f32 %v1199_v44, %v1198_v57  ;;  %v3444_v15 = vadd.f32 %v1212_v7, %v1211_v60  ;;  %v1095_v11 = vrot.slane %v1094_v39, 4  ;;  %v3455_v60 = vpop.f32.mrb[42].mxu0  ;;  %4578 = vst [vmem:[#allocation86_spill] sm:$0xff] %v3457_v43 }
 0x16b   :  { %4574 = vst [vmem:[#allocation82_spill] sm:$0xff] %v3440_v20  ;;  %v1034_v38 = vrot.slane %v1033_v34, 1  ;;  %v1188_v17 = vrot.slane %v3433_v24, 1  ;;  %v1238_v16 = vrot.slane %v3436_v56, 2  ;;  %v1269_v2 = vmul.f32 %v703_v6, %v4560_v50  ;;  %4577 = vst [vmem:[#allocation85_spill] sm:$0xff] %v3455_v60  ;;  %v3461_v61 = vpop.f32.mrb[43].mxu0 }
 0x16c   :  { %v1022_v30 = vadd.f32 %v1021_v48, %v1020_v47  ;;  %v3453_v25 = vadd.f32 %v1225_v23, %v1224_v32  ;;  %v1057_v57 = vadd.f32 %v1056_v49, %v1055_v46  ;;  %v1070_v62 = vadd.f32 %v1069_v28, %v1068_v21  ;;  %4579 = vst [vmem:[#allocation87_spill] sm:$0xff] %v3461_v61  ;;  %v3463_v47 = vpop.f32.mrb[43].mxu1  ;;  %v3470_v23 = vpop.f32.mrb[44].mxu0 }
 0x16d   :  { %v1035_v9 = vadd.f32 %v1034_v38, %v1033_v34  ;;  %v1045_v29 = vrot.slane %v1044_v3, 2  ;;  %v1083_v44 = vadd.f32 %v1082_v5, %v1081_v45  ;;  %v1272_v7 = vadd.f32 %v3324_v41, %v1269_v2  ;;  %4580 = vst [vmem:[#allocation88_spill] sm:$0xff] %v3463_v47  ;;  %4582 = vst [vmem:[#allocation90_spill] sm:$0xff] %v3470_v23  ;;  %v3472_v34 = vpop.f32.mrb[44].mxu1  ;;  %v3477_v5 = vpop.f32.mrb[45].mxu0 }
 0x16e   :  { %v1282_v36 = vmul.f32 %v703_v6, %v4561_v37  ;;  %v1096_v48 = vadd.f32 %v1095_v11, %v1094_v39  ;;  %v1295_v46 = vmul.f32 %v703_v6, %v3279_v31  ;;  %v1308_v21 = vmul.f32 %v703_v6, %v3283_v51  ;;  %4583 = vst [vmem:[#allocation91_spill] sm:$0xff] %v3472_v34  ;;  %v3479_v39 = vpop.f32.mrb[45].mxu1 }
 0x16f   :  { %v3466_v32 = vsel %vm979_vm1, %v1022_v30, %v1035_v9  ;;  %v1273_v45 = vrot.slane %v1272_v7, 4  ;;  %v1321_v49 = vmul.f32 %v703_v6, %v3287_v42  ;;  %v1334_v28 = vmul.f32 %v703_v6, %v3297_v18  ;;  %4584 = vst [vmem:[#allocation92_spill] sm:$0xff] %v3477_v5  ;;  %4585 = vst [vmem:[#allocation93_spill] sm:$0xff] %v3479_v39  ;;  %v3485_v9 = vpop.f32.mrb[46].mxu0  ;;  %v3487_v34 = vpop.f32.mrb[46].mxu1 }
 0x170   :  { %4581 = vst [vmem:[#allocation89_spill] sm:$0xff] %v3466_v32  ;;  %v1285_v41 = vadd.f32 %v3327_v1, %v1282_v36  ;;  %v1298_v38 = vadd.f32 %v3330_v19, %v1295_v46  ;;  %v1311_v11 = vadd.f32 %v3333_v22, %v1308_v21  ;;  %v1347_v30 = vmul.f32 %v703_v6, %v3301_v35  ;;  %v3491_v23 = vpop.f32.mrb[47].mxu0  ;;  %v3493_v39 = vpop.f32.mrb[47].mxu1 }
 0x171   :  { %v1360_v2 = vmul.f32 %v703_v6, %v3305_v58  ;;  %4586 = vst [vmem:[#allocation94_spill] sm:$0xff] %v3485_v9  ;;  %4587 = vst [vmem:[#allocation95_spill] sm:$0xff] %v3487_v34  ;;  %v1274_v1 = vadd.f32 %v1273_v45, %v1272_v7  ;;  %v1324_v47 = vadd.f32 %v3336_v13, %v1321_v49  ;;  %v1058_v19 = vrot.slane %v1057_v57, 2  ;;  %v4629_v58 = vld [vmem:[#allocation38_spill] sm:$0xff] }
 0x172   :  { %v1286_v36 = vrot.slane %v1285_v41, 4  ;;  %v1337_v5 = vadd.f32 %v3339_v4, %v1334_v28  ;;  %4588 = vst [vmem:[#allocation96_spill] sm:$0xff] %v3491_v23  ;;  %4589 = vst [vmem:[#allocation97_spill] sm:$0xff] %v3493_v39  ;;  %v1071_v22 = vrot.slane %v1070_v62, 2  ;;  %v1350_v46 = vadd.f32 %v3342_v40, %v1347_v30 }
 0x173   :  { %v1363_v6 = vadd.f32 %v3345_v59, %v1360_v2  ;;  %v1201_v21 = vrot.slane %v3442_v33, 1  ;;  %v1214_v34 = vrot.slane %v3444_v15, 1  ;;  %v1275_v7 = vrot.slane %v1274_v1, 2 }
 0x174   :  { %v1287_v45 = vadd.f32 %v1286_v36, %v1285_v41  ;;  %v3500_v13 = vadd.f32 %v1188_v17, %v3433_v24  ;;  %v3503_v4 = vadd.f32 %v1238_v16, %v3436_v56  ;;  %v1046_v49 = vadd.f32 %v1045_v29, %v1044_v3 }
 0x175   :  { %v1108_v28 = vrot.slane %v3421_v26, 4  ;;  %v1084_v39 = vrot.slane %v1083_v44, 2  ;;  %v1097_v23 = vrot.slane %v1096_v48, 2  ;;  %v1276_v40 = vadd.f32 %v1275_v7, %v1274_v1 }
 0x176   :  { %4590 = vst [vmem:[#allocation98_spill] sm:$0xff] %v3500_v13  ;;  %4591 = vst [vmem:[#allocation99_spill] sm:$0xff] %v3503_v4  ;;  %v1288_v30 = vrot.slane %v1287_v45, 2  ;;  %v1059_v59 = vadd.f32 %v1058_v19, %v1057_v57  ;;  %v1072_v2 = vadd.f32 %v1071_v22, %v1070_v62  ;;  %v1299_v9 = vrot.slane %v1298_v38, 4 }
 0x177   :  { %v1312_v61 = vrot.slane %v1311_v11, 4  ;;  %v1227_v43 = vrot.slane %v3453_v25, 1  ;;  %v1277_v41 = vrot.slane %v1276_v40, 1  ;;  %v1325_v24 = vrot.slane %v1324_v47, 4 }
 0x178   :  { %v1289_v36 = vadd.f32 %v1288_v30, %v1287_v45  ;;  %v3508_v17 = vadd.f32 %v1201_v21, %v3442_v33  ;;  %v1047_v56 = vrot.slane %v1046_v49, 1  ;;  %v3511_v3 = vadd.f32 %v1108_v28, %v3421_v26  ;;  %v4618_v28 = vld [vmem:[#allocation30_spill] sm:$0xff] }
 0x179   :  { %v1338_v16 = vrot.slane %v1337_v5, 4  ;;  %v3513_v29 = vadd.f32 %v1084_v39, %v1083_v44  ;;  %v3515_v1 = vadd.f32 %v1097_v23, %v1096_v48  ;;  %v1278_v57 = vadd.f32 %v1277_v41, %v1276_v40  ;;  %v4606_v40 = vld [vmem:[#allocation10_spill] sm:$0xff]  ;;  %v4616_v48 = vld [vmem:[#allocation17_spill] sm:$0xff] }
 0x17a   :  { %4592 = vst [vmem:[#allocation100_spill] sm:$0xff] %v3508_v17  ;;  %4593 = vst [vmem:[#allocation101_spill] sm:$0xff] %v3511_v3  ;;  %v1290_v62 = vrot.slane %v1289_v36, 1  ;;  %v1060_v19 = vrot.slane %v1059_v59, 1  ;;  %v1073_v22 = vrot.slane %v1072_v2, 1  ;;  %v3517_v7 = vadd.f32 %v1299_v9, %v1298_v38  ;;  %v4624_v3 = vld [vmem:[#allocation22_spill] sm:$0xff] }
 0x17b   :  { %4594 = vst [vmem:[#allocation102_spill] sm:$0xff] %v3513_v29  ;;  %4595 = vst [vmem:[#allocation103_spill] sm:$0xff] %v3515_v1  ;;  %v3519_v45 = vadd.f32 %v1312_v61, %v1311_v11  ;;  %v3521_v33 = vadd.f32 %v1325_v24, %v1324_v47  ;;  %v1351_v21 = vrot.slane %v1350_v46, 4  ;;  %v1364_v60 = vrot.slane %v1363_v6, 4 }
 0x17c   :  { %v1291_v30 = vadd.f32 %v1290_v62, %v1289_v36  ;;  %v3524_v26 = vadd.f32 %v1214_v34, %v3444_v15  ;;  %v3527_v44 = vadd.f32 %v1227_v43, %v3453_v25  ;;  %v3530_v23 = vadd.f32 %v1338_v16, %v1337_v5  ;;  %v4608_v36 = vld [vmem:[#allocation67_spill] sm:$0xff]  ;;  %v4611_v62 = vld [vmem:[#allocation69_spill] sm:$0xff] }
 0x17d   :  { %4596 = vst [vmem:[#allocation104_spill] sm:$0xff] %v3521_v33  ;;  %v3532_v39 = vadd.f32 %v1047_v56, %v1046_v49  ;;  %v3539_v11 = vadd.f32 %v1060_v19, %v1059_v59  ;;  %v3541_v15 = vadd.f32 %v1073_v22, %v1072_v2  ;;  %v3547_v9 = vadd.f32 %v1351_v21, %v1350_v46  ;;  %v4607_v2 = vld [vmem:[#allocation44_spill] sm:$0xff]  ;;  %v4613_v19 = vld [vmem:[#allocation71_spill] sm:$0xff] }
 0x17e   :  { %4597 = vst [vmem:[#allocation105_spill] sm:$0xff] %v3524_v26  ;;  %4598 = vst [vmem:[#allocation106_spill] sm:$0xff] %v3527_v44  ;;  %v3537_v47 = vsel %vm979_vm1, %v1278_v57, %v1291_v30  ;;  %v3549_v49 = vadd.f32 %v1364_v60, %v1363_v6  ;;  %v760_v59 = vadd.f32 %v3177_v12, %v4606_v40  ;;  %v4609_v56 = vld [vmem:[#allocation68_spill] sm:$0xff]  ;;  %v4610_v57 = vld [vmem:[#allocation33_spill] sm:$0xff] }
 0x17f   :  { %4599 = vst [vmem:[#allocation107_spill] sm:$0xff] %v3530_v23  ;;  %4600 = vst [vmem:[#allocation108_spill] sm:$0xff] %v3532_v39  ;;  %v833_v41 = vadd.f32 %v4607_v2, %v4606_v40  ;;  %v762_v24 = vadd.f32 %v4608_v36, %v4606_v40  ;;  %v835_v16 = vadd.f32 %v4609_v56, %v4606_v40  ;;  %v4612_v60 = vld [vmem:[#allocation70_spill] sm:$0xff]  ;;  %v4614_v12 = vld [vmem:[#allocation13_spill] sm:$0xff] }
 0x180   :  { %4601 = vst [vmem:[#allocation109_spill] sm:$0xff] %v3537_v47  ;;  %4602 = vst [vmem:[#allocation110_spill] sm:$0xff] %v3539_v11  ;;  %v764_v46 = vadd.f32 %v4611_v62, %v4610_v57  ;;  %v837_v6 = vadd.f32 %v4612_v60, %v4610_v57  ;;  %v3566_v22 = vadd.f32 %v4613_v19, %v4610_v57  ;;  %v4615_v21 = vld [vmem:[#allocation16_spill] sm:$0xff]  ;;  %v4617_v36 = vld [vmem:[#allocation19_spill] sm:$0xff] }
 0x181   :  { %4603 = vst [vmem:[#allocation111_spill] sm:$0xff] %v3541_v15  ;;  %4604 = vst [vmem:[#allocation112_spill] sm:$0xff] %v3547_v9  ;;  %v1394_v30 = vmul.f32 %v760_v59, %v4614_v12  ;;  %v1407_v2 = vmul.f32 %v760_v59, %v4615_v21  ;;  %v1420_v38 = vmul.f32 %v760_v59, %v4616_v48  ;;  %v4619_v56 = vld [vmem:[#allocation31_spill] sm:$0xff]  ;;  %v4620_v62 = vld [vmem:[#allocation32_spill] sm:$0xff] }
 0x182   :  { %4605 = vst [vmem:[#allocation113_spill] sm:$0xff] %v3549_v49  ;;  %v1433_v25 = vmul.f32 %v760_v59, %v4617_v36  ;;  %v1446_v40 = vmul.f32 %v760_v59, %v4618_v28  ;;  %v1459_v5 = vmul.f32 %v760_v59, %v4619_v56  ;;  %v1472_v61 = vmul.f32 %v760_v59, %v4620_v62  ;;  %v4621_v34 = vld [vmem:[#allocation35_spill] sm:$0xff]  ;;  %v4623_v39 = vld [vmem:[#allocation21_spill] sm:$0xff]  ;;  %v4626_v23 = vld [vmem:[#allocation34_spill] sm:$0xff] }
 0x183   :  { %v1485_v60 = vmul.f32 %v760_v59, %v4621_v34  ;;  %v1650_v43 = vmul.f32 %v833_v41, %v4614_v12  ;;  %v1663_v19 = vmul.f32 %v833_v41, %v4615_v21  ;;  %v1676_v10 = vmul.f32 %v833_v41, %v4616_v48  ;;  %v4627_v33 = vld [vmem:[#allocation36_spill] sm:$0xff] }
 0x184   :  { %v1689_v54 = vmul.f32 %v833_v41, %v4617_v36  ;;  %v1702_v14 = vmul.f32 %v833_v41, %v4618_v28  ;;  %v1715_v0 = vmul.f32 %v833_v41, %v4619_v56  ;;  %v1728_v44 = vmul.f32 %v833_v41, %v4620_v62 }
 0x185   :  { %v1741_v26 = vmul.f32 %v833_v41, %v4621_v34  ;;  %v1522_v17 = vmul.f32 %v762_v24, %v4614_v12  ;;  %v1535_v59 = vmul.f32 %v762_v24, %v4615_v21  ;;  %v1548_v4 = vmul.f32 %v762_v24, %v4616_v48 }
 0x186   :  { %v1561_v52 = vmul.f32 %v762_v24, %v4617_v36  ;;  %v1574_v13 = vmul.f32 %v762_v24, %v4618_v28  ;;  %v1587_v20 = vmul.f32 %v762_v24, %v4619_v56  ;;  %v1600_v8 = vmul.f32 %v762_v24, %v4620_v62 }
 0x187   :  { %v1613_v63 = vmul.f32 %v762_v24, %v4621_v34  ;;  %v3593_v55 = vmul.f32 %v835_v16, %v4614_v12  ;;  %v3596_v41 = vmul.f32 %v835_v16, %v4615_v21  ;;  %v3599_v15 = vmul.f32 %v835_v16, %v4616_v48  ;;  %v4622_v21 = vld [vmem:[#allocation18_spill] sm:$0xff] }
 0x188   :  { %v3602_v53 = vmul.f32 %v835_v16, %v4617_v36  ;;  %v3605_v11 = vmul.f32 %v835_v16, %v4618_v28  ;;  %v3608_v47 = vmul.f32 %v835_v16, %v4619_v56  ;;  %v3611_v24 = vmul.f32 %v835_v16, %v4620_v62  ;;  %v4625_v36 = vld [vmem:[#allocation23_spill] sm:$0xff]  ;;  %v4628_v56 = vld [vmem:[#allocation37_spill] sm:$0xff] }
 0x189   :  { %v3614_v12 = vmul.f32 %v835_v16, %v4621_v34  ;;  %v1395_v32 = vmul.f32 %v764_v46, %v4622_v21  ;;  %v1408_v48 = vmul.f32 %v764_v46, %v4623_v39  ;;  %v1421_v1 = vmul.f32 %v764_v46, %v4624_v3 }
 0x18a   :  { %v1434_v49 = vmul.f32 %v764_v46, %v4625_v36  ;;  %v1447_v28 = vmul.f32 %v764_v46, %v4626_v23  ;;  %v1460_v29 = vmul.f32 %v764_v46, %v4627_v33  ;;  %v1473_v9 = vmul.f32 %v764_v46, %v4628_v56 }
 0x18b   :  { %v1486_v62 = vmul.f32 %v764_v46, %v4629_v58  ;;  %v3624_v35 = vadd.f32 %v1395_v32, %v1394_v30  ;;  %v3626_v34 = vadd.f32 %v1408_v48, %v1407_v2  ;;  %v3628_v16 = vadd.f32 %v1421_v1, %v1420_v38 }
 0x18c   :  { %v3630_v18 = vadd.f32 %v1434_v49, %v1433_v25  ;;  %v3632_v42 = vadd.f32 %v1447_v28, %v1446_v40  ;;  %v3634_v51 = vadd.f32 %v1460_v29, %v1459_v5  ;;  %v3636_v31 = vadd.f32 %v1473_v9, %v1472_v61 }
 0x18d   :  { %v3638_v37 = vadd.f32 %v1486_v62, %v1485_v60  ;;  %v1651_v50 = vmul.f32 %v837_v6, %v4622_v21  ;;  %v1664_v46 = vmul.f32 %v837_v6, %v4623_v39  ;;  %v1677_v32 = vmul.f32 %v837_v6, %v4624_v3 }
 0x18e   :  { %v1690_v30 = vmul.f32 %v837_v6, %v4625_v36  ;;  %v1703_v1 = vmul.f32 %v837_v6, %v4626_v23  ;;  %v1716_v38 = vmul.f32 %v837_v6, %v4627_v33  ;;  %v1729_v25 = vmul.f32 %v837_v6, %v4628_v56 }
 0x18f   :  { %v1742_v29 = vmul.f32 %v837_v6, %v4629_v58  ;;  %v3648_v61 = vadd.f32 %v1651_v50, %v1650_v43  ;;  %v3650_v5 = vadd.f32 %v1664_v46, %v1663_v19  ;;  %v3652_v9 = vadd.f32 %v1677_v32, %v1676_v10 }
 0x190   :  { %v3654_v49 = vadd.f32 %v1690_v30, %v1689_v54  ;;  %v3656_v2 = vadd.f32 %v1703_v1, %v1702_v14  ;;  %v3658_v40 = vadd.f32 %v1716_v38, %v1715_v0  ;;  %v3660_v60 = vadd.f32 %v1729_v25, %v1728_v44 }
 0x191   :  { %v3662_v48 = vadd.f32 %v1742_v29, %v1741_v26  ;;  %v1523_v28 = vmul.f32 %v3566_v22, %v4622_v21  ;;  %v1536_v50 = vmul.f32 %v3566_v22, %v4623_v39  ;;  %v1549_v10 = vmul.f32 %v3566_v22, %v4624_v3  ;;  %v4636_v29 = vld [vmem:[#allocation46_spill] sm:$0xff] }
 0x192   :  { %v1562_v54 = vmul.f32 %v3566_v22, %v4625_v36  ;;  %v1575_v0 = vmul.f32 %v3566_v22, %v4626_v23  ;;  %v1588_v14 = vmul.f32 %v3566_v22, %v4627_v33  ;;  %v1601_v26 = vmul.f32 %v3566_v22, %v4628_v56 }
 0x193   :  { %v1614_v44 = vmul.f32 %v3566_v22, %v4629_v58  ;;  %v3680_v43 = vadd.f32 %v1523_v28, %v1522_v17  ;;  %v3682_v6 = vadd.f32 %v1536_v50, %v1535_v59  ;;  %v3684_v19 = vadd.f32 %v1549_v10, %v1548_v4  ;;  %v4633_v59 = vld [vmem:[#allocation43_spill] sm:$0xff]  ;;  %v4638_v10 = vld [vmem:[#allocation73_spill] sm:$0xff] }
 0x194   :  { %v3686_v62 = vadd.f32 %v1562_v54, %v1561_v52  ;;  %v3688_v46 = vadd.f32 %v1575_v0, %v1574_v13  ;;  %v3690_v32 = vadd.f32 %v1588_v14, %v1587_v20  ;;  %v3692_v30 = vadd.f32 %v1601_v26, %v1600_v8  ;;  %v4632_v52 = vld [vmem:[#allocation72_spill] sm:$0xff]  ;;  %v4634_v20 = vld [vmem:[#allocation45_spill] sm:$0xff] }
 0x195   :  { %v3694_v1 = vadd.f32 %v1614_v44, %v1613_v63  ;;  %v4630_v38 = vrot.slane %v3517_v7, 2  ;;  %v4631_v17 = vrot.slane %v3519_v45, 2  ;;  %v839_v13 = vadd.f32 %v4632_v52, %v4610_v57  ;;  %v4635_v8 = vld [vmem:[#allocation12_spill] sm:$0xff] }
 0x196   :  { %v770_v25 = vadd.f32 %v4634_v20, %v4633_v59  ;;  %v843_v63 = vadd.f32 %v4635_v8, %v4633_v59  ;;  %v772_v28 = vadd.f32 %v4636_v29, %v4633_v59  ;;  %v4643_v8 = vld [vmem:[#allocation39_spill] sm:$0xff]  ;;  %v4644_v29 = vld [vmem:[#allocation40_spill] sm:$0xff] }
 0x197   :  { %v3699_v22 = vadd.f32 %v4630_v38, %v3517_v7  ;;  %v3704_v4 = vadd.f32 %v4631_v17, %v3519_v45  ;;  %v4637_v7 = vld [vmem:[#allocation47_spill] sm:$0xff]  ;;  %v3720_v45 = vadd.f32 %v4638_v10, %v3261_v27  ;;  %v1779_v54 = vmul.f32 %v839_v13, %v4622_v21 }
 0x198   :  { %v3716_v50 = vadd.f32 %v4637_v7, %v4633_v59  ;;  %v1792_v57 = vmul.f32 %v839_v13, %v4623_v39  ;;  %v1805_v0 = vmul.f32 %v839_v13, %v4624_v3  ;;  %v1818_v14 = vmul.f32 %v839_v13, %v4625_v36  ;;  %v4640_v36 = vld [vmem:[#allocation25_spill] sm:$0xff] }
 0x199   :  { %v1831_v26 = vmul.f32 %v839_v13, %v4626_v23  ;;  %v1844_v44 = vmul.f32 %v839_v13, %v4627_v33  ;;  %v1857_v38 = vmul.f32 %v839_v13, %v4628_v56  ;;  %v1870_v17 = vmul.f32 %v839_v13, %v4629_v58  ;;  %v4641_v56 = vld [vmem:[#allocation26_spill] sm:$0xff] }
 0x19a   :  { %v3731_v52 = vadd.f32 %v1779_v54, %v3593_v55  ;;  %v3734_v59 = vadd.f32 %v1792_v57, %v3596_v41  ;;  %v3737_v39 = vadd.f32 %v1805_v0, %v3599_v15  ;;  %v3740_v3 = vadd.f32 %v1818_v14, %v3602_v53  ;;  %v4639_v41 = vld [vmem:[#allocation24_spill] sm:$0xff]  ;;  %v4646_v54 = vld [vmem:[#allocation42_spill] sm:$0xff] }
 0x19b   :  { %v3743_v23 = vadd.f32 %v1831_v26, %v3605_v11  ;;  %v3746_v33 = vadd.f32 %v1844_v44, %v3608_v47  ;;  %v3749_v58 = vadd.f32 %v1857_v38, %v3611_v24  ;;  %v3752_v55 = vadd.f32 %v1870_v17, %v3614_v12  ;;  %v4642_v53 = vld [vmem:[#allocation28_spill] sm:$0xff]  ;;  %v4645_v47 = vld [vmem:[#allocation41_spill] sm:$0xff] }
 0x19c   :  { %v1396_v21 = vmul.f32 %v770_v25, %v4639_v41  ;;  %v1409_v15 = vmul.f32 %v770_v25, %v4640_v36  ;;  %v1422_v13 = vmul.f32 %v770_v25, %v4641_v56  ;;  %v1435_v20 = vmul.f32 %v770_v25, %v4642_v53 }
 0x19d   :  { %v1448_v11 = vmul.f32 %v770_v25, %v4643_v8  ;;  %v1461_v7 = vmul.f32 %v770_v25, %v4644_v29  ;;  %v1474_v10 = vmul.f32 %v770_v25, %v4645_v47  ;;  %v1487_v24 = vmul.f32 %v770_v25, %v4646_v54 }
 0x19e   :  { %v3763_v57 = vadd.f32 %v3624_v35, %v1396_v21  ;;  %v3766_v12 = vadd.f32 %v3626_v34, %v1409_v15  ;;  %v3769_v0 = vadd.f32 %v3628_v16, %v1422_v13  ;;  %v3772_v14 = vadd.f32 %v3630_v18, %v1435_v20 }
 0x19f   :  { %v3775_v26 = vadd.f32 %v3632_v42, %v1448_v11  ;;  %v3778_v44 = vadd.f32 %v3634_v51, %v1461_v7  ;;  %v3781_v25 = vadd.f32 %v3636_v31, %v1474_v10  ;;  %v3784_v35 = vadd.f32 %v3638_v37, %v1487_v24 }
 0x1a0   :  { %v1652_v34 = vmul.f32 %v843_v63, %v4639_v41  ;;  %v1665_v16 = vmul.f32 %v843_v63, %v4640_v36  ;;  %v1678_v38 = vmul.f32 %v843_v63, %v4641_v56  ;;  %v1691_v18 = vmul.f32 %v843_v63, %v4642_v53 }
 0x1a1   :  { %v1704_v42 = vmul.f32 %v843_v63, %v4643_v8  ;;  %v1717_v17 = vmul.f32 %v843_v63, %v4644_v29  ;;  %v1730_v51 = vmul.f32 %v843_v63, %v4645_v47  ;;  %v1743_v31 = vmul.f32 %v843_v63, %v4646_v54 }
 0x1a2   :  { %v3795_v21 = vadd.f32 %v3648_v61, %v1652_v34  ;;  %v3798_v37 = vadd.f32 %v3650_v5, %v1665_v16  ;;  %v3801_v15 = vadd.f32 %v3652_v9, %v1678_v38  ;;  %v3804_v13 = vadd.f32 %v3654_v49, %v1691_v18 }
 0x1a3   :  { %v3807_v20 = vadd.f32 %v3656_v2, %v1704_v42  ;;  %v3810_v11 = vadd.f32 %v3658_v40, %v1717_v17  ;;  %v3813_v63 = vadd.f32 %v3660_v60, %v1730_v51  ;;  %v3816_v61 = vadd.f32 %v3662_v48, %v1743_v31 }
 0x1a4   :  { %v1524_v5 = vmul.f32 %v772_v28, %v4639_v41  ;;  %v1537_v9 = vmul.f32 %v772_v28, %v4640_v36  ;;  %v1550_v7 = vmul.f32 %v772_v28, %v4641_v56  ;;  %v1563_v49 = vmul.f32 %v772_v28, %v4642_v53 }
 0x1a5   :  { %v1576_v2 = vmul.f32 %v772_v28, %v4643_v8  ;;  %v1589_v10 = vmul.f32 %v772_v28, %v4644_v29  ;;  %v1602_v40 = vmul.f32 %v772_v28, %v4645_v47  ;;  %v1615_v60 = vmul.f32 %v772_v28, %v4646_v54 }
 0x1a6   :  { %v3827_v24 = vadd.f32 %v3680_v43, %v1524_v5  ;;  %v3830_v48 = vadd.f32 %v3682_v6, %v1537_v9  ;;  %v3833_v34 = vadd.f32 %v3684_v19, %v1550_v7  ;;  %v3836_v16 = vadd.f32 %v3686_v62, %v1563_v49  ;;  %v4660_v7 = vld [vmem:[#allocation20_spill] sm:$0xff] }
 0x1a7   :  { %v3839_v38 = vadd.f32 %v3688_v46, %v1576_v2  ;;  %v3842_v18 = vadd.f32 %v3690_v32, %v1589_v10  ;;  %v3845_v28 = vadd.f32 %v3692_v30, %v1602_v40  ;;  %v3848_v43 = vadd.f32 %v3694_v1, %v1615_v60 }
 0x1a8   :  { %v1780_v6 = vmul.f32 %v3716_v50, %v4639_v41  ;;  %v1793_v19 = vmul.f32 %v3716_v50, %v4640_v36  ;;  %v1806_v62 = vmul.f32 %v3716_v50, %v4641_v56  ;;  %v1819_v46 = vmul.f32 %v3716_v50, %v4642_v53 }
 0x1a9   :  { %v1832_v32 = vmul.f32 %v3716_v50, %v4643_v8  ;;  %v1845_v30 = vmul.f32 %v3716_v50, %v4644_v29  ;;  %v1858_v1 = vmul.f32 %v3716_v50, %v4645_v47  ;;  %v1871_v41 = vmul.f32 %v3716_v50, %v4646_v54 }
 0x1aa   :  { %v3867_v36 = vadd.f32 %v3731_v52, %v1780_v6  ;;  %v3870_v56 = vadd.f32 %v3734_v59, %v1793_v19  ;;  %v3873_v53 = vadd.f32 %v3737_v39, %v1806_v62  ;;  %v3876_v8 = vadd.f32 %v3740_v3, %v1819_v46  ;;  %v4653_v59 = vld [vmem:[#allocation27_spill] sm:$0xff]  ;;  %v4654_v39 = vld [vmem:[#allocation29_spill] sm:$0xff] }
 0x1ab   :  { %v3879_v29 = vadd.f32 %v3743_v23, %v1832_v32  ;;  %v3882_v47 = vadd.f32 %v3746_v33, %v1845_v30  ;;  %v3885_v50 = vadd.f32 %v3749_v58, %v1858_v1  ;;  %v3888_v52 = vadd.f32 %v3752_v55, %v1871_v41  ;;  %v4655_v3 = vld [vmem:[#allocation11_spill] sm:$0xff]  ;;  %v4656_v23 = vld [vmem:[#allocation8_spill] sm:$0xff]  ;;  %v4657_v33 = vld [vmem:[#allocation9_spill] sm:$0xff] }
 0x1ac   :  { %4647 = vst [vmem:[#allocation10_spill] sm:$0xff] %v3873_v53  ;;  %4648 = vst [vmem:[#allocation44_spill] sm:$0xff] %v3876_v8  ;;  %v1397_v54 = vmul.f32 %v3720_v45, %v4653_v59  ;;  %v1410_v42 = vmul.f32 %v3720_v45, %v4654_v39  ;;  %v1423_v17 = vmul.f32 %v3720_v45, %v4655_v3  ;;  %v4658_v58 = vld [vmem:[#allocation14_spill] sm:$0xff]  ;;  %v4659_v55 = vld [vmem:[#allocation15_spill] sm:$0xff] }
 0x1ad   :  { %4649 = vst [vmem:[#allocation67_spill] sm:$0xff] %v3879_v29  ;;  %4650 = vst [vmem:[#allocation68_spill] sm:$0xff] %v3882_v47  ;;  %v1436_v51 = vmul.f32 %v3720_v45, %v4656_v23  ;;  %v1449_v31 = vmul.f32 %v3720_v45, %v4657_v33  ;;  %v1462_v5 = vmul.f32 %v3720_v45, %v4658_v58  ;;  %v4661_v32 = vld [vmem:[#allocation112_spill] sm:$0xff]  ;;  %v4671_v29 = vld [vmem:[#allocation74_spill] sm:$0xff] }
 0x1ae   :  { %4651 = vst [vmem:[#allocation33_spill] sm:$0xff] %v3885_v50  ;;  %4652 = vst [vmem:[#allocation69_spill] sm:$0xff] %v3888_v52  ;;  %v1475_v9 = vmul.f32 %v3720_v45, %v4659_v55  ;;  %v1488_v49 = vmul.f32 %v3720_v45, %v4660_v7  ;;  %v1400_v2 = vadd.f32 %v3763_v57, %v1397_v54  ;;  %v1353_v30 = vrot.slane %v4661_v32, 2  ;;  %v4662_v57 = vld [vmem:[#allocation102_spill] sm:$0xff] }
 0x1af   :  { %v1413_v10 = vadd.f32 %v3766_v12, %v1410_v42  ;;  %v1426_v40 = vadd.f32 %v3769_v0, %v1423_v17  ;;  %v1439_v60 = vadd.f32 %v3772_v14, %v1436_v51  ;;  %v1452_v6 = vadd.f32 %v3775_v26, %v1449_v31  ;;  %v4665_v14 = vld [vmem:[#allocation104_spill] sm:$0xff]  ;;  %v4667_v42 = vld [vmem:[#allocation107_spill] sm:$0xff] }
 0x1b0   :  { %v1465_v19 = vadd.f32 %v3778_v44, %v1462_v5  ;;  %v1478_v62 = vadd.f32 %v3781_v25, %v1475_v9  ;;  %v1491_v46 = vadd.f32 %v3784_v35, %v1488_v49  ;;  %v1401_v1 = vrot.slane %v1400_v2, 4 }
 0x1b1   :  { %v1414_v45 = vrot.slane %v1413_v10, 4  ;;  %v1427_v41 = vrot.slane %v1426_v40, 4  ;;  %v4663_v12 = vrot.slane %v4662_v57, 1  ;;  %v1303_v0 = vrot.slane %v3699_v22, 1 }
 0x1b2   :  { %v4666_v26 = vrot.slane %v4665_v14, 2  ;;  %v4668_v25 = vrot.slane %v4667_v42, 2  ;;  %v1402_v31 = vadd.f32 %v1401_v1, %v1400_v2  ;;  %v1316_v49 = vrot.slane %v3704_v4, 1 }
 0x1b3   :  { %v3918_v54 = vadd.f32 %v4663_v12, %v4662_v57  ;;  %v1415_v5 = vadd.f32 %v1414_v45, %v1413_v10  ;;  %v1428_v9 = vadd.f32 %v1427_v41, %v1426_v40  ;;  %v1440_v52 = vrot.slane %v1439_v60, 4 }
 0x1b4   :  { %v1328_v44 = vadd.f32 %v4666_v26, %v4665_v14  ;;  %v1341_v35 = vadd.f32 %v4668_v25, %v4667_v42  ;;  %v1453_v57 = vrot.slane %v1452_v6, 4  ;;  %v1466_v12 = vrot.slane %v1465_v19, 4 }
 0x1b5   :  { %4664 = vst [vmem:[#allocation70_spill] sm:$0xff] %v3918_v54  ;;  %v3930_v54 = vadd.f32 %v1353_v30, %v4661_v32  ;;  %v1403_v50 = vrot.slane %v1402_v31, 2  ;;  %v1416_v47 = vrot.slane %v1415_v5, 2  ;;  %v1429_v14 = vrot.slane %v1428_v9, 2 }
 0x1b6   :  { %v3933_v26 = vadd.f32 %v1303_v0, %v3699_v22  ;;  %v1329_v42 = vrot.slane %v1328_v44, 1  ;;  %v1342_v25 = vrot.slane %v1341_v35, 1  ;;  %v1479_v51 = vrot.slane %v1478_v62, 4 }
 0x1b7   :  { %v1404_v2 = vadd.f32 %v1403_v50, %v1402_v31  ;;  %v1417_v10 = vadd.f32 %v1416_v47, %v1415_v5  ;;  %v1430_v40 = vadd.f32 %v1429_v14, %v1428_v9  ;;  %v1492_v1 = vrot.slane %v1491_v46, 4 }
 0x1b8   :  { %4670 = vst [vmem:[#allocation71_spill] sm:$0xff] %v3933_v26  ;;  %v1441_v45 = vadd.f32 %v1440_v52, %v1439_v60  ;;  %v1454_v41 = vadd.f32 %v1453_v57, %v1452_v6  ;;  %v1467_v17 = vadd.f32 %v1466_v12, %v1465_v19  ;;  %v847_v32 = vadd.f32 %v4671_v29, %v3261_v27 }
 0x1b9   :  { %v3938_v30 = vadd.f32 %v1316_v49, %v3704_v4  ;;  %v1405_v8 = vrot.slane %v1404_v2, 1  ;;  %v1418_v53 = vrot.slane %v1417_v10, 1  ;;  %v1431_v22 = vrot.slane %v1430_v40, 1 }
 0x1ba   :  { %v3940_v0 = vadd.f32 %v1329_v42, %v1328_v44  ;;  %v3942_v26 = vadd.f32 %v1342_v25, %v1341_v35  ;;  %v1480_v50 = vadd.f32 %v1479_v51, %v1478_v62  ;;  %v1493_v6 = vadd.f32 %v1492_v1, %v1491_v46 }
 0x1bb   :  { %v1406_v31 = vadd.f32 %v1405_v8, %v1404_v2  ;;  %v1419_v52 = vadd.f32 %v1418_v53, %v1417_v10  ;;  %v1432_v60 = vadd.f32 %v1431_v22, %v1430_v40  ;;  %v1442_v19 = vrot.slane %v1441_v45, 2 }
 0x1bc   :  { %v1455_v5 = vrot.slane %v1454_v41, 2  ;;  %v1468_v29 = vrot.slane %v1467_v17, 2  ;;  %v1653_v4 = vmul.f32 %v847_v32, %v4653_v59  ;;  %v1666_v49 = vmul.f32 %v847_v32, %v4654_v39 }
 0x1bd   :  { %v1498_v9 = vsel %vm979_vm1, %v1406_v31, %v1419_v52  ;;  %v1679_v44 = vmul.f32 %v847_v32, %v4655_v3  ;;  %v1692_v35 = vmul.f32 %v847_v32, %v4656_v23  ;;  %v1705_v8 = vmul.f32 %v847_v32, %v4657_v33 }
 0x1be   :  { %v3951_v57 = vsel %vm981_vm2, %v1498_v9, %v1432_v60  ;;  %v1656_v53 = vadd.f32 %v3795_v21, %v1653_v4  ;;  %v1718_v62 = vmul.f32 %v847_v32, %v4658_v58  ;;  %v1669_v46 = vadd.f32 %v3798_v37, %v1666_v49 }
 0x1bf   :  { %v1682_v51 = vadd.f32 %v3801_v15, %v1679_v44  ;;  %v1695_v12 = vadd.f32 %v3804_v13, %v1692_v35  ;;  %v1731_v14 = vmul.f32 %v847_v32, %v4659_v55  ;;  %v1708_v25 = vadd.f32 %v3807_v20, %v1705_v8 }
 0x1c0   :  { %v1657_v42 = vrot.slane %v1656_v53, 4  ;;  %v1721_v2 = vadd.f32 %v3810_v11, %v1718_v62  ;;  %v1744_v10 = vmul.f32 %v847_v32, %v4660_v7  ;;  %v1670_v21 = vrot.slane %v1669_v46, 4  ;;  %v4672_v11 = vld [vmem:[#allocation75_spill] sm:$0xff] }
 0x1c1   :  { %v1683_v40 = vrot.slane %v1682_v51, 4  ;;  %v1696_v1 = vrot.slane %v1695_v12, 4  ;;  %v1734_v22 = vadd.f32 %v3813_v63, %v1731_v14  ;;  %v1481_v31 = vrot.slane %v1480_v50, 2 }
 0x1c2   :  { %v1494_v37 = vrot.slane %v1493_v6, 2  ;;  %v1658_v52 = vadd.f32 %v1657_v42, %v1656_v53  ;;  %v1747_v15 = vadd.f32 %v3816_v61, %v1744_v10  ;;  %v1443_v13 = vadd.f32 %v1442_v19, %v1441_v45 }
 0x1c3   :  { %v1671_v60 = vadd.f32 %v1670_v21, %v1669_v46  ;;  %v1684_v4 = vadd.f32 %v1683_v40, %v1682_v51  ;;  %v1709_v9 = vrot.slane %v1708_v25, 4  ;;  %v1697_v20 = vadd.f32 %v1696_v1, %v1695_v12 }
 0x1c4   :  { %v1659_v49 = vrot.slane %v1658_v52, 2  ;;  %v1722_v44 = vrot.slane %v1721_v2, 4  ;;  %v776_v32 = vadd.f32 %v4672_v11, %v3261_v27  ;;  %v1456_v35 = vadd.f32 %v1455_v5, %v1454_v41 }
 0x1c5   :  { %v1672_v8 = vrot.slane %v1671_v60, 2  ;;  %v1685_v62 = vrot.slane %v1684_v4, 2  ;;  %v1735_v47 = vrot.slane %v1734_v22, 4  ;;  %v3967_v63 = vadd.f32 %v1468_v29, %v1467_v17 }
 0x1c6   :  { %v3969_v14 = vadd.f32 %v1481_v31, %v1480_v50  ;;  %v3971_v53 = vadd.f32 %v1494_v37, %v1493_v6  ;;  %v1660_v61 = vadd.f32 %v1659_v49, %v1658_v52  ;;  %v1444_v45 = vrot.slane %v1443_v13, 1 }
 0x1c7   :  { %v1673_v19 = vadd.f32 %v1672_v8, %v1671_v60  ;;  %v1686_v46 = vadd.f32 %v1685_v62, %v1684_v4  ;;  %v1710_v51 = vadd.f32 %v1709_v9, %v1708_v25  ;;  %v1698_v42 = vrot.slane %v1697_v20, 2 }
 0x1c8   :  { %v1661_v12 = vrot.slane %v1660_v61, 1  ;;  %v1723_v10 = vadd.f32 %v1722_v44, %v1721_v2  ;;  %v1748_v21 = vrot.slane %v1747_v15, 4  ;;  %v1457_v40 = vrot.slane %v1456_v35, 1 }
 0x1c9   :  { %v1674_v41 = vrot.slane %v1673_v19, 1  ;;  %v1687_v5 = vrot.slane %v1686_v46, 1  ;;  %v1736_v1 = vadd.f32 %v1735_v47, %v1734_v22  ;;  %v1470_v17 = vrot.slane %v3967_v63, 1 }
 0x1ca   :  { %v1483_v50 = vrot.slane %v3969_v14, 1  ;;  %v1496_v6 = vrot.slane %v3971_v53, 1  ;;  %v1662_v29 = vadd.f32 %v1661_v12, %v1660_v61  ;;  %v3976_v31 = vadd.f32 %v1444_v45, %v1443_v13 }
 0x1cb   :  { %v1675_v37 = vadd.f32 %v1674_v41, %v1673_v19  ;;  %v1688_v52 = vadd.f32 %v1687_v5, %v1686_v46  ;;  %v1711_v25 = vrot.slane %v1710_v51, 2  ;;  %v1699_v60 = vadd.f32 %v1698_v42, %v1697_v20 }
 0x1cc   :  { %v1724_v4 = vrot.slane %v1723_v10, 2  ;;  %v1749_v2 = vadd.f32 %v1748_v21, %v1747_v15  ;;  %v1525_v9 = vmul.f32 %v776_v32, %v4653_v59  ;;  %v1737_v49 = vrot.slane %v1736_v1, 2 }
 0x1cd   :  { %v1754_v47 = vsel %vm979_vm1, %v1662_v29, %v1675_v37  ;;  %v1538_v22 = vmul.f32 %v776_v32, %v4654_v39  ;;  %v1551_v44 = vmul.f32 %v776_v32, %v4655_v3  ;;  %v1564_v8 = vmul.f32 %v776_v32, %v4656_v23 }
 0x1ce   :  { %v3983_v11 = vsel %vm981_vm2, %v1754_v47, %v1688_v52  ;;  %v1528_v13 = vadd.f32 %v3827_v24, %v1525_v9  ;;  %v1577_v20 = vmul.f32 %v776_v32, %v4657_v33  ;;  %v1590_v61 = vmul.f32 %v776_v32, %v4658_v58 }
 0x1cf   :  { %v1541_v15 = vadd.f32 %v3830_v48, %v1538_v22  ;;  %v1554_v62 = vadd.f32 %v3833_v34, %v1551_v44  ;;  %v1603_v45 = vmul.f32 %v776_v32, %v4659_v55  ;;  %v1567_v46 = vadd.f32 %v3836_v16, %v1564_v8 }
 0x1d0   :  { %v1529_v19 = vrot.slane %v1528_v13, 4  ;;  %v1580_v12 = vadd.f32 %v3839_v38, %v1577_v20  ;;  %v1616_v42 = vmul.f32 %v776_v32, %v4660_v7  ;;  %v1593_v41 = vadd.f32 %v3842_v18, %v1590_v61 }
 0x1d1   :  { %v1542_v24 = vrot.slane %v1541_v15, 4  ;;  %v1555_v21 = vrot.slane %v1554_v62, 4  ;;  %v1606_v5 = vadd.f32 %v3845_v28, %v1603_v45  ;;  %v1712_v48 = vadd.f32 %v1711_v25, %v1710_v51 }
 0x1d2   :  { %v1530_v29 = vadd.f32 %v1529_v19, %v1528_v13  ;;  %v1568_v34 = vrot.slane %v1567_v46, 4  ;;  %v3998_v37 = vadd.f32 %v3848_v43, %v1616_v42  ;;  %v4000_v52 = vadd.f32 %v1457_v40, %v1456_v35 }
 0x1d3   :  { %v1543_v9 = vadd.f32 %v1542_v24, %v1541_v15  ;;  %v1556_v16 = vadd.f32 %v1555_v21, %v1554_v62  ;;  %v1581_v47 = vrot.slane %v1580_v12, 4  ;;  %v4002_v38 = vadd.f32 %v1724_v4, %v1723_v10 }
 0x1d4   :  { %v1531_v32 = vrot.slane %v1530_v29, 2  ;;  %v1594_v22 = vrot.slane %v1593_v41, 4  ;;  %v1607_v44 = vrot.slane %v1606_v5, 4  ;;  %v1700_v8 = vrot.slane %v1699_v60, 1 }
 0x1d5   :  { %v1750_v18 = vrot.slane %v1749_v2, 2  ;;  %v1544_v20 = vrot.slane %v1543_v9, 2  ;;  %v1569_v28 = vadd.f32 %v1568_v34, %v1567_v46  ;;  %v4005_v51 = vadd.f32 %v1470_v17, %v3967_v63  ;;  %v4673_v46 = vld [vmem:[#allocation48_spill] sm:$0xff] }
 0x1d6   :  { %v1713_v25 = vrot.slane %v1712_v48, 1  ;;  %v4007_v43 = vadd.f32 %v1737_v49, %v1736_v1  ;;  %v1532_v35 = vadd.f32 %v1531_v32, %v1530_v29  ;;  %v4010_v40 = vadd.f32 %v1483_v50, %v3969_v14 }
 0x1d7   :  { %v1545_v13 = vadd.f32 %v1544_v20, %v1543_v9  ;;  %v1557_v10 = vrot.slane %v1556_v16, 2  ;;  %v1582_v4 = vadd.f32 %v1581_v47, %v1580_v12  ;;  %v1726_v15 = vrot.slane %v4002_v38, 1 }
 0x1d8   :  { %v1533_v62 = vrot.slane %v1532_v35, 1  ;;  %v1595_v61 = vadd.f32 %v1594_v22, %v1593_v41  ;;  %v4013_v45 = vadd.f32 %v1607_v44, %v1606_v5  ;;  %v4015_v19 = vadd.f32 %v1700_v8, %v1699_v60 }
 0x1d9   :  { %v4017_v63 = vadd.f32 %v1750_v18, %v1749_v2  ;;  %v1546_v17 = vrot.slane %v1545_v13, 1  ;;  %v1570_v1 = vrot.slane %v1569_v28, 2  ;;  %v4019_v49 = vadd.f32 %v1713_v25, %v1712_v48  ;;  %v4676_v25 = vld [vmem:[#allocation67_spill] sm:$0xff] }
 0x1da   :  { %v1739_v14 = vrot.slane %v4007_v43, 1  ;;  %v1534_v50 = vadd.f32 %v1533_v62, %v1532_v35  ;;  %v849_v12 = vadd.f32 %v4673_v46, %v3261_v27  ;;  %v4024_v24 = vadd.f32 %v1557_v10, %v1556_v16  ;;  %v4677_v35 = vld [vmem:[#allocation68_spill] sm:$0xff]  ;;  %v4678_v10 = vld [vmem:[#allocation33_spill] sm:$0xff] }
 0x1db   :  { %v1547_v42 = vadd.f32 %v1546_v17, %v1545_v13  ;;  %v1583_v21 = vrot.slane %v1582_v4, 2  ;;  %v1620_v41 = vrot.slane %v3998_v37, 4  ;;  %v1596_v60 = vrot.slane %v1595_v61, 2  ;;  %v4679_v62 = vld [vmem:[#allocation69_spill] sm:$0xff] }
 0x1dc   :  { %v1609_v2 = vrot.slane %v4013_v45, 2  ;;  %v1781_v5 = vmul.f32 %v849_v12, %v4653_v59  ;;  %v1794_v48 = vmul.f32 %v849_v12, %v4654_v39  ;;  %v4030_v29 = vadd.f32 %v1570_v1, %v1569_v28  ;;  %v4674_v59 = vld [vmem:[#allocation10_spill] sm:$0xff]  ;;  %v4675_v39 = vld [vmem:[#allocation44_spill] sm:$0xff] }
 0x1dd   :  { %v4033_v34 = vsel %vm979_vm1, %v1534_v50, %v1547_v42  ;;  %v1807_v27 = vmul.f32 %v849_v12, %v4655_v3  ;;  %v1820_v9 = vmul.f32 %v849_v12, %v4656_v23  ;;  %v1833_v32 = vmul.f32 %v849_v12, %v4657_v33 }
 0x1de   :  { %v1784_v16 = vadd.f32 %v3867_v36, %v1781_v5  ;;  %v1797_v47 = vadd.f32 %v3870_v56, %v1794_v48  ;;  %v1846_v22 = vmul.f32 %v849_v12, %v4658_v58  ;;  %v1859_v18 = vmul.f32 %v849_v12, %v4659_v55 }
 0x1df   :  { %v1810_v44 = vadd.f32 %v4674_v59, %v1807_v27  ;;  %v1823_v8 = vadd.f32 %v4675_v39, %v1820_v9  ;;  %v1872_v20 = vmul.f32 %v849_v12, %v4660_v7  ;;  %v1836_v23 = vadd.f32 %v4676_v25, %v1833_v32 }
 0x1e0   :  { %v1785_v28 = vrot.slane %v1784_v16, 4  ;;  %v1798_v3 = vrot.slane %v1797_v47, 4  ;;  %v1849_v36 = vadd.f32 %v4677_v35, %v1846_v22  ;;  %v1862_v33 = vadd.f32 %v4678_v10, %v1859_v18 }
 0x1e1   :  { %v1811_v13 = vrot.slane %v1810_v44, 4  ;;  %v1824_v56 = vrot.slane %v1823_v8, 4  ;;  %v1875_v58 = vadd.f32 %v4679_v62, %v1872_v20  ;;  %v1837_v50 = vrot.slane %v1836_v23, 4 }
 0x1e2   :  { %v1786_v17 = vadd.f32 %v1785_v28, %v1784_v16  ;;  %v1799_v1 = vadd.f32 %v1798_v3, %v1797_v47  ;;  %v1850_v46 = vrot.slane %v1849_v36, 4  ;;  %v1584_v42 = vadd.f32 %v1583_v21, %v1582_v4 }
 0x1e3   :  { %v1812_v55 = vadd.f32 %v1811_v13, %v1810_v44  ;;  %v1825_v5 = vadd.f32 %v1824_v56, %v1823_v8  ;;  %v1863_v7 = vrot.slane %v1862_v33, 4  ;;  %v1838_v27 = vadd.f32 %v1837_v50, %v1836_v23 }
 0x1e4   :  { %v1787_v12 = vrot.slane %v1786_v17, 2  ;;  %v1800_v48 = vrot.slane %v1799_v1, 2  ;;  %v1851_v9 = vadd.f32 %v1850_v46, %v1849_v36  ;;  %v1597_v32 = vadd.f32 %v1596_v60, %v1595_v61 }
 0x1e5   :  { %v1813_v22 = vrot.slane %v1812_v55, 2  ;;  %v1826_v59 = vrot.slane %v1825_v5, 2  ;;  %v1864_v39 = vadd.f32 %v1863_v7, %v1862_v33  ;;  %v1839_v35 = vrot.slane %v1838_v27, 2 }
 0x1e6   :  { %v1788_v25 = vadd.f32 %v1787_v12, %v1786_v17  ;;  %v1801_v18 = vadd.f32 %v1800_v48, %v1799_v1  ;;  %v1876_v20 = vrot.slane %v1875_v58, 4  ;;  %v1852_v28 = vrot.slane %v1851_v9, 2 }
 0x1e7   :  { %v1814_v16 = vadd.f32 %v1813_v22, %v1812_v55  ;;  %v1827_v47 = vadd.f32 %v1826_v59, %v1825_v5  ;;  %v1865_v3 = vrot.slane %v1864_v39, 2  ;;  %v4050_v4 = vadd.f32 %v1620_v41, %v3998_v37 }
 0x1e8   :  { %v1789_v21 = vrot.slane %v1788_v25, 1  ;;  %v1802_v44 = vrot.slane %v1801_v18, 1  ;;  %v1840_v8 = vadd.f32 %v1839_v35, %v1838_v27  ;;  %v1559_v23 = vrot.slane %v4024_v24, 1 }
 0x1e9   :  { %v1572_v61 = vrot.slane %v4030_v29, 1  ;;  %v1585_v60 = vrot.slane %v1584_v42, 1  ;;  %v4055_v36 = vadd.f32 %v1609_v2, %v4013_v45  ;;  %v1598_v13 = vrot.slane %v1597_v32, 1 }
 0x1ea   :  { %v1790_v56 = vadd.f32 %v1789_v21, %v1788_v25  ;;  %v1803_v10 = vadd.f32 %v1802_v44, %v1801_v18  ;;  %v4057_v33 = vadd.f32 %v1876_v20, %v1875_v58  ;;  %v1815_v62 = vrot.slane %v1814_v16, 1  ;;  %v4685_v25 = vld [vmem:[#allocation89_spill] sm:$0xff] }
 0x1eb   :  { %v1828_v17 = vrot.slane %v1827_v47, 1  ;;  %v1853_v37 = vadd.f32 %v1852_v28, %v1851_v9  ;;  %v4059_v41 = vadd.f32 %v1865_v3, %v1864_v39  ;;  %v4064_v1 = vadd.f32 %v1726_v15, %v4002_v38  ;;  %v4684_v39 = vld [vmem:[#allocation108_spill] sm:$0xff]  ;;  %v4689_v3 = vld [vmem:[#allocation71_spill] sm:$0xff]  ;;  %v4690_v21 = vld [vmem:[#allocation109_spill] sm:$0xff] }
 0x1ec   :  { %v1752_v50 = vrot.slane %v4017_v63, 1  ;;  %v1841_v46 = vrot.slane %v1840_v8, 1  ;;  %v4068_v45 = vsel %vm979_vm1, %v1790_v56, %v1803_v10  ;;  %v4073_v2 = vadd.f32 %v1739_v14, %v4007_v43 }
 0x1ed   :  { %v1560_v58 = vadd.f32 %v1559_v23, %v4024_v24  ;;  %v1611_v55 = vrot.slane %v4055_v36, 1  ;;  %v1622_v5 = vrot.slane %v4050_v4, 2  ;;  %v1573_v38 = vadd.f32 %v1572_v61, %v4030_v29  ;;  %v4680_v29 = vld [vmem:[#allocation103_spill] sm:$0xff]  ;;  %v4691_v23 = vld [vmem:[#allocation110_spill] sm:$0xff] }
 0x1ee   :  { %v4079_v15 = vadd.f32 %v1585_v60, %v1584_v42  ;;  %v4081_v7 = vadd.f32 %v1598_v13, %v1597_v32  ;;  %v1878_v12 = vrot.slane %v4057_v33, 2  ;;  %v4084_v48 = vadd.f32 %v1815_v62, %v1814_v16  ;;  %v4682_v32 = vld [vmem:[#allocation101_spill] sm:$0xff] }
 0x1ef   :  { %v4086_v27 = vadd.f32 %v1828_v17, %v1827_v47  ;;  %v1854_v43 = vrot.slane %v1853_v37, 1  ;;  %v1867_v14 = vrot.slane %v4059_v41, 1  ;;  %v4089_v24 = vadd.f32 %v1841_v46, %v1840_v8  ;;  %v4687_v16 = vld [vmem:[#allocation113_spill] sm:$0xff] }
 0x1f0   :  { %v4681_v42 = vrot.slane %v4680_v29, 1  ;;  %v4683_v22 = vrot.slane %v4682_v32, 2  ;;  %v1115_v18 = vsel %vm981_vm2, %v4685_v25, %v4684_v39  ;;  %v4686_v35 = vrot.slane %v3930_v54, 1  ;;  %v4692_v13 = vld [vmem:[#allocation49_spill] sm:$0xff]  ;;  %v4697_v39 = vld [vmem:[#allocation70_spill] sm:$0xff] }
 0x1f1   :  { %v4688_v47 = vrot.slane %v4687_v16, 2  ;;  %v1371_v44 = vsel %vm981_vm2, %v4690_v21, %v4689_v3  ;;  %v1116_v61 = vsel %vm983_vm3, %v1115_v18, %v4691_v23  ;;  %v4693_v56 = vrot.slane %v4692_v13, 1  ;;  %v4698_v18 = vld [vmem:[#allocation79_spill] sm:$0xff] }
 0x1f2   :  { %v1100_v9 = vadd.f32 %v4681_v42, %v4680_v29  ;;  %v1111_v59 = vadd.f32 %v4683_v22, %v4682_v32  ;;  %v1356_v20 = vadd.f32 %v4686_v35, %v3930_v54  ;;  %v1372_v60 = vsel %vm983_vm3, %v1371_v44, %v3938_v30  ;;  %v4694_v54 = vld [vmem:[#allocation111_spill] sm:$0xff]  ;;  %v4695_v29 = vld [vmem:[#allocation50_spill] sm:$0xff]  ;;  %v4696_v42 = vld [vmem:[#allocation76_spill] sm:$0xff] }
 0x1f3   :  { %v1367_v28 = vadd.f32 %v4688_v47, %v4687_v16  ;;  %v978_v10 = vadd.f32 %v4693_v56, %v4692_v13  ;;  %v1117_v62 = vsel %vm985_vm4, %v1116_v61, %v4694_v54  ;;  %v1373_v46 = vsel %vm985_vm4, %v1372_v60, %v3940_v0  ;;  %v4699_v0 = vld [vmem:[#allocation80_spill] sm:$0xff]  ;;  %v4703_v56 = vld [vmem:[#allocation99_spill] sm:$0xff] }
 0x1f4   :  { %v1112_v8 = vrot.slane %v1111_v59, 1  ;;  %v984_v32 = vsel %vm983_vm3, %v4696_v42, %v4695_v29  ;;  %v1118_v25 = vsel %vm987_vm5, %v1117_v62, %v4697_v39  ;;  %v1374_v30 = vsel %vm987_vm5, %v1373_v46, %v3942_v26 }
 0x1f5   :  { %v1368_v17 = vrot.slane %v1367_v28, 1  ;;  %v986_v35 = vsel %vm985_vm4, %v984_v32, %v4698_v18  ;;  %v1119_v16 = vsel %vm989_vm6, %v1118_v25, %v1100_v9  ;;  %v1375_v3 = vsel %vm989_vm6, %v1374_v30, %v1356_v20  ;;  %v4701_v9 = vld [vmem:[#allocation98_spill] sm:$0xff]  ;;  %v4702_v20 = vld [vmem:[#allocation77_spill] sm:$0xff] }
 0x1f6   :  { %v1113_v22 = vadd.f32 %v1112_v8, %v1111_v59  ;;  %v988_v21 = vsel %vm987_vm5, %v986_v35, %v4699_v0  ;;  %v4133_v44 = vadd.f32 %v1854_v43, %v1853_v37  ;;  %v4700_v8 = vld [vmem:[#allocation82_spill] sm:$0xff]  ;;  %v2578_v13 = vmov 0.0  }
 0x1f7   :  { %v1369_v47 = vadd.f32 %v1368_v17, %v1367_v28  ;;  %v990_v23 = vsel %vm989_vm6, %v988_v21, %v4700_v8  ;;  %1983 = vmatprep.mubr.f32.mxu0 %v2578_v13  ;;  %v1244_v28 = vsel %vm983_vm3, %v4702_v20, %v4701_v9  ;;  %2072 = vmatprep.mubr.f32.mxu1 %v2578_v13  ;;  %v4704_v54 = vrot.slane %v4703_v56, 1  ;;  %v4705_v17 = vld [vmem:[#allocation100_spill] sm:$0xff]  ;;  %v4707_v30 = vld [vmem:[#allocation106_spill] sm:$0xff] }
 0x1f8   :  { %v1120_v59 = vsel %vm991_vm7, %v1119_v16, %v1113_v22  ;;  %v992_v60 = vsel %vm991_vm7, %v990_v23, %v978_v10  ;;  %v1245_v46 = vsel %vm985_vm4, %v1244_v28, %v4705_v17  ;;  %v4706_v10 = vld [vmem:[#allocation105_spill] sm:$0xff]  ;;  %v1612_v32 = vadd.f32 %v1611_v55, %v4055_v36 }
 0x1f9   :  { %v1121_v61 = vrot.slane %v1120_v59, 4  ;;  %v1376_v26 = vsel %vm991_vm7, %v1375_v3, %v1369_v47  ;;  %v993_v43 = vrot.slane %v992_v60, 4  ;;  %v1241_v62 = vadd.f32 %v4704_v54, %v4703_v56 }
 0x1fa   :  { %v1377_v37 = vrot.slane %v1376_v26, 4  ;;  %v1246_v42 = vsel %vm987_vm5, %v1245_v46, %v4706_v10  ;;  %v1623_v22 = vadd.f32 %v1622_v5, %v4050_v4  ;;  %v1627_v35 = vsel %vm981_vm2, %v4033_v34, %v1560_v58 }
 0x1fb   :  { %v1122_v29 = vmax.f32 %v1120_v59, %v1121_v61  ;;  %v994_v25 = vmax.f32 %v992_v60, %v993_v43  ;;  %v1247_v18 = vsel %vm989_vm6, %v1246_v42, %v4707_v30  ;;  %v1628_v0 = vsel %vm983_vm3, %v1627_v35, %v1573_v38 }
 0x1fc   :  { %v1378_v39 = vmax.f32 %v1376_v26, %v1377_v37  ;;  %v1248_v47 = vsel %vm991_vm7, %v1247_v18, %v1241_v62  ;;  %v1624_v3 = vrot.slane %v1623_v22, 1  ;;  %v1629_v4 = vsel %vm985_vm4, %v1628_v0, %v4079_v15 }
 0x1fd   :  { %v1123_v16 = vrot.slane %v1122_v29, 2  ;;  %v995_v8 = vrot.slane %v994_v25, 2  ;;  %v1249_v23 = vrot.slane %v1248_v47, 4  ;;  %v1630_v5 = vsel %vm987_vm5, %v1629_v4, %v4081_v7 }
 0x1fe   :  { %v1379_v21 = vrot.slane %v1378_v39, 2  ;;  %v1625_v55 = vadd.f32 %v1624_v3, %v1623_v22  ;;  %v1868_v34 = vadd.f32 %v1867_v14, %v4059_v41  ;;  %v1631_v38 = vsel %vm989_vm6, %v1630_v5, %v1612_v32 }
 0x1ff   :  { %v1124_v36 = vmax.f32 %v1122_v29, %v1123_v16  ;;  %v996_v61 = vmax.f32 %v994_v25, %v995_v8  ;;  %v1250_v9 = vmax.f32 %v1248_v47, %v1249_v23  ;;  %v1879_v15 = vadd.f32 %v1878_v12, %v4057_v33 }
 0x200   :  { %v1380_v58 = vmax.f32 %v1378_v39, %v1379_v21  ;;  %v1632_v28 = vsel %vm991_vm7, %v1631_v38, %v1625_v55  ;;  %v1883_v7 = vsel %vm981_vm2, %v4068_v45, %v4084_v48  ;;  %v1497_v17 = vadd.f32 %v1496_v6, %v3971_v53 }
 0x201   :  { %v1125_v20 = vrot.slane %v1124_v36, 1  ;;  %v997_v43 = vrot.slane %v996_v61, 1  ;;  %v1251_v56 = vrot.slane %v1250_v9, 2  ;;  %v1633_v41 = vrot.slane %v1632_v28, 4 }
 0x202   :  { %v1381_v37 = vrot.slane %v1380_v58, 1  ;;  %v1880_v54 = vrot.slane %v1879_v15, 1  ;;  %v1884_v62 = vsel %vm983_vm3, %v1883_v7, %v4086_v27  ;;  %v1500_v48 = vsel %vm983_vm3, %v3951_v57, %v3976_v31 }
 0x203   :  { %v1126_v14 = vmax.f32 %v1124_v36, %v1125_v20  ;;  %v998_v29 = vmax.f32 %v996_v61, %v997_v43  ;;  %v1252_v33 = vmax.f32 %v1250_v9, %v1251_v56  ;;  %v1634_v12 = vmax.f32 %v1632_v28, %v1633_v41 }
 0x204   :  { %v1382_v46 = vmax.f32 %v1380_v58, %v1381_v37  ;;  %v1881_v42 = vadd.f32 %v1880_v54, %v1879_v15  ;;  %v1885_v45 = vsel %vm985_vm4, %v1884_v62, %v4089_v24  ;;  %v1501_v6 = vsel %vm985_vm4, %v1500_v48, %v4000_v52 }
 0x205   :  { %v1127_v10 = vsub.f32 %v1120_v59, %v1126_v14  ;;  %v999_v22 = vsub.f32 %v992_v60, %v998_v29  ;;  %v1253_v27 = vrot.slane %v1252_v33, 1  ;;  %v1635_v39 = vrot.slane %v1634_v12, 2 }
 0x206   :  { %v1383_v32 = vsub.f32 %v1376_v26, %v1382_v46  ;;  %v1886_v53 = vsel %vm987_vm5, %v1885_v45, %v4133_v44  ;;  %v1753_v59 = vadd.f32 %v1752_v50, %v4017_v63  ;;  %v1502_v31 = vsel %vm987_vm5, %v1501_v6, %v4005_v51 }
 0x207   :  { %v1128_v25 = vmul.f32 1.442695, %v1127_v10  ;;  %v1000_v30 = vmul.f32 1.442695, %v999_v22  ;;  %v1254_v18 = vmax.f32 %v1252_v33, %v1253_v27  ;;  %v1636_v35 = vmax.f32 %v1634_v12, %v1635_v39 }
 0x208   :  { %v1384_v24 = vmul.f32 1.442695, %v1383_v32  ;;  %v1887_v57 = vsel %vm989_vm6, %v1886_v53, %v1868_v34  ;;  %v1756_v44 = vsel %vm983_vm3, %v3983_v11, %v4015_v19  ;;  %v1503_v50 = vsel %vm989_vm6, %v1502_v31, %v4010_v40 }
 0x209   :  { %2494 = vpow2.f32 %v1128_v25  ;;  %v1255_v52 = vsub.f32 %v1248_v47, %v1254_v18  ;;  %v1637_v26 = vrot.slane %v1636_v35, 1  ;;  %v1888_v60 = vsel %vm991_vm7, %v1887_v57, %v1881_v42 }
 0x20a   :  { %2496 = vpow2.f32 %v1384_v24  ;;  %v1889_v63 = vrot.slane %v1888_v60, 4  ;;  %v1757_v16 = vsel %vm985_vm4, %v1756_v44, %v4019_v49  ;;  %v1504_v51 = vsel %vm991_vm7, %v1503_v50, %v1497_v17 }
 0x20b   :  { %2498 = vpow2.f32 %v1000_v30  ;;  %v1256_v3 = vmul.f32 1.442695, %v1255_v52  ;;  %v1638_v0 = vmax.f32 %v1636_v35, %v1637_v26  ;;  %v1758_v11 = vsel %vm987_vm5, %v1757_v16, %v4064_v1 }
 0x20c   :  { %v1890_v19 = vmax.f32 %v1888_v60, %v1889_v63  ;;  %v1505_v47 = vrot.slane %v1504_v51, 4  ;;  %v1759_v21 = vsel %vm989_vm6, %v1758_v11, %v4073_v2 }
 0x20d   :  { %2500 = vpow2.f32 %v1256_v3  ;;  %v1639_v8 = vsub.f32 %v1632_v28, %v1638_v0  ;;  %v1760_v23 = vsel %vm991_vm7, %v1759_v21, %v1753_v59 }
 0x20e   :  { %v1891_v40 = vrot.slane %v1890_v19, 2  ;;  %v1506_v4 = vmax.f32 %v1504_v51, %v1505_v47  ;;  %v1761_v36 = vrot.slane %v1760_v23, 4 }
 0x20f   :  { %v1640_v49 = vmul.f32 1.442695, %v1639_v8 }
 0x210   :  { %v1892_v55 = vmax.f32 %v1890_v19, %v1891_v40  ;;  %v1507_v5 = vrot.slane %v1506_v4, 2  ;;  %v1762_v34 = vmax.f32 %v1760_v23, %v1761_v36 }
 0x211   :  { %2502 = vpow2.f32 %v1640_v49 }
 0x212   :  { %v1893_v1 = vrot.slane %v1892_v55, 1  ;;  %v1508_v61 = vmax.f32 %v1506_v4, %v1507_v5  ;;  %v1763_v9 = vrot.slane %v1762_v34, 2 }
 0x213   :  { %v4209_v58 = vpop.eup %2494 }
 0x214   :  { %v4211_v38 = vpop.eup %2496  ;;  %v1130_v2 = vrot.slane %v4209_v58, 4  ;;  %v1894_v15 = vmax.f32 %v1892_v55, %v1893_v1  ;;  %v1509_v7 = vrot.slane %v1508_v61, 1  ;;  %v1764_v37 = vmax.f32 %v1762_v34, %v1763_v9 }
 0x215   :  { %v4214_v20 = vpop.eup %2498  ;;  %v1386_v28 = vrot.slane %v4211_v38, 4 }
 0x216   :  { %v1131_v43 = vadd.f32 %v4209_v58, %v1130_v2  ;;  %v1002_v56 = vrot.slane %v4214_v20, 4  ;;  %v1895_v14 = vsub.f32 %v1888_v60, %v1894_v15  ;;  %v1510_v54 = vmax.f32 %v1508_v61, %v1509_v7  ;;  %v871_v2 = vld [vmem:[%s4371_s6] sm:$0xff] }
 0x217   :  { %v1387_v41 = vadd.f32 %v4211_v38, %v1386_v28  ;;  %v1765_v62 = vrot.slane %v1764_v37, 1  ;;  %v4220_v17 = vpop.eup %2500 }
 0x218   :  { %v1132_v46 = vrot.slane %v1131_v43, 2  ;;  %v1003_v29 = vadd.f32 %v4214_v20, %v1002_v56  ;;  %v1258_v12 = vrot.slane %v4220_v17, 4  ;;  %v1896_v10 = vmul.f32 1.442695, %v1895_v14 }
 0x219   :  { %v1388_v33 = vrot.slane %v1387_v41, 2  ;;  %v1511_v42 = vsub.f32 %v1504_v51, %v1510_v54  ;;  %v1766_v32 = vmax.f32 %v1764_v37, %v1765_v62 }
 0x21a   :  { %v1133_v45 = vadd.f32 %v1132_v46, %v1131_v43  ;;  %v1004_v48 = vrot.slane %v1003_v29, 2  ;;  %v1259_v27 = vadd.f32 %v4220_v17, %v1258_v12  ;;  %2504 = vpow2.f32 %v1896_v10  ;;  %v873_v46 = vld [vmem:[%s4371_s6 + $0x10] sm:$0xff]  ;;  %v874_v12 = vld [vmem:[%s4371_s6 + $0x18] sm:$0xff] }
 0x21b   :  { %v1389_v22 = vadd.f32 %v1388_v33, %v1387_v41  ;;  %v1512_v39 = vmul.f32 1.442695, %v1511_v42  ;;  %v4225_v25 = vpop.eup %2502  ;;  %v1767_v59 = vsub.f32 %v1760_v23, %v1766_v32 }
 0x21c   :  { %v1134_v53 = vrot.slane %v1133_v45, 1  ;;  %v1005_v6 = vadd.f32 %v1004_v48, %v1003_v29  ;;  %v1260_v30 = vrot.slane %v1259_v27, 2  ;;  %v1642_v18 = vrot.slane %v4225_v25, 4 }
 0x21d   :  { %v1390_v24 = vrot.slane %v1389_v22, 1  ;;  %2506 = vpow2.f32 %v1512_v39  ;;  %v1768_v26 = vmul.f32 1.442695, %v1767_v59  ;;  %v4708_v39 = vld [vmem:[#allocation51_spill] sm:$0xff] }
 0x21e   :  { %v1135_v35 = vadd.f32 %v1134_v53, %v1133_v45  ;;  %v1006_v57 = vrot.slane %v1005_v6, 1  ;;  %v1261_v44 = vadd.f32 %v1260_v30, %v1259_v27  ;;  %v1643_v52 = vadd.f32 %v4225_v25, %v1642_v18  ;;  %v4281_v27 = vpop.permute.xlu0 %449  ;;  %v4709_v53 = vld [vmem:[#allocation53_spill] sm:$0xff]  ;;  %v4287_v18 = vpop.permute.xlu1 %454 }
 0x21f   :  { %v1391_v31 = vadd.f32 %v1390_v24, %v1389_v22 }
 0x220   :  { %2508 = vrcp.f32 %v1135_v35  ;;  %v1007_v60 = vadd.f32 %v1006_v57, %v1005_v6  ;;  %v1262_v63 = vrot.slane %v1261_v44, 1  ;;  %v1644_v50 = vrot.slane %v1643_v52, 2  ;;  %v4710_v35 = vld [vmem:[#allocation52_spill] sm:$0xff] }
 0x221   :  { %2510 = vrcp.f32 %v1391_v31  ;;  %v636_v6 = vadd.f32 %v4709_v53, %v4281_v27  ;;  %v707_v57 = vadd.f32 %v4710_v35, %v4281_v27 }
 0x222   :  { %2512 = vrcp.f32 %v1007_v60  ;;  %v1263_v16 = vadd.f32 %v1262_v63, %v1261_v44  ;;  %v1645_v3 = vadd.f32 %v1644_v50, %v1643_v52  ;;  %v4712_v52 = vld [vmem:[#allocation55_spill] sm:$0xff]  ;;  %v4713_v63 = vld [vmem:[#allocation57_spill] sm:$0xff] }
 0x223   :  { %2514 = vpow2.f32 %v1768_v26  ;;  %v638_v26 = vadd.f32 %v4712_v52, %v4287_v18  ;;  %v640_v50 = vadd.f32 %v4713_v63, %v4287_v18 }
 0x224   :  { %v2505_v0 = vpop.eup %2504  ;;  %2516 = vrcp.f32 %v1263_v16  ;;  %v1646_v51 = vrot.slane %v1645_v3, 1 }
 0x225   :  { %v1898_v11 = vrot.slane %v2505_v0, 4 }
 0x226   :  { %v1647_v47 = vadd.f32 %v1646_v51, %v1645_v3 }
 0x227   :  { %v4229_v19 = vpop.eup %2506  ;;  %v1899_v21 = vadd.f32 %v2505_v0, %v1898_v11 }
 0x228   :  { %v1514_v8 = vrot.slane %v4229_v19, 4  ;;  %2518 = vrcp.f32 %v1647_v47  ;;  %v4297_v47 = vpop.permute.xlu0 %459 }
 0x229   :  { %v1900_v40 = vrot.slane %v1899_v21, 2 }
 0x22a   :  { %v2509_v23 = vpop.eup %2508  ;;  %v1515_v4 = vadd.f32 %v4229_v19, %v1514_v8 }
 0x22b   :  { %v2511_v36 = vpop.eup %2510  ;;  %v1137_v49 = vmul.f32 %v2509_v23, %v4209_v58  ;;  %v1901_v34 = vadd.f32 %v1900_v40, %v1899_v21  ;;  %v4714_v21 = vld [vmem:[#allocation56_spill] sm:$0xff]  ;;  %v4715_v40 = vld [vmem:[#allocation58_spill] sm:$0xff] }
 0x22c   :  { %v2513_v55 = vpop.eup %2512  ;;  %v1393_v5 = vmul.f32 %v2511_v36, %v4211_v38  ;;  %v1516_v1 = vrot.slane %v1515_v4, 2  ;;  %v711_v8 = vadd.f32 %v4714_v21, %v4287_v18  ;;  %v4716_v36 = vld [vmem:[#allocation59_spill] sm:$0xff] }
 0x22d   :  { %v2515_v61 = vpop.eup %2514  ;;  %1919 = vmatprep.subr.mxu0 %v1137_v49  ;;  %v1009_v9 = vmul.f32 %v2513_v55, %v4214_v20  ;;  %v1902_v28 = vrot.slane %v1901_v34, 1  ;;  %v872_v20 = vld [vmem:[%s4371_s6 + $0x8] sm:$0xff]  ;;  %v644_v49 = vadd.f32 %v4716_v36, %v4297_v47  ;;  %s2579_s6 = smov [#allocation5]  }
 0x22e   :  { %2008 = vmatprep.subr.mxu1 %v1393_v5  ;;  %v1517_v15 = vadd.f32 %v1516_v1, %v1515_v4  ;;  %v1770_v7 = vrot.slane %v2515_v61, 4  ;;  %v2517_v37 = vpop.eup %2516  ;;  %v713_v4 = vadd.f32 %v4715_v40, %v4287_v18  ;;  %v4726_v40 = vld [vmem:[#allocation81_spill] sm:$0xff]  ;;  %s2393_s12 = sshll.u32 %s2579_s6, 4  ;;  %s2394_s12 = int_to_ptr.vmem [resolvable:$true] %s2393_s12 }
 0x22f   :  { %1920 = vmatpush1.msra.mxu0 %v1009_v9  ;;  %v1265_v58 = vmul.f32 %v2517_v37, %v4220_v17  ;;  %v1903_v38 = vadd.f32 %v1902_v28, %v1901_v34  ;;  %v4717_v34 = vld [vmem:[#allocation61_spill] sm:$0xff]  ;;  %s2548_s13 = scalar_lea.vmem %s2394_s12, 16  ;;  %s2552_s14 = scalar_lea.vmem %s2394_s12, 32 }
 0x230   :  { %2464 = vmatmul.mubr.msk.f32.vlgmr.msra.gmra.mrb[48].mxu0 %vm1906_vm8, %v871_v2  ;;  %v1518_v43 = vrot.slane %v1517_v15, 1  ;;  %v1771_v56 = vadd.f32 %v2515_v61, %v1770_v7  ;;  %v646_v1 = vadd.f32 %v4717_v34, %v4297_v47  ;;  %p2549_p8 = scmp.ne.s32.totalorder %s2394_s12, %s2548_s13  ;;  %p2553_p9 = scmp.lt.s32.totalorder %s2394_s12, %s2394_s12 }
 0x231   :  { %1989 = vmatprep.mubr.f32.mxu0 %v2578_v13  ;;  %2009 = vmatpush1.msra.mxu1 %v1265_v58  ;;  %2520 = vrcp.f32 %v1903_v38  ;;  %v4307_v58 = vpop.permute.xlu1 %464  ;;  %v4718_v38 = vld [vmem:[#allocation60_spill] sm:$0xff]  ;;  %p2554_p10 = scmp.lt.s32.totalorder %s2552_s14, %s2548_s13 }
 0x232   :  { %v1519_v41 = vadd.f32 %v1518_v43, %v1517_v15  ;;  %v1772_v14 = vrot.slane %v1771_v56, 2  ;;  %v2519_v54 = vpop.eup %2518  ;;  %2468 = vmatmul.mubr.msk.f32.vlgmr.msra.gmra.mrb[48].mxu1 %vm1906_vm8, %v871_v2  ;;  %v717_v43 = vadd.f32 %v4718_v38, %v4297_v47 }
 0x233   :  { %2078 = vmatprep.mubr.f32.mxu1 %v2578_v13  ;;  %v1649_v62 = vmul.f32 %v2519_v54, %v4225_v25  ;;  %v634_v25 = vadd.f32 %v4708_v39, %v4281_v27  ;;  %v4720_v54 = vld [vmem:[#allocation63_spill] sm:$0xff]  ;;  %p2555_p11 = por %p2554_p10, %p2553_p9 }
 0x234   :  { %2465 = vmatmul.mubr.msk.f32.gmra.mrb[50].mxu0 %vm1906_vm8, %v872_v20  ;;  %2522 = vrcp.f32 %v1519_v41  ;;  %v1773_v17 = vadd.f32 %v1772_v14, %v1771_v56  ;;  %v4719_v41 = vld [vmem:[#allocation62_spill] sm:$0xff] }
 0x235   :  { %1995 = vmatprep.mubr.f32.mxu0 %v2578_v13  ;;  %2097 = vmatprep.subr.mxu0 %v1649_v62  ;;  %v719_v14 = vadd.f32 %v4719_v41, %v4297_v47  ;;  %v648_v62 = vadd.f32 %v4720_v54, %v4307_v58  ;;  %p2556_p12 = pnand %p2555_p11, %p2549_p8 }
 0x236   :  { %v1774_v29 = vrot.slane %v1773_v17, 1  ;;  %2469 = vmatmul.mubr.msk.f32.gmra.mrb[50].mxu1 %vm1906_vm8, %v872_v20 }
 0x237   :  { %2084 = vmatprep.mubr.f32.mxu1 %v2578_v13 }
 0x238   :  { %2466 = vmatmul.mubr.msk.f32.gmra.mrb[52].mxu0 %vm1906_vm8, %v873_v46  ;;  %v1775_v33 = vadd.f32 %v1774_v29, %v1773_v17 }
 0x239   :  { %2001 = vmatprep.mubr.f32.mxu0 %v2578_v13 }
 0x23a   :  { %2524 = vrcp.f32 %v1775_v33  ;;  %2470 = vmatmul.mubr.msk.f32.gmra.mrb[52].mxu1 %vm1906_vm8, %v873_v46  ;;  %v4721_v33 = vld [vmem:[#allocation65_spill] sm:$0xff] }
 0x23b   :  { %v2521_v10 = vpop.eup %2520  ;;  %2090 = vmatprep.mubr.f32.mxu1 %v2578_v13 }
 0x23c   :  { %2467 = vmatmul.mubr.msk.f32.gmra.mrb[54].mxu0 %vm1906_vm8, %v874_v12  ;;  %v1905_v42 = vmul.f32 %v2521_v10, %v2505_v0 }
 0x23d   :  { %2161 = vmatprep.mubr.f32.mxu0 %v2578_v13 }
 0x23e   :  { %v2523_v45 = vpop.eup %2522  ;;  %2471 = vmatmul.mubr.msk.f32.gmra.mrb[54].mxu1 %vm1906_vm8, %v874_v12  ;;  %2186 = vmatprep.subr.mxu1 %v1905_v42 }
 0x23f   :  { %v1521_v48 = vmul.f32 %v2523_v45, %v4229_v19  ;;  %2250 = vmatprep.mubr.f32.mxu1 %v2578_v13 }
 0x241   :  { %2098 = vmatpush1.msra.mxu0 %v1521_v48 }
 0x242   :  { %2472 = vmatmul.mubr.msk.f32.vlgmr.msra.gmra.mrb[56].mxu0 %vm1906_vm8, %v871_v2 }
 0x243   :  { %2167 = vmatprep.mubr.f32.mxu0 %v2578_v13 }
 0x244   :  { %v2525_v32 = vpop.eup %2524 }
 0x245   :  { %v1777_v22 = vmul.f32 %v2525_v32, %v2515_v61 }
 0x246   :  { %2473 = vmatmul.mubr.msk.f32.gmra.mrb[58].mxu0 %vm1906_vm8, %v872_v20 }
 0x247   :  { %2187 = vmatpush1.msra.mxu1 %v1777_v22  ;;  %2173 = vmatprep.mubr.f32.mxu0 %v2578_v13 }
 0x248   :  { %2476 = vmatmul.mubr.msk.f32.vlgmr.msra.gmra.mrb[56].mxu1 %vm1906_vm8, %v871_v2 }
 0x249   :  { %2256 = vmatprep.mubr.f32.mxu1 %v2578_v13 }
 0x24a   :  { %2474 = vmatmul.mubr.msk.f32.gmra.mrb[60].mxu0 %vm1906_vm8, %v873_v46 }
 0x24b   :  { %2179 = vmatprep.mubr.f32.mxu0 %v2578_v13 }
 0x24c   :  { %2477 = vmatmul.mubr.msk.f32.gmra.mrb[58].mxu1 %vm1906_vm8, %v872_v20 }
 0x24d   :  { %2262 = vmatprep.mubr.f32.mxu1 %v2578_v13 }
 0x24e   :  { %2475 = vmatmul.mubr.msk.f32.gmra.mrb[62].mxu0 %vm1906_vm8, %v874_v12 }
 0x250   :  { %2478 = vmatmul.mubr.msk.f32.gmra.mrb[60].mxu1 %vm1906_vm8, %v873_v46 }
 0x251   :  { %2268 = vmatprep.mubr.f32.mxu1 %v2578_v13  ;;  %v4711_v13 = vld [vmem:[#allocation54_spill] sm:$0xff] }
 0x252   :  { %v709_v44 = vadd.f32 %v4711_v13, %v4281_v27 }
 0x254   :  { %2479 = vmatmul.mubr.msk.f32.gmra.mrb[62].mxu1 %vm1906_vm8, %v874_v12  ;;  %v650_v12 = vadd.f32 %v4721_v33, %v4307_v58 }
 0x303   :  { %v1985_v59 = vpop.f32.mrb[48].mxu0 }
 0x304   :  { %v2275_v24 = vmul.f32 %v1985_v59, %v634_v25  ;;  %v1987_v30 = vpop.f32.mrb[49].mxu0  ;;  %v4722_v25 = vld [vmem:[#allocation64_spill] sm:$0xff] }
 0x305   :  { %v2276_v31 = vmul.f32 %v1987_v30, %v636_v6  ;;  %v2074_v60 = vpop.f32.mrb[48].mxu1  ;;  %v721_v53 = vadd.f32 %v4722_v25, %v4307_v58 }
 0x306   :  { %v2277_v16 = vmul.f32 %v2074_v60, %v707_v57  ;;  %v2076_v3 = vpop.f32.mrb[49].mxu1 }
 0x307   :  { %v1991_v0 = vpop.f32.mrb[50].mxu0  ;;  %v2278_v51 = vmul.f32 %v2076_v3, %v709_v44 }
 0x308   :  { %v2283_v11 = vmul.f32 %v1991_v0, %v638_v26  ;;  %v1993_v19 = vpop.f32.mrb[51].mxu0  ;;  %v4724_v26 = vld [vmem:[#allocation78_spill] sm:$0xff] }
 0x309   :  { %v2284_v23 = vmul.f32 %v1993_v19, %v640_v50  ;;  %v2080_v5 = vpop.f32.mrb[50].mxu1  ;;  %v780_v60 = vadd.f32 %v4724_v26, %v4281_v27 }
 0x30a   :  { %v2307_v55 = vadd.f32 %v2283_v11, %v2275_v24  ;;  %v2285_v61 = vmul.f32 %v2080_v5, %v711_v8  ;;  %v2082_v2 = vpop.f32.mrb[51].mxu1  ;;  %v4723_v24 = vld [vmem:[#allocation66_spill] sm:$0xff]  ;;  %v4727_v5 = vld [vmem:[#allocation84_spill] sm:$0xff] }
 0x30b   :  { %v2316_v9 = vadd.f32 %v2284_v23, %v2276_v31  ;;  %v1997_v28 = vpop.f32.mrb[52].mxu0  ;;  %v2286_v15 = vmul.f32 %v2082_v2, %v713_v4  ;;  %v723_v30 = vadd.f32 %v4723_v24, %v4307_v58  ;;  %v853_v4 = vadd.f32 %v4726_v40, %v4281_v27  ;;  %v4733_v24 = vld [vmem:[#allocation88_spill] sm:$0xff] }
 0x30c   :  { %v2291_v7 = vmul.f32 %v1997_v28, %v644_v49  ;;  %v1999_v37 = vpop.f32.mrb[53].mxu0  ;;  %v2325_v56 = vadd.f32 %v2285_v61, %v2277_v16  ;;  %v4725_v16 = vld [vmem:[#allocation83_spill] sm:$0xff]  ;;  %v855_v34 = vadd.f32 %v4727_v5, %v4281_v27  ;;  %v4729_v28 = vld [vmem:[#allocation86_spill] sm:$0xff] }
 0x30d   :  { %v2292_v20 = vmul.f32 %v1999_v37, %v646_v1  ;;  %v2334_v17 = vadd.f32 %v2286_v15, %v2278_v51  ;;  %v2086_v29 = vpop.f32.mrb[52].mxu1  ;;  %v782_v3 = vadd.f32 %v4725_v16, %v4281_v27  ;;  %v4728_v1 = vld [vmem:[#allocation85_spill] sm:$0xff]  ;;  %v857_v15 = vadd.f32 %v4729_v28, %v4287_v18  ;;  %v4735_v16 = vld [vmem:[#allocation96_spill] sm:$0xff] }
 0x30e   :  { %v2308_v46 = vadd.f32 %v2307_v55, %v2291_v7  ;;  %v2293_v10 = vmul.f32 %v2086_v29, %v717_v43  ;;  %v2088_v45 = vpop.f32.mrb[53].mxu1  ;;  %v784_v61 = vadd.f32 %v4728_v1, %v4287_v18  ;;  %v4730_v7 = vld [vmem:[#allocation87_spill] sm:$0xff] }
 0x30f   :  { %v2317_v42 = vadd.f32 %v2316_v9, %v2292_v20  ;;  %v2003_v48 = vpop.f32.mrb[54].mxu0  ;;  %v2294_v32 = vmul.f32 %v2088_v45, %v719_v14  ;;  %v786_v37 = vadd.f32 %v4730_v7, %v4287_v18  ;;  %v4731_v20 = vld [vmem:[#allocation90_spill] sm:$0xff] }
 0x310   :  { %v2299_v22 = vmul.f32 %v2003_v48, %v648_v62  ;;  %v2005_v39 = vpop.f32.mrb[55].mxu0  ;;  %v2326_v6 = vadd.f32 %v2325_v56, %v2293_v10  ;;  %v790_v41 = vadd.f32 %v4731_v20, %v4297_v47 }
 0x311   :  { %v2300_v59 = vmul.f32 %v2005_v39, %v650_v12  ;;  %v2335_v35 = vadd.f32 %v2334_v17, %v2294_v32  ;;  %v2092_v31 = vpop.f32.mrb[54].mxu1  ;;  %v4732_v17 = vld [vmem:[#allocation92_spill] sm:$0xff] }
 0x312   :  { %v2309_v57 = vadd.f32 %v2308_v46, %v2299_v22  ;;  %v2301_v13 = vmul.f32 %v2092_v31, %v721_v53  ;;  %v2094_v52 = vpop.f32.mrb[55].mxu1  ;;  %v792_v46 = vadd.f32 %v4732_v17, %v4297_v47 }
 0x313   :  { %v2318_v44 = vadd.f32 %v2317_v42, %v2300_v59  ;;  %v2302_v50 = vmul.f32 %v2094_v52, %v723_v30  ;;  %v859_v30 = vadd.f32 %v4733_v24, %v4287_v18 }
 0x314   :  { %v2310_v63 = vrot.slane %v2309_v57, 4  ;;  %v2327_v0 = vadd.f32 %v2326_v6, %v2301_v13 }
 0x315   :  { %v2319_v51 = vrot.slane %v2318_v44, 4  ;;  %v2163_v11 = vpop.f32.mrb[56].mxu0  ;;  %v2336_v21 = vadd.f32 %v2335_v35, %v2302_v50 }
 0x316   :  { %v2311_v19 = vadd.f32 %v2310_v63, %v2309_v57  ;;  %v2279_v8 = vmul.f32 %v2163_v11, %v780_v60  ;;  %v2165_v23 = vpop.f32.mrb[57].mxu0  ;;  %v2328_v36 = vrot.slane %v2327_v0, 4 }
 0x317   :  { %v2320_v49 = vadd.f32 %v2319_v51, %v2318_v44  ;;  %v2280_v55 = vmul.f32 %v2165_v23, %v782_v3  ;;  %v2337_v2 = vrot.slane %v2336_v21, 4  ;;  %v4734_v44 = vld [vmem:[#allocation94_spill] sm:$0xff]  ;;  %v796_v3 = vadd.f32 %v4735_v16, %v4307_v58 }
 0x318   :  { %v2312_v9 = vrot.slane %v2311_v19, 2  ;;  %v2329_v38 = vadd.f32 %v2328_v36, %v2327_v0  ;;  %v794_v52 = vadd.f32 %v4734_v44, %v4307_v58 }
 0x319   :  { %v2321_v43 = vrot.slane %v2320_v49, 2  ;;  %v2169_v56 = vpop.f32.mrb[58].mxu0  ;;  %v2338_v54 = vadd.f32 %v2337_v2, %v2336_v21 }
 0x31a   :  { %v2313_v14 = vadd.f32 %v2312_v9, %v2311_v19  ;;  %v2287_v27 = vmul.f32 %v2169_v56, %v784_v61  ;;  %v2171_v62 = vpop.f32.mrb[59].mxu0  ;;  %v2330_v29 = vrot.slane %v2329_v38, 2 }
 0x31b   :  { %v2322_v33 = vadd.f32 %v2321_v43, %v2320_v49  ;;  %v2252_v12 = vpop.f32.mrb[56].mxu1  ;;  %v2288_v10 = vmul.f32 %v2171_v62, %v786_v37  ;;  %v2339_v45 = vrot.slane %v2338_v54, 2  ;;  %v4737_v49 = vld [vmem:[#allocation93_spill] sm:$0xff] }
 0x31c   :  { %v2314_v42 = vrot.slane %v2313_v14, 1  ;;  %v2281_v48 = vmul.f32 %v2252_v12, %v853_v4  ;;  %v2254_v32 = vpop.f32.mrb[57].mxu1  ;;  %v2343_v22 = vadd.f32 %v2287_v27, %v2279_v8  ;;  %v2331_v39 = vadd.f32 %v2330_v29, %v2329_v38  ;;  %v4736_v4 = vld [vmem:[#allocation91_spill] sm:$0xff] }
 0x31d   :  { %v2323_v25 = vrot.slane %v2322_v33, 1  ;;  %v2282_v53 = vmul.f32 %v2254_v32, %v855_v34  ;;  %v2352_v6 = vadd.f32 %v2288_v10, %v2280_v55  ;;  %v2175_v59 = vpop.f32.mrb[60].mxu0  ;;  %v2340_v57 = vadd.f32 %v2339_v45, %v2338_v54 }
 0x31e   :  { %v2315_v35 = vadd.f32 %v2314_v42, %v2313_v14  ;;  %v2295_v31 = vmul.f32 %v2175_v59, %v790_v41  ;;  %v2177_v13 = vpop.f32.mrb[61].mxu0  ;;  %v2332_v26 = vrot.slane %v2331_v39, 1  ;;  %v863_v36 = vadd.f32 %v4736_v4, %v4297_v47  ;;  %v4738_v41 = vld [vmem:[#allocation95_spill] sm:$0xff] }
 0x31f   :  { %v2324_v60 = vadd.f32 %v2323_v25, %v2322_v33  ;;  %v2258_v63 = vpop.f32.mrb[58].mxu1  ;;  %v2296_v50 = vmul.f32 %v2177_v13, %v792_v46  ;;  %v2341_v0 = vrot.slane %v2340_v57, 1  ;;  %v865_v55 = vadd.f32 %v4737_v49, %v4297_v47  ;;  %v4739_v47 = vld [vmem:[#allocation97_spill] sm:$0xff] }
 0x320   :  { %v2289_v51 = vmul.f32 %v2258_v63, %v857_v15  ;;  %v2260_v11 = vpop.f32.mrb[59].mxu1  ;;  %v2344_v19 = vadd.f32 %v2343_v22, %v2295_v31  ;;  %v2333_v21 = vadd.f32 %v2332_v26, %v2331_v39  ;;  %v867_v14 = vadd.f32 %v4738_v41, %v4307_v58 }
 0x321   :  { %v2379_v18 = vadd.f32 %v2324_v60, %v2315_v35  ;;  %v2290_v8 = vmul.f32 %v2260_v11, %v859_v30  ;;  %v2353_v23 = vadd.f32 %v2352_v6, %v2296_v50  ;;  %v2181_v40 = vpop.f32.mrb[62].mxu0  ;;  %v2342_v61 = vadd.f32 %v2341_v0, %v2340_v57 }
 0x322   :  { %v2361_v5 = vadd.f32 %v2289_v51, %v2281_v48  ;;  %v2303_v34 = vmul.f32 %v2181_v40, %v794_v52  ;;  %v2183_v1 = vpop.f32.mrb[63].mxu0  ;;  %v869_v62 = vadd.f32 %v4739_v47, %v4307_v58 }
 0x323   :  { %v2380_v9 = vadd.f32 %v2379_v18, %v2333_v21  ;;  %v2370_v2 = vadd.f32 %v2290_v8, %v2282_v53  ;;  %v2264_v28 = vpop.f32.mrb[60].mxu1  ;;  %v2304_v15 = vmul.f32 %v2183_v1, %v796_v3 }
 0x324   :  { %v2297_v7 = vmul.f32 %v2264_v28, %v863_v36  ;;  %v2266_v37 = vpop.f32.mrb[61].mxu1  ;;  %v2345_v38 = vadd.f32 %v2344_v19, %v2303_v34 }
 0x325   :  { %v2381_v43 = vadd.f32 %v2380_v9, %v2342_v61  ;;  %v2298_v56 = vmul.f32 %v2266_v37, %v865_v55  ;;  %v2354_v20 = vadd.f32 %v2353_v23, %v2304_v15 }
 0x326   :  { %v2362_v54 = vadd.f32 %v2361_v5, %v2297_v7  ;;  %v2346_v27 = vrot.slane %v2345_v38, 4 }
 0x327   :  { %v2371_v17 = vadd.f32 %v2370_v2, %v2298_v56  ;;  %v2270_v46 = vpop.f32.mrb[62].mxu1  ;;  %v2355_v29 = vrot.slane %v2354_v20, 4 }
 0x328   :  { %v2347_v33 = vadd.f32 %v2346_v27, %v2345_v38  ;;  %v2305_v12 = vmul.f32 %v2270_v46, %v867_v14  ;;  %v2272_v10 = vpop.f32.mrb[63].mxu1 }
 0x329   :  { %v2356_v42 = vadd.f32 %v2355_v29, %v2354_v20  ;;  %v2306_v45 = vmul.f32 %v2272_v10, %v869_v62 }
 0x32a   :  { %v2348_v48 = vrot.slane %v2347_v33, 2  ;;  %v2363_v32 = vadd.f32 %v2362_v54, %v2305_v12 }
 0x32b   :  { %v2357_v22 = vrot.slane %v2356_v42, 2  ;;  %v2372_v39 = vadd.f32 %v2371_v17, %v2306_v45 }
 0x32c   :  { %v2349_v25 = vadd.f32 %v2348_v48, %v2347_v33  ;;  %v2364_v53 = vrot.slane %v2363_v32, 4 }
 0x32d   :  { %v2358_v6 = vadd.f32 %v2357_v22, %v2356_v42  ;;  %v2373_v59 = vrot.slane %v2372_v39, 4 }
 0x32e   :  { %v2350_v24 = vrot.slane %v2349_v25, 1  ;;  %v2365_v30 = vadd.f32 %v2364_v53, %v2363_v32 }
 0x32f   :  { %v2359_v35 = vrot.slane %v2358_v6, 1  ;;  %v2374_v58 = vadd.f32 %v2373_v59, %v2372_v39 }
 0x330   :  { %v2351_v57 = vadd.f32 %v2350_v24, %v2349_v25  ;;  %v2366_v31 = vrot.slane %v2365_v30, 2 }
 0x331   :  { %v2360_v13 = vadd.f32 %v2359_v35, %v2358_v6  ;;  %v2375_v44 = vrot.slane %v2374_v58, 2 }
 0x332   :  { %v2367_v52 = vadd.f32 %v2366_v31, %v2365_v30  ;;  %v2382_v26 = vadd.f32 %v2381_v43, %v2351_v57 }
 0x333   :  { %v2376_v60 = vadd.f32 %v2375_v44, %v2374_v58 }
 0x334   :  { %v2368_v63 = vrot.slane %v2367_v52, 1  ;;  %v2383_v50 = vadd.f32 %v2382_v26, %v2360_v13 }
 0x335   :  { %v2377_v16 = vrot.slane %v2376_v60, 1 }
 0x336   :  { %v2369_v3 = vadd.f32 %v2368_v63, %v2367_v52 }
 0x337   :  { %v2378_v0 = vadd.f32 %v2377_v16, %v2376_v60 }
 0x338   :  { %v2384_v51 = vadd.f32 %v2383_v50, %v2369_v3 }
 0x33a   :  { %v2385_v11 = vadd.f32 %v2384_v51, %v2378_v0 }
 0x33c   :  { %2386 = vst [vmem:[#allocation5] sm:$0x1] %v2385_v11 }
 0x33d   :  { %2559 = shalt.err (!%p2556_p12)
}
 0x33e   :  { %s2560_s16 = scalar_lea.hbm %s4372_s7, 16 }
 0x33f   :  { %p2561_p13 = scmp.ne.s32.totalorder %s4372_s7, %s2560_s16  ;;  %p2564_p0 = scmp.lt.u32.totalorder %s2560_s16, %s4372_s7 }
 0x341   :  { %p2566_p1 = pnand %p2564_p0, %p2561_p13 }
 0x343   :  { %2569 = shalt.err (!%p2566_p1)
}
 0x344   :  { %2396 = dma.vmem_to_hbm [thread:$0]  %s2394_s12, 16, %s4372_s7, [#allocation4]  }
 0x345   :  { %2572 = dma.done.wait [#allocation4], 16  }
 0x346   :  { %2573 = vsyncadd [#allocation4], 4294967280 }
 0x347   :  { %2400 = vsyncpa [#allocation3], 1 }
 0x348   :  { %2401 = vsyncpa [#allocation4], 1 }

</bundles_post_ra>
